<compile_context>
chip_gen: v7x
topology: tpu7x:2x2x1
jax: 0.10.0
libtpu: 0.0.40
codegen_flags: <defaults>
</compile_context>

<pallas_src>
import functools

import jax
import jax.numpy as jnp
from jax.experimental import pallas as pl
from jax.experimental.pallas import tpu as pltpu


def _pairs(num_fields):
    rows, cols = [], []
    for i in range(num_fields - 1):
        for j in range(i + 1, num_fields):
            rows.append(i)
            cols.append(j)
    return rows, cols


def _round_up(x, m):
    return ((x + m - 1) // m) * m


def _choose_tile_b(batch, tile_b_max):
    """Batch tile: multiple of 128, <= tile_b_max, >= 2 tiles when batch allows (megacore)."""
    tile_b_max = max(128, _round_up(tile_b_max, 128))
    if batch <= 128:
        return 128
    n = max(2, pl.cdiv(batch, tile_b_max))
    return min(tile_b_max, _round_up(pl.cdiv(batch, n), 128))


def afm_kernel(x_ref, w_ref, ap_ref, out_ref, *, rows, cols, attn_size):
    """One batch tile of the AFM interaction + attention pooling + final fc.

    x_ref   : (F, D, TB) f32   embedded fields, batch on the lane axis
    w_ref   : (A+1, D)   f32   rows 0..A-1 = attention weight (torch W), row A = fc weight
    ap_ref  : (A, 2)     f32   column 0 = attention bias, column 1 = projection weight
    out_ref : (1, TB)    f32   lane-dense output slab: fc(AFM(x)) without the fc bias
    """
    x = x_ref[...]                                           # (F, D, TB)
    num_p = len(rows)
    a = attn_size

    # All pairwise field products, pair-major, batch lane-dense: (P, D, TB).
    # Only a stack along the leading (tile-array) axis -> no relayout.
    ip = jnp.stack([x[i] * x[j] for i, j in zip(rows, cols)], axis=0)

    # Fused attention + final-fc contraction over D on the MXU:
    #   (P, A+1, D) @ (P, D, TB) -> (P, A+1, TB)
    # bf16 operands, f32 accumulation (extra fc row is free: MXU N is padded anyway).
    w = jnp.broadcast_to(w_ref[...].astype(jnp.bfloat16)[None],
                         (num_p,) + w_ref.shape)             # (P, A+1, D)
    res = jax.lax.dot_general(
        w, ip.astype(jnp.bfloat16),
        dimension_numbers=(((2,), (1,)), ((0,), (0,))),
        preferred_element_type=jnp.float32)                  # (P, A+1, TB)

    ap = ap_ref[...]                                         # (A, 2)
    ab = ap[:, 0:1][None]                                    # (1, A, 1) attention bias
    apw = ap[:, 1:2][None]                                   # (1, A, 1) projection weight

    h = jnp.maximum(res[:, :a, :] + ab, 0.0)                 # (P, A, TB)
    # projection (A -> 1); the projection bias is a uniform pre-softmax shift -> dropped.
    logits = jnp.sum(h * apw, axis=1, keepdims=True)         # (P, 1, TB)
    z = res[:, a:a + 1, :]                                   # (P, 1, TB) == ip_p . lw (fused fc)

    # Softmax over the pair axis (leading dim -> pure VPU), reciprocal on the EUP slot.
    m = jnp.max(logits, axis=0, keepdims=True)               # (1, 1, TB)
    e = jnp.exp(logits - m)                                  # (P, 1, TB)
    wts = e * pl.reciprocal(jnp.sum(e, axis=0, keepdims=True), approx=True)

    # fc( sum_p w_p * ip_p ) == sum_p w_p * (ip_p . lw)  -> directly a (1, TB) lane-dense store.
    out_ref[...] = jnp.sum(wts * z, axis=0)                  # (1, TB)


def afm_branch_forward(x_emb, aw, ab, apw, lw, *, tile_b_max=512):
    """fc(AFM(x_emb)) WITHOUT the fc bias. x_emb: (B, F, D) f32 -> (B,) f32."""
    B, F, D = x_emb.shape
    A = aw.shape[-1]
    rows, cols = _pairs(F)

    # Combined (A+1, D) weight: attention rows + the final fc row (fused into the matmul).
    w_comb = jnp.concatenate([aw.T, lw.reshape(1, D)], axis=0)       # (A+1, D)
    ap_comb = jnp.stack([ab, apw], axis=1)                           # (A, 2)

    tile_b = _choose_tile_b(B, tile_b_max)
    n_tiles = pl.cdiv(B, tile_b)
    b_pad = n_tiles * tile_b

    # Lane-dense layout: batch on the minor axis (one XLA transpose in the wrapper).
    x_t = jnp.transpose(x_emb, (1, 2, 0))                            # (F, D, B)
    if b_pad != B:
        # zero-padded columns are numerically safe (finite attn weights, contribution 0)
        x_t = jnp.pad(x_t, ((0, 0), (0, 0), (0, b_pad - B)))

    kernel = functools.partial(afm_kernel, rows=tuple(rows), cols=tuple(cols),
                               attn_size=A)
    out = pl.pallas_call(
        kernel,
        grid=(n_tiles,),
        in_specs=[
            pl.BlockSpec((F, D, tile_b), lambda i: (0, 0, i)),
            pl.BlockSpec((A + 1, D), lambda i: (0, 0)),
            pl.BlockSpec((A, 2), lambda i: (0, 0)),
        ],
        out_specs=pl.BlockSpec((1, tile_b), lambda i: (0, i)),
        out_shape=jax.ShapeDtypeStruct((1, b_pad), jnp.float32),
        compiler_params=pltpu.CompilerParams(
            dimension_semantics=("parallel",),
            vmem_limit_bytes=32 * 1024 * 1024,
        ),
    )(x_t, w_comb, ap_comb)
    return out[0, :B]                                                # (B,)


def afm_model_forward(x, offsets, emb_table, lin_table, lin_bias,
                      aw, ab, apw, lw, lb, *, tile_b_max=512):
    """Full model forward: FeaturesLinear(x) + fc(AFM(FeaturesEmbedding(x)))."""
    idx = x + offsets[None, :]                                 # (B, F)
    x_emb = emb_table[idx]                                     # (B, F, D)  gather stays in XLA
    x_lin = jnp.sum(lin_table[idx], axis=1) + lin_bias         # (B, 1)
    afm_fc = afm_branch_forward(x_emb, aw, ab, apw, lw, tile_b_max=tile_b_max)   # (B,)
    # linear term, fc bias (and the softmax-invariant projection bias) folded outside the kernel
    return x_lin + afm_fc[:, None] + lb                        # (B, 1)
    # TODO(synk): dropout layers are treated as identity (inference); training-mode
    # dropout would need pltpu.prng_* inside the kernel.


def reference_forward(x, offsets, emb_table, lin_table, lin_bias,
                      aw, ab, apw, apb, lw, lb):
    """Pure-JAX reference mirroring the PyTorch AFM semantics (eval mode)."""
    idx = x + offsets[None, :]
    emb = emb_table[idx]                                       # (B, F, D)
    x_lin = jnp.sum(lin_table[idx], axis=1) + lin_bias         # (B, 1)
    F = emb.shape[1]
    rows, cols = _pairs(F)
    rows = jnp.array(rows); cols = jnp.array(cols)
    ip = emb[:, rows, :] * emb[:, cols, :]                     # (B, P, D)
    attn = jax.nn.relu(jnp.einsum("bpd,da->bpa", ip, aw) + ab)
    score = jnp.einsum("bpa,a->bp", attn, apw)[..., None] + apb
    score = jax.nn.softmax(score, axis=1)                      # (B, P, 1)
    afm_out = jnp.sum(score * ip, axis=1)                      # (B, D)
    return x_lin + afm_out @ lw[:, None] + lb                  # (B, 1)


if __name__ == "__main__":
    key = jax.random.PRNGKey(0)

    field_dims = (7, 11, 13, 5, 9, 6, 8, 12, 10, 4)   # 10 fields (module sets num_fields = 10)
    F = len(field_dims)
    D = 16            # embed_dim
    A = 8             # attn_size
    B = 300           # batch (not a multiple of 128/tile -> exercises padding + 2-tile grid)
    TOTAL = sum(field_dims)

    offs, acc = [], 0
    for fd in field_dims:
        offs.append(acc)
        acc += fd
    offsets = jnp.array(offs, dtype=jnp.int32)

    ks = jax.random.split(key, F + 8)

    # raw categorical inputs: (B, F) int
    x = jnp.concatenate(
        [jax.random.randint(ks[i], (B, 1), 0, field_dims[i]) for i in range(F)],
        axis=1).astype(jnp.int32)

    # parameters (linear weights stored as (in, out) == torch weight transposed)
    emb_table = jax.random.normal(ks[F + 0], (TOTAL, D), jnp.float32) * 0.1
    lin_table = jax.random.normal(ks[F + 1], (TOTAL, 1), jnp.float32) * 0.1
    lin_bias = jnp.zeros((1,), jnp.float32)

    aw = jax.random.normal(ks[F + 2], (D, A), jnp.float32) * 0.1    # attention.weight^T
    ab = jax.random.normal(ks[F + 3], (A,), jnp.float32) * 0.1      # attention.bias
    apw = jax.random.normal(ks[F + 4], (A,), jnp.float32) * 0.1     # projection.weight
    apb = jax.random.normal(ks[F + 5], (), jnp.float32) * 0.1       # projection.bias (softmax no-op)
    lw = jax.random.normal(ks[F + 6], (D,), jnp.float32) * 0.1      # fc.weight
    lb = jax.random.normal(ks[F + 7], (), jnp.float32) * 0.1        # fc.bias

    out = afm_model_forward(x, offsets, emb_table, lin_table, lin_bias,
                            aw, ab, apw, lw, lb, tile_b_max=512)
    out = jax.block_until_ready(out)

    ref = reference_forward(x, offsets, emb_table, lin_table, lin_bias,
                            aw, ab, apw, apb, lw, lb)

    assert out.shape == (B, 1)
    err = float(jnp.max(jnp.abs(out - ref)))
    assert jnp.allclose(out, ref, atol=1e-3, rtol=1e-3), f"max abs err {err}"
    print("KERNEL_OK")
</pallas_src>

<mosaic_0001>
module attributes {stable_mosaic.version = 11 : i64} {
  func.func @afm_kernel(%arg0: i32, %arg1: memref<10x16x256xf32, #tpu.memory_space<vmem>>, %arg2: memref<9x16xf32, #tpu.memory_space<vmem>>, %arg3: memref<8x2xf32, #tpu.memory_space<vmem>>, %arg4: memref<1x256xf32, #tpu.memory_space<vmem>>) attributes {dimension_semantics = [#tpu.dimension_semantics<parallel>], iteration_bounds = array<i64: 2>, scalar_prefetch = 0 : i64, scratch_operands = 0 : i64, tpu.core_type = #tpu.core_type<tc>, window_params = [{transform_indices = @transform_0, window_bounds = array<i64: 10, 16, 256>}, {pipeline_mode = #tpu.pipeline_mode<synchronous>, transform_indices = @transform_1, window_bounds = array<i64: 9, 16>}, {pipeline_mode = #tpu.pipeline_mode<synchronous>, transform_indices = @transform_2, window_bounds = array<i64: 8, 2>}, {transform_indices = @transform_3, window_bounds = array<i64: 1, 256>}]} {
    %c0 = arith.constant 0 : index
    %c0_0 = arith.constant 0 : index
    %c0_1 = arith.constant 0 : index
    %0 = vector.load %arg1[%c0, %c0_0, %c0_1] : memref<10x16x256xf32, #tpu.memory_space<vmem>>, vector<10x16x256xf32>
    %1 = vector.extract_strided_slice %0 {offsets = [0, 0, 0], sizes = [1, 16, 256], strides = [1, 1, 1]} : vector<10x16x256xf32> to vector<1x16x256xf32>
    %2 = vector.shape_cast %1 : vector<1x16x256xf32> to vector<16x256xf32>
    %3 = vector.extract_strided_slice %0 {offsets = [1, 0, 0], sizes = [1, 16, 256], strides = [1, 1, 1]} : vector<10x16x256xf32> to vector<1x16x256xf32>
    %4 = vector.shape_cast %3 : vector<1x16x256xf32> to vector<16x256xf32>
    %5 = arith.mulf %2, %4 : vector<16x256xf32>
    %6 = vector.extract_strided_slice %0 {offsets = [0, 0, 0], sizes = [1, 16, 256], strides = [1, 1, 1]} : vector<10x16x256xf32> to vector<1x16x256xf32>
    %7 = vector.shape_cast %6 : vector<1x16x256xf32> to vector<16x256xf32>
    %8 = vector.extract_strided_slice %0 {offsets = [2, 0, 0], sizes = [1, 16, 256], strides = [1, 1, 1]} : vector<10x16x256xf32> to vector<1x16x256xf32>
    %9 = vector.shape_cast %8 : vector<1x16x256xf32> to vector<16x256xf32>
    %10 = arith.mulf %7, %9 : vector<16x256xf32>
    %11 = vector.extract_strided_slice %0 {offsets = [0, 0, 0], sizes = [1, 16, 256], strides = [1, 1, 1]} : vector<10x16x256xf32> to vector<1x16x256xf32>
    %12 = vector.shape_cast %11 : vector<1x16x256xf32> to vector<16x256xf32>
    %13 = vector.extract_strided_slice %0 {offsets = [3, 0, 0], sizes = [1, 16, 256], strides = [1, 1, 1]} : vector<10x16x256xf32> to vector<1x16x256xf32>
    %14 = vector.shape_cast %13 : vector<1x16x256xf32> to vector<16x256xf32>
    %15 = arith.mulf %12, %14 : vector<16x256xf32>
    %16 = vector.extract_strided_slice %0 {offsets = [0, 0, 0], sizes = [1, 16, 256], strides = [1, 1, 1]} : vector<10x16x256xf32> to vector<1x16x256xf32>
    %17 = vector.shape_cast %16 : vector<1x16x256xf32> to vector<16x256xf32>
    %18 = vector.extract_strided_slice %0 {offsets = [4, 0, 0], sizes = [1, 16, 256], strides = [1, 1, 1]} : vector<10x16x256xf32> to vector<1x16x256xf32>
    %19 = vector.shape_cast %18 : vector<1x16x256xf32> to vector<16x256xf32>
    %20 = arith.mulf %17, %19 : vector<16x256xf32>
    %21 = vector.extract_strided_slice %0 {offsets = [0, 0, 0], sizes = [1, 16, 256], strides = [1, 1, 1]} : vector<10x16x256xf32> to vector<1x16x256xf32>
    %22 = vector.shape_cast %21 : vector<1x16x256xf32> to vector<16x256xf32>
    %23 = vector.extract_strided_slice %0 {offsets = [5, 0, 0], sizes = [1, 16, 256], strides = [1, 1, 1]} : vector<10x16x256xf32> to vector<1x16x256xf32>
    %24 = vector.shape_cast %23 : vector<1x16x256xf32> to vector<16x256xf32>
    %25 = arith.mulf %22, %24 : vector<16x256xf32>
    %26 = vector.extract_strided_slice %0 {offsets = [0, 0, 0], sizes = [1, 16, 256], strides = [1, 1, 1]} : vector<10x16x256xf32> to vector<1x16x256xf32>
    %27 = vector.shape_cast %26 : vector<1x16x256xf32> to vector<16x256xf32>
    %28 = vector.extract_strided_slice %0 {offsets = [6, 0, 0], sizes = [1, 16, 256], strides = [1, 1, 1]} : vector<10x16x256xf32> to vector<1x16x256xf32>
    %29 = vector.shape_cast %28 : vector<1x16x256xf32> to vector<16x256xf32>
    %30 = arith.mulf %27, %29 : vector<16x256xf32>
    %31 = vector.extract_strided_slice %0 {offsets = [0, 0, 0], sizes = [1, 16, 256], strides = [1, 1, 1]} : vector<10x16x256xf32> to vector<1x16x256xf32>
    %32 = vector.shape_cast %31 : vector<1x16x256xf32> to vector<16x256xf32>
    %33 = vector.extract_strided_slice %0 {offsets = [7, 0, 0], sizes = [1, 16, 256], strides = [1, 1, 1]} : vector<10x16x256xf32> to vector<1x16x256xf32>
    %34 = vector.shape_cast %33 : vector<1x16x256xf32> to vector<16x256xf32>
    %35 = arith.mulf %32, %34 : vector<16x256xf32>
    %36 = vector.extract_strided_slice %0 {offsets = [0, 0, 0], sizes = [1, 16, 256], strides = [1, 1, 1]} : vector<10x16x256xf32> to vector<1x16x256xf32>
    %37 = vector.shape_cast %36 : vector<1x16x256xf32> to vector<16x256xf32>
    %38 = vector.extract_strided_slice %0 {offsets = [8, 0, 0], sizes = [1, 16, 256], strides = [1, 1, 1]} : vector<10x16x256xf32> to vector<1x16x256xf32>
    %39 = vector.shape_cast %38 : vector<1x16x256xf32> to vector<16x256xf32>
    %40 = arith.mulf %37, %39 : vector<16x256xf32>
    %41 = vector.extract_strided_slice %0 {offsets = [0, 0, 0], sizes = [1, 16, 256], strides = [1, 1, 1]} : vector<10x16x256xf32> to vector<1x16x256xf32>
    %42 = vector.shape_cast %41 : vector<1x16x256xf32> to vector<16x256xf32>
    %43 = vector.extract_strided_slice %0 {offsets = [9, 0, 0], sizes = [1, 16, 256], strides = [1, 1, 1]} : vector<10x16x256xf32> to vector<1x16x256xf32>
    %44 = vector.shape_cast %43 : vector<1x16x256xf32> to vector<16x256xf32>
    %45 = arith.mulf %42, %44 : vector<16x256xf32>
    %46 = vector.extract_strided_slice %0 {offsets = [1, 0, 0], sizes = [1, 16, 256], strides = [1, 1, 1]} : vector<10x16x256xf32> to vector<1x16x256xf32>
    %47 = vector.shape_cast %46 : vector<1x16x256xf32> to vector<16x256xf32>
    %48 = vector.extract_strided_slice %0 {offsets = [2, 0, 0], sizes = [1, 16, 256], strides = [1, 1, 1]} : vector<10x16x256xf32> to vector<1x16x256xf32>
    %49 = vector.shape_cast %48 : vector<1x16x256xf32> to vector<16x256xf32>
    %50 = arith.mulf %47, %49 : vector<16x256xf32>
    %51 = vector.extract_strided_slice %0 {offsets = [1, 0, 0], sizes = [1, 16, 256], strides = [1, 1, 1]} : vector<10x16x256xf32> to vector<1x16x256xf32>
    %52 = vector.shape_cast %51 : vector<1x16x256xf32> to vector<16x256xf32>
    %53 = vector.extract_strided_slice %0 {offsets = [3, 0, 0], sizes = [1, 16, 256], strides = [1, 1, 1]} : vector<10x16x256xf32> to vector<1x16x256xf32>
    %54 = vector.shape_cast %53 : vector<1x16x256xf32> to vector<16x256xf32>
    %55 = arith.mulf %52, %54 : vector<16x256xf32>
    %56 = vector.extract_strided_slice %0 {offsets = [1, 0, 0], sizes = [1, 16, 256], strides = [1, 1, 1]} : vector<10x16x256xf32> to vector<1x16x256xf32>
    %57 = vector.shape_cast %56 : vector<1x16x256xf32> to vector<16x256xf32>
    %58 = vector.extract_strided_slice %0 {offsets = [4, 0, 0], sizes = [1, 16, 256], strides = [1, 1, 1]} : vector<10x16x256xf32> to vector<1x16x256xf32>
    %59 = vector.shape_cast %58 : vector<1x16x256xf32> to vector<16x256xf32>
    %60 = arith.mulf %57, %59 : vector<16x256xf32>
    %61 = vector.extract_strided_slice %0 {offsets = [1, 0, 0], sizes = [1, 16, 256], strides = [1, 1, 1]} : vector<10x16x256xf32> to vector<1x16x256xf32>
    %62 = vector.shape_cast %61 : vector<1x16x256xf32> to vector<16x256xf32>
    %63 = vector.extract_strided_slice %0 {offsets = [5, 0, 0], sizes = [1, 16, 256], strides = [1, 1, 1]} : vector<10x16x256xf32> to vector<1x16x256xf32>
    %64 = vector.shape_cast %63 : vector<1x16x256xf32> to vector<16x256xf32>
    %65 = arith.mulf %62, %64 : vector<16x256xf32>
    %66 = vector.extract_strided_slice %0 {offsets = [1, 0, 0], sizes = [1, 16, 256], strides = [1, 1, 1]} : vector<10x16x256xf32> to vector<1x16x256xf32>
    %67 = vector.shape_cast %66 : vector<1x16x256xf32> to vector<16x256xf32>
    %68 = vector.extract_strided_slice %0 {offsets = [6, 0, 0], sizes = [1, 16, 256], strides = [1, 1, 1]} : vector<10x16x256xf32> to vector<1x16x256xf32>
    %69 = vector.shape_cast %68 : vector<1x16x256xf32> to vector<16x256xf32>
    %70 = arith.mulf %67, %69 : vector<16x256xf32>
    %71 = vector.extract_strided_slice %0 {offsets = [1, 0, 0], sizes = [1, 16, 256], strides = [1, 1, 1]} : vector<10x16x256xf32> to vector<1x16x256xf32>
    %72 = vector.shape_cast %71 : vector<1x16x256xf32> to vector<16x256xf32>
    %73 = vector.extract_strided_slice %0 {offsets = [7, 0, 0], sizes = [1, 16, 256], strides = [1, 1, 1]} : vector<10x16x256xf32> to vector<1x16x256xf32>
    %74 = vector.shape_cast %73 : vector<1x16x256xf32> to vector<16x256xf32>
    %75 = arith.mulf %72, %74 : vector<16x256xf32>
    %76 = vector.extract_strided_slice %0 {offsets = [1, 0, 0], sizes = [1, 16, 256], strides = [1, 1, 1]} : vector<10x16x256xf32> to vector<1x16x256xf32>
    %77 = vector.shape_cast %76 : vector<1x16x256xf32> to vector<16x256xf32>
    %78 = vector.extract_strided_slice %0 {offsets = [8, 0, 0], sizes = [1, 16, 256], strides = [1, 1, 1]} : vector<10x16x256xf32> to vector<1x16x256xf32>
    %79 = vector.shape_cast %78 : vector<1x16x256xf32> to vector<16x256xf32>
    %80 = arith.mulf %77, %79 : vector<16x256xf32>
    %81 = vector.extract_strided_slice %0 {offsets = [1, 0, 0], sizes = [1, 16, 256], strides = [1, 1, 1]} : vector<10x16x256xf32> to vector<1x16x256xf32>
    %82 = vector.shape_cast %81 : vector<1x16x256xf32> to vector<16x256xf32>
    %83 = vector.extract_strided_slice %0 {offsets = [9, 0, 0], sizes = [1, 16, 256], strides = [1, 1, 1]} : vector<10x16x256xf32> to vector<1x16x256xf32>
    %84 = vector.shape_cast %83 : vector<1x16x256xf32> to vector<16x256xf32>
    %85 = arith.mulf %82, %84 : vector<16x256xf32>
    %86 = vector.extract_strided_slice %0 {offsets = [2, 0, 0], sizes = [1, 16, 256], strides = [1, 1, 1]} : vector<10x16x256xf32> to vector<1x16x256xf32>
    %87 = vector.shape_cast %86 : vector<1x16x256xf32> to vector<16x256xf32>
    %88 = vector.extract_strided_slice %0 {offsets = [3, 0, 0], sizes = [1, 16, 256], strides = [1, 1, 1]} : vector<10x16x256xf32> to vector<1x16x256xf32>
    %89 = vector.shape_cast %88 : vector<1x16x256xf32> to vector<16x256xf32>
    %90 = arith.mulf %87, %89 : vector<16x256xf32>
    %91 = vector.extract_strided_slice %0 {offsets = [2, 0, 0], sizes = [1, 16, 256], strides = [1, 1, 1]} : vector<10x16x256xf32> to vector<1x16x256xf32>
    %92 = vector.shape_cast %91 : vector<1x16x256xf32> to vector<16x256xf32>
    %93 = vector.extract_strided_slice %0 {offsets = [4, 0, 0], sizes = [1, 16, 256], strides = [1, 1, 1]} : vector<10x16x256xf32> to vector<1x16x256xf32>
    %94 = vector.shape_cast %93 : vector<1x16x256xf32> to vector<16x256xf32>
    %95 = arith.mulf %92, %94 : vector<16x256xf32>
    %96 = vector.extract_strided_slice %0 {offsets = [2, 0, 0], sizes = [1, 16, 256], strides = [1, 1, 1]} : vector<10x16x256xf32> to vector<1x16x256xf32>
    %97 = vector.shape_cast %96 : vector<1x16x256xf32> to vector<16x256xf32>
    %98 = vector.extract_strided_slice %0 {offsets = [5, 0, 0], sizes = [1, 16, 256], strides = [1, 1, 1]} : vector<10x16x256xf32> to vector<1x16x256xf32>
    %99 = vector.shape_cast %98 : vector<1x16x256xf32> to vector<16x256xf32>
    %100 = arith.mulf %97, %99 : vector<16x256xf32>
    %101 = vector.extract_strided_slice %0 {offsets = [2, 0, 0], sizes = [1, 16, 256], strides = [1, 1, 1]} : vector<10x16x256xf32> to vector<1x16x256xf32>
    %102 = vector.shape_cast %101 : vector<1x16x256xf32> to vector<16x256xf32>
    %103 = vector.extract_strided_slice %0 {offsets = [6, 0, 0], sizes = [1, 16, 256], strides = [1, 1, 1]} : vector<10x16x256xf32> to vector<1x16x256xf32>
    %104 = vector.shape_cast %103 : vector<1x16x256xf32> to vector<16x256xf32>
    %105 = arith.mulf %102, %104 : vector<16x256xf32>
    %106 = vector.extract_strided_slice %0 {offsets = [2, 0, 0], sizes = [1, 16, 256], strides = [1, 1, 1]} : vector<10x16x256xf32> to vector<1x16x256xf32>
    %107 = vector.shape_cast %106 : vector<1x16x256xf32> to vector<16x256xf32>
    %108 = vector.extract_strided_slice %0 {offsets = [7, 0, 0], sizes = [1, 16, 256], strides = [1, 1, 1]} : vector<10x16x256xf32> to vector<1x16x256xf32>
    %109 = vector.shape_cast %108 : vector<1x16x256xf32> to vector<16x256xf32>
    %110 = arith.mulf %107, %109 : vector<16x256xf32>
    %111 = vector.extract_strided_slice %0 {offsets = [2, 0, 0], sizes = [1, 16, 256], strides = [1, 1, 1]} : vector<10x16x256xf32> to vector<1x16x256xf32>
    %112 = vector.shape_cast %111 : vector<1x16x256xf32> to vector<16x256xf32>
    %113 = vector.extract_strided_slice %0 {offsets = [8, 0, 0], sizes = [1, 16, 256], strides = [1, 1, 1]} : vector<10x16x256xf32> to vector<1x16x256xf32>
    %114 = vector.shape_cast %113 : vector<1x16x256xf32> to vector<16x256xf32>
    %115 = arith.mulf %112, %114 : vector<16x256xf32>
    %116 = vector.extract_strided_slice %0 {offsets = [2, 0, 0], sizes = [1, 16, 256], strides = [1, 1, 1]} : vector<10x16x256xf32> to vector<1x16x256xf32>
    %117 = vector.shape_cast %116 : vector<1x16x256xf32> to vector<16x256xf32>
    %118 = vector.extract_strided_slice %0 {offsets = [9, 0, 0], sizes = [1, 16, 256], strides = [1, 1, 1]} : vector<10x16x256xf32> to vector<1x16x256xf32>
    %119 = vector.shape_cast %118 : vector<1x16x256xf32> to vector<16x256xf32>
    %120 = arith.mulf %117, %119 : vector<16x256xf32>
    %121 = vector.extract_strided_slice %0 {offsets = [3, 0, 0], sizes = [1, 16, 256], strides = [1, 1, 1]} : vector<10x16x256xf32> to vector<1x16x256xf32>
    %122 = vector.shape_cast %121 : vector<1x16x256xf32> to vector<16x256xf32>
    %123 = vector.extract_strided_slice %0 {offsets = [4, 0, 0], sizes = [1, 16, 256], strides = [1, 1, 1]} : vector<10x16x256xf32> to vector<1x16x256xf32>
    %124 = vector.shape_cast %123 : vector<1x16x256xf32> to vector<16x256xf32>
    %125 = arith.mulf %122, %124 : vector<16x256xf32>
    %126 = vector.extract_strided_slice %0 {offsets = [3, 0, 0], sizes = [1, 16, 256], strides = [1, 1, 1]} : vector<10x16x256xf32> to vector<1x16x256xf32>
    %127 = vector.shape_cast %126 : vector<1x16x256xf32> to vector<16x256xf32>
    %128 = vector.extract_strided_slice %0 {offsets = [5, 0, 0], sizes = [1, 16, 256], strides = [1, 1, 1]} : vector<10x16x256xf32> to vector<1x16x256xf32>
    %129 = vector.shape_cast %128 : vector<1x16x256xf32> to vector<16x256xf32>
    %130 = arith.mulf %127, %129 : vector<16x256xf32>
    %131 = vector.extract_strided_slice %0 {offsets = [3, 0, 0], sizes = [1, 16, 256], strides = [1, 1, 1]} : vector<10x16x256xf32> to vector<1x16x256xf32>
    %132 = vector.shape_cast %131 : vector<1x16x256xf32> to vector<16x256xf32>
    %133 = vector.extract_strided_slice %0 {offsets = [6, 0, 0], sizes = [1, 16, 256], strides = [1, 1, 1]} : vector<10x16x256xf32> to vector<1x16x256xf32>
    %134 = vector.shape_cast %133 : vector<1x16x256xf32> to vector<16x256xf32>
    %135 = arith.mulf %132, %134 : vector<16x256xf32>
    %136 = vector.extract_strided_slice %0 {offsets = [3, 0, 0], sizes = [1, 16, 256], strides = [1, 1, 1]} : vector<10x16x256xf32> to vector<1x16x256xf32>
    %137 = vector.shape_cast %136 : vector<1x16x256xf32> to vector<16x256xf32>
    %138 = vector.extract_strided_slice %0 {offsets = [7, 0, 0], sizes = [1, 16, 256], strides = [1, 1, 1]} : vector<10x16x256xf32> to vector<1x16x256xf32>
    %139 = vector.shape_cast %138 : vector<1x16x256xf32> to vector<16x256xf32>
    %140 = arith.mulf %137, %139 : vector<16x256xf32>
    %141 = vector.extract_strided_slice %0 {offsets = [3, 0, 0], sizes = [1, 16, 256], strides = [1, 1, 1]} : vector<10x16x256xf32> to vector<1x16x256xf32>
    %142 = vector.shape_cast %141 : vector<1x16x256xf32> to vector<16x256xf32>
    %143 = vector.extract_strided_slice %0 {offsets = [8, 0, 0], sizes = [1, 16, 256], strides = [1, 1, 1]} : vector<10x16x256xf32> to vector<1x16x256xf32>
    %144 = vector.shape_cast %143 : vector<1x16x256xf32> to vector<16x256xf32>
    %145 = arith.mulf %142, %144 : vector<16x256xf32>
    %146 = vector.extract_strided_slice %0 {offsets = [3, 0, 0], sizes = [1, 16, 256], strides = [1, 1, 1]} : vector<10x16x256xf32> to vector<1x16x256xf32>
    %147 = vector.shape_cast %146 : vector<1x16x256xf32> to vector<16x256xf32>
    %148 = vector.extract_strided_slice %0 {offsets = [9, 0, 0], sizes = [1, 16, 256], strides = [1, 1, 1]} : vector<10x16x256xf32> to vector<1x16x256xf32>
    %149 = vector.shape_cast %148 : vector<1x16x256xf32> to vector<16x256xf32>
    %150 = arith.mulf %147, %149 : vector<16x256xf32>
    %151 = vector.extract_strided_slice %0 {offsets = [4, 0, 0], sizes = [1, 16, 256], strides = [1, 1, 1]} : vector<10x16x256xf32> to vector<1x16x256xf32>
    %152 = vector.shape_cast %151 : vector<1x16x256xf32> to vector<16x256xf32>
    %153 = vector.extract_strided_slice %0 {offsets = [5, 0, 0], sizes = [1, 16, 256], strides = [1, 1, 1]} : vector<10x16x256xf32> to vector<1x16x256xf32>
    %154 = vector.shape_cast %153 : vector<1x16x256xf32> to vector<16x256xf32>
    %155 = arith.mulf %152, %154 : vector<16x256xf32>
    %156 = vector.extract_strided_slice %0 {offsets = [4, 0, 0], sizes = [1, 16, 256], strides = [1, 1, 1]} : vector<10x16x256xf32> to vector<1x16x256xf32>
    %157 = vector.shape_cast %156 : vector<1x16x256xf32> to vector<16x256xf32>
    %158 = vector.extract_strided_slice %0 {offsets = [6, 0, 0], sizes = [1, 16, 256], strides = [1, 1, 1]} : vector<10x16x256xf32> to vector<1x16x256xf32>
    %159 = vector.shape_cast %158 : vector<1x16x256xf32> to vector<16x256xf32>
    %160 = arith.mulf %157, %159 : vector<16x256xf32>
    %161 = vector.extract_strided_slice %0 {offsets = [4, 0, 0], sizes = [1, 16, 256], strides = [1, 1, 1]} : vector<10x16x256xf32> to vector<1x16x256xf32>
    %162 = vector.shape_cast %161 : vector<1x16x256xf32> to vector<16x256xf32>
    %163 = vector.extract_strided_slice %0 {offsets = [7, 0, 0], sizes = [1, 16, 256], strides = [1, 1, 1]} : vector<10x16x256xf32> to vector<1x16x256xf32>
    %164 = vector.shape_cast %163 : vector<1x16x256xf32> to vector<16x256xf32>
    %165 = arith.mulf %162, %164 : vector<16x256xf32>
    %166 = vector.extract_strided_slice %0 {offsets = [4, 0, 0], sizes = [1, 16, 256], strides = [1, 1, 1]} : vector<10x16x256xf32> to vector<1x16x256xf32>
    %167 = vector.shape_cast %166 : vector<1x16x256xf32> to vector<16x256xf32>
    %168 = vector.extract_strided_slice %0 {offsets = [8, 0, 0], sizes = [1, 16, 256], strides = [1, 1, 1]} : vector<10x16x256xf32> to vector<1x16x256xf32>
    %169 = vector.shape_cast %168 : vector<1x16x256xf32> to vector<16x256xf32>
    %170 = arith.mulf %167, %169 : vector<16x256xf32>
    %171 = vector.extract_strided_slice %0 {offsets = [4, 0, 0], sizes = [1, 16, 256], strides = [1, 1, 1]} : vector<10x16x256xf32> to vector<1x16x256xf32>
    %172 = vector.shape_cast %171 : vector<1x16x256xf32> to vector<16x256xf32>
    %173 = vector.extract_strided_slice %0 {offsets = [9, 0, 0], sizes = [1, 16, 256], strides = [1, 1, 1]} : vector<10x16x256xf32> to vector<1x16x256xf32>
    %174 = vector.shape_cast %173 : vector<1x16x256xf32> to vector<16x256xf32>
    %175 = arith.mulf %172, %174 : vector<16x256xf32>
    %176 = vector.extract_strided_slice %0 {offsets = [5, 0, 0], sizes = [1, 16, 256], strides = [1, 1, 1]} : vector<10x16x256xf32> to vector<1x16x256xf32>
    %177 = vector.shape_cast %176 : vector<1x16x256xf32> to vector<16x256xf32>
    %178 = vector.extract_strided_slice %0 {offsets = [6, 0, 0], sizes = [1, 16, 256], strides = [1, 1, 1]} : vector<10x16x256xf32> to vector<1x16x256xf32>
    %179 = vector.shape_cast %178 : vector<1x16x256xf32> to vector<16x256xf32>
    %180 = arith.mulf %177, %179 : vector<16x256xf32>
    %181 = vector.extract_strided_slice %0 {offsets = [5, 0, 0], sizes = [1, 16, 256], strides = [1, 1, 1]} : vector<10x16x256xf32> to vector<1x16x256xf32>
    %182 = vector.shape_cast %181 : vector<1x16x256xf32> to vector<16x256xf32>
    %183 = vector.extract_strided_slice %0 {offsets = [7, 0, 0], sizes = [1, 16, 256], strides = [1, 1, 1]} : vector<10x16x256xf32> to vector<1x16x256xf32>
    %184 = vector.shape_cast %183 : vector<1x16x256xf32> to vector<16x256xf32>
    %185 = arith.mulf %182, %184 : vector<16x256xf32>
    %186 = vector.extract_strided_slice %0 {offsets = [5, 0, 0], sizes = [1, 16, 256], strides = [1, 1, 1]} : vector<10x16x256xf32> to vector<1x16x256xf32>
    %187 = vector.shape_cast %186 : vector<1x16x256xf32> to vector<16x256xf32>
    %188 = vector.extract_strided_slice %0 {offsets = [8, 0, 0], sizes = [1, 16, 256], strides = [1, 1, 1]} : vector<10x16x256xf32> to vector<1x16x256xf32>
    %189 = vector.shape_cast %188 : vector<1x16x256xf32> to vector<16x256xf32>
    %190 = arith.mulf %187, %189 : vector<16x256xf32>
    %191 = vector.extract_strided_slice %0 {offsets = [5, 0, 0], sizes = [1, 16, 256], strides = [1, 1, 1]} : vector<10x16x256xf32> to vector<1x16x256xf32>
    %192 = vector.shape_cast %191 : vector<1x16x256xf32> to vector<16x256xf32>
    %193 = vector.extract_strided_slice %0 {offsets = [9, 0, 0], sizes = [1, 16, 256], strides = [1, 1, 1]} : vector<10x16x256xf32> to vector<1x16x256xf32>
    %194 = vector.shape_cast %193 : vector<1x16x256xf32> to vector<16x256xf32>
    %195 = arith.mulf %192, %194 : vector<16x256xf32>
    %196 = vector.extract_strided_slice %0 {offsets = [6, 0, 0], sizes = [1, 16, 256], strides = [1, 1, 1]} : vector<10x16x256xf32> to vector<1x16x256xf32>
    %197 = vector.shape_cast %196 : vector<1x16x256xf32> to vector<16x256xf32>
    %198 = vector.extract_strided_slice %0 {offsets = [7, 0, 0], sizes = [1, 16, 256], strides = [1, 1, 1]} : vector<10x16x256xf32> to vector<1x16x256xf32>
    %199 = vector.shape_cast %198 : vector<1x16x256xf32> to vector<16x256xf32>
    %200 = arith.mulf %197, %199 : vector<16x256xf32>
    %201 = vector.extract_strided_slice %0 {offsets = [6, 0, 0], sizes = [1, 16, 256], strides = [1, 1, 1]} : vector<10x16x256xf32> to vector<1x16x256xf32>
    %202 = vector.shape_cast %201 : vector<1x16x256xf32> to vector<16x256xf32>
    %203 = vector.extract_strided_slice %0 {offsets = [8, 0, 0], sizes = [1, 16, 256], strides = [1, 1, 1]} : vector<10x16x256xf32> to vector<1x16x256xf32>
    %204 = vector.shape_cast %203 : vector<1x16x256xf32> to vector<16x256xf32>
    %205 = arith.mulf %202, %204 : vector<16x256xf32>
    %206 = vector.extract_strided_slice %0 {offsets = [6, 0, 0], sizes = [1, 16, 256], strides = [1, 1, 1]} : vector<10x16x256xf32> to vector<1x16x256xf32>
    %207 = vector.shape_cast %206 : vector<1x16x256xf32> to vector<16x256xf32>
    %208 = vector.extract_strided_slice %0 {offsets = [9, 0, 0], sizes = [1, 16, 256], strides = [1, 1, 1]} : vector<10x16x256xf32> to vector<1x16x256xf32>
    %209 = vector.shape_cast %208 : vector<1x16x256xf32> to vector<16x256xf32>
    %210 = arith.mulf %207, %209 : vector<16x256xf32>
    %211 = vector.extract_strided_slice %0 {offsets = [7, 0, 0], sizes = [1, 16, 256], strides = [1, 1, 1]} : vector<10x16x256xf32> to vector<1x16x256xf32>
    %212 = vector.shape_cast %211 : vector<1x16x256xf32> to vector<16x256xf32>
    %213 = vector.extract_strided_slice %0 {offsets = [8, 0, 0], sizes = [1, 16, 256], strides = [1, 1, 1]} : vector<10x16x256xf32> to vector<1x16x256xf32>
    %214 = vector.shape_cast %213 : vector<1x16x256xf32> to vector<16x256xf32>
    %215 = arith.mulf %212, %214 : vector<16x256xf32>
    %216 = vector.extract_strided_slice %0 {offsets = [7, 0, 0], sizes = [1, 16, 256], strides = [1, 1, 1]} : vector<10x16x256xf32> to vector<1x16x256xf32>
    %217 = vector.shape_cast %216 : vector<1x16x256xf32> to vector<16x256xf32>
    %218 = vector.extract_strided_slice %0 {offsets = [9, 0, 0], sizes = [1, 16, 256], strides = [1, 1, 1]} : vector<10x16x256xf32> to vector<1x16x256xf32>
    %219 = vector.shape_cast %218 : vector<1x16x256xf32> to vector<16x256xf32>
    %220 = arith.mulf %217, %219 : vector<16x256xf32>
    %221 = vector.extract_strided_slice %0 {offsets = [8, 0, 0], sizes = [1, 16, 256], strides = [1, 1, 1]} : vector<10x16x256xf32> to vector<1x16x256xf32>
    %222 = vector.shape_cast %221 : vector<1x16x256xf32> to vector<16x256xf32>
    %223 = vector.extract_strided_slice %0 {offsets = [9, 0, 0], sizes = [1, 16, 256], strides = [1, 1, 1]} : vector<10x16x256xf32> to vector<1x16x256xf32>
    %224 = vector.shape_cast %223 : vector<1x16x256xf32> to vector<16x256xf32>
    %225 = arith.mulf %222, %224 : vector<16x256xf32>
    %226 = vector.shape_cast %5 : vector<16x256xf32> to vector<1x16x256xf32>
    %227 = vector.shape_cast %10 : vector<16x256xf32> to vector<1x16x256xf32>
    %228 = vector.shape_cast %15 : vector<16x256xf32> to vector<1x16x256xf32>
    %229 = vector.shape_cast %20 : vector<16x256xf32> to vector<1x16x256xf32>
    %230 = vector.shape_cast %25 : vector<16x256xf32> to vector<1x16x256xf32>
    %231 = vector.shape_cast %30 : vector<16x256xf32> to vector<1x16x256xf32>
    %232 = vector.shape_cast %35 : vector<16x256xf32> to vector<1x16x256xf32>
    %233 = vector.shape_cast %40 : vector<16x256xf32> to vector<1x16x256xf32>
    %234 = vector.shape_cast %45 : vector<16x256xf32> to vector<1x16x256xf32>
    %235 = vector.shape_cast %50 : vector<16x256xf32> to vector<1x16x256xf32>
    %236 = vector.shape_cast %55 : vector<16x256xf32> to vector<1x16x256xf32>
    %237 = vector.shape_cast %60 : vector<16x256xf32> to vector<1x16x256xf32>
    %238 = vector.shape_cast %65 : vector<16x256xf32> to vector<1x16x256xf32>
    %239 = vector.shape_cast %70 : vector<16x256xf32> to vector<1x16x256xf32>
    %240 = vector.shape_cast %75 : vector<16x256xf32> to vector<1x16x256xf32>
    %241 = vector.shape_cast %80 : vector<16x256xf32> to vector<1x16x256xf32>
    %242 = vector.shape_cast %85 : vector<16x256xf32> to vector<1x16x256xf32>
    %243 = vector.shape_cast %90 : vector<16x256xf32> to vector<1x16x256xf32>
    %244 = vector.shape_cast %95 : vector<16x256xf32> to vector<1x16x256xf32>
    %245 = vector.shape_cast %100 : vector<16x256xf32> to vector<1x16x256xf32>
    %246 = vector.shape_cast %105 : vector<16x256xf32> to vector<1x16x256xf32>
    %247 = vector.shape_cast %110 : vector<16x256xf32> to vector<1x16x256xf32>
    %248 = vector.shape_cast %115 : vector<16x256xf32> to vector<1x16x256xf32>
    %249 = vector.shape_cast %120 : vector<16x256xf32> to vector<1x16x256xf32>
    %250 = vector.shape_cast %125 : vector<16x256xf32> to vector<1x16x256xf32>
    %251 = vector.shape_cast %130 : vector<16x256xf32> to vector<1x16x256xf32>
    %252 = vector.shape_cast %135 : vector<16x256xf32> to vector<1x16x256xf32>
    %253 = vector.shape_cast %140 : vector<16x256xf32> to vector<1x16x256xf32>
    %254 = vector.shape_cast %145 : vector<16x256xf32> to vector<1x16x256xf32>
    %255 = vector.shape_cast %150 : vector<16x256xf32> to vector<1x16x256xf32>
    %256 = vector.shape_cast %155 : vector<16x256xf32> to vector<1x16x256xf32>
    %257 = vector.shape_cast %160 : vector<16x256xf32> to vector<1x16x256xf32>
    %258 = vector.shape_cast %165 : vector<16x256xf32> to vector<1x16x256xf32>
    %259 = vector.shape_cast %170 : vector<16x256xf32> to vector<1x16x256xf32>
    %260 = vector.shape_cast %175 : vector<16x256xf32> to vector<1x16x256xf32>
    %261 = vector.shape_cast %180 : vector<16x256xf32> to vector<1x16x256xf32>
    %262 = vector.shape_cast %185 : vector<16x256xf32> to vector<1x16x256xf32>
    %263 = vector.shape_cast %190 : vector<16x256xf32> to vector<1x16x256xf32>
    %264 = vector.shape_cast %195 : vector<16x256xf32> to vector<1x16x256xf32>
    %265 = vector.shape_cast %200 : vector<16x256xf32> to vector<1x16x256xf32>
    %266 = vector.shape_cast %205 : vector<16x256xf32> to vector<1x16x256xf32>
    %267 = vector.shape_cast %210 : vector<16x256xf32> to vector<1x16x256xf32>
    %268 = vector.shape_cast %215 : vector<16x256xf32> to vector<1x16x256xf32>
    %269 = vector.shape_cast %220 : vector<16x256xf32> to vector<1x16x256xf32>
    %270 = vector.shape_cast %225 : vector<16x256xf32> to vector<1x16x256xf32>
    %271 = tpu.concatenate %226, %227, %228, %229, %230, %231, %232, %233, %234, %235, %236, %237, %238, %239, %240, %241 in 0 : vector<1x16x256xf32>, vector<1x16x256xf32>, vector<1x16x256xf32>, vector<1x16x256xf32>, vector<1x16x256xf32>, vector<1x16x256xf32>, vector<1x16x256xf32>, vector<1x16x256xf32>, vector<1x16x256xf32>, vector<1x16x256xf32>, vector<1x16x256xf32>, vector<1x16x256xf32>, vector<1x16x256xf32>, vector<1x16x256xf32>, vector<1x16x256xf32>, vector<1x16x256xf32> -> vector<16x16x256xf32>
    %272 = tpu.concatenate %242, %243, %244, %245, %246, %247, %248, %249, %250, %251, %252, %253, %254, %255, %256, %257 in 0 : vector<1x16x256xf32>, vector<1x16x256xf32>, vector<1x16x256xf32>, vector<1x16x256xf32>, vector<1x16x256xf32>, vector<1x16x256xf32>, vector<1x16x256xf32>, vector<1x16x256xf32>, vector<1x16x256xf32>, vector<1x16x256xf32>, vector<1x16x256xf32>, vector<1x16x256xf32>, vector<1x16x256xf32>, vector<1x16x256xf32>, vector<1x16x256xf32>, vector<1x16x256xf32> -> vector<16x16x256xf32>
    %273 = tpu.concatenate %258, %259, %260, %261, %262, %263, %264, %265, %266, %267, %268, %269, %270 in 0 : vector<1x16x256xf32>, vector<1x16x256xf32>, vector<1x16x256xf32>, vector<1x16x256xf32>, vector<1x16x256xf32>, vector<1x16x256xf32>, vector<1x16x256xf32>, vector<1x16x256xf32>, vector<1x16x256xf32>, vector<1x16x256xf32>, vector<1x16x256xf32>, vector<1x16x256xf32>, vector<1x16x256xf32> -> vector<13x16x256xf32>
    %274 = tpu.concatenate %271, %272, %273 in 0 : vector<16x16x256xf32>, vector<16x16x256xf32>, vector<13x16x256xf32> -> vector<45x16x256xf32>
    %c0_2 = arith.constant 0 : index
    %c0_3 = arith.constant 0 : index
    %275 = vector.load %arg2[%c0_2, %c0_3] : memref<9x16xf32, #tpu.memory_space<vmem>>, vector<9x16xf32>
    %276 = arith.truncf %275 : vector<9x16xf32> to vector<9x16xbf16>
    %277 = vector.shape_cast %276 : vector<9x16xbf16> to vector<1x9x16xbf16>
    %278 = vector.shape_cast %277 : vector<1x9x16xbf16> to vector<1x9x16xbf16>
    %279 = vector.broadcast %278 : vector<1x9x16xbf16> to vector<45x9x16xbf16>
    %280 = arith.truncf %274 : vector<45x16x256xf32> to vector<45x16x256xbf16>
    %cst = arith.constant dense<0.000000e+00> : vector<45x9x256xf32>
    %281 = tpu.matmul %279, %280, %cst {dimension_numbers = #tpu.dot_dimension_numbers<[2], [1], [1], [2], [0, 0, 0, 1, 1, 2], [0], [0]>} : vector<45x9x16xbf16>, vector<45x16x256xbf16>, vector<45x9x256xf32> -> vector<45x9x256xf32>
    %c0_4 = arith.constant 0 : index
    %c0_5 = arith.constant 0 : index
    %282 = vector.load %arg3[%c0_4, %c0_5] : memref<8x2xf32, #tpu.memory_space<vmem>>, vector<8x2xf32>
    %283 = vector.extract_strided_slice %282 {offsets = [0, 0], sizes = [8, 1], strides = [1, 1]} : vector<8x2xf32> to vector<8x1xf32>
    %284 = vector.shape_cast %283 : vector<8x1xf32> to vector<1x8x1xf32>
    %285 = vector.extract_strided_slice %282 {offsets = [0, 1], sizes = [8, 1], strides = [1, 1]} : vector<8x2xf32> to vector<8x1xf32>
    %286 = vector.shape_cast %285 : vector<8x1xf32> to vector<1x8x1xf32>
    %287 = vector.extract_strided_slice %281 {offsets = [0, 0, 0], sizes = [45, 8, 256], strides = [1, 1, 1]} : vector<45x9x256xf32> to vector<45x8x256xf32>
    %288 = vector.broadcast %284 : vector<1x8x1xf32> to vector<45x8x256xf32>
    %289 = arith.addf %287, %288 : vector<45x8x256xf32>
    %cst_6 = arith.constant 0.000000e+00 : f32
    %290 = vector.broadcast %cst_6 : f32 to vector<45x8x256xf32>
    %291 = arith.maximumf %289, %290 : vector<45x8x256xf32>
    %292 = vector.broadcast %286 : vector<1x8x1xf32> to vector<45x8x256xf32>
    %293 = arith.mulf %291, %292 : vector<45x8x256xf32>
    %cst_7 = arith.constant dense<0.000000e+00> : vector<45x256xf32>
    %294 = vector.multi_reduction <add>, %293, %cst_7 [1] : vector<45x8x256xf32> to vector<45x256xf32>
    %295 = vector.shape_cast %294 : vector<45x256xf32> to vector<45x1x256xf32>
    %296 = vector.extract_strided_slice %281 {offsets = [0, 8, 0], sizes = [45, 1, 256], strides = [1, 1, 1]} : vector<45x9x256xf32> to vector<45x1x256xf32>
    %cst_8 = arith.constant dense<0xFF800000> : vector<1x256xf32>
    %297 = vector.multi_reduction <maximumf>, %295, %cst_8 [0] : vector<45x1x256xf32> to vector<1x256xf32>
    %298 = vector.shape_cast %297 : vector<1x256xf32> to vector<1x1x256xf32>
    %299 = vector.broadcast %298 : vector<1x1x256xf32> to vector<45x1x256xf32>
    %300 = arith.subf %295, %299 : vector<45x1x256xf32>
    %301 = math.exp %300 : vector<45x1x256xf32>
    %cst_9 = arith.constant dense<0.000000e+00> : vector<1x256xf32>
    %302 = vector.multi_reduction <add>, %301, %cst_9 [0] : vector<45x1x256xf32> to vector<1x256xf32>
    %303 = vector.shape_cast %302 : vector<1x256xf32> to vector<1x1x256xf32>
    %304 = tpu.reciprocal %303 {approx = true} : vector<1x1x256xf32> -> vector<1x1x256xf32>
    %305 = vector.broadcast %304 : vector<1x1x256xf32> to vector<45x1x256xf32>
    %306 = arith.mulf %301, %305 : vector<45x1x256xf32>
    %307 = arith.mulf %306, %296 : vector<45x1x256xf32>
    %cst_10 = arith.constant dense<0.000000e+00> : vector<1x256xf32>
    %308 = vector.multi_reduction <add>, %307, %cst_10 [0] : vector<45x1x256xf32> to vector<1x256xf32>
    %c0_11 = arith.constant 0 : index
    %c0_12 = arith.constant 0 : index
    %309 = vector.load %arg4[%c0_11, %c0_12] : memref<1x256xf32, #tpu.memory_space<vmem>>, vector<1x256xf32>
    tpu.vector_store %arg4[%c0_11, %c0_12], %308 {strides = array<i32>} : memref<1x256xf32, #tpu.memory_space<vmem>>, vector<1x256xf32>,
    return
  }
  func.func @transform_0(%arg0: i32) -> (i32, i32, i32) {
    %c0_i32 = arith.constant 0 : i32
    %c0_i32_0 = arith.constant 0 : i32
    %c0_i32_1 = arith.constant 0 : i32
    return %c0_i32, %c0_i32_0, %arg0 : i32, i32, i32
  }
  func.func @transform_1(%arg0: i32) -> (i32, i32) {
    %c0_i32 = arith.constant 0 : i32
    %c0_i32_0 = arith.constant 0 : i32
    %c0_i32_1 = arith.constant 0 : i32
    return %c0_i32, %c0_i32_0 : i32, i32
  }
  func.func @transform_2(%arg0: i32) -> (i32, i32) {
    %c0_i32 = arith.constant 0 : i32
    %c0_i32_0 = arith.constant 0 : i32
    %c0_i32_1 = arith.constant 0 : i32
    return %c0_i32, %c0_i32_0 : i32, i32
  }
  func.func @transform_3(%arg0: i32) -> (i32, i32) {
    %c0_i32 = arith.constant 0 : i32
    %c0_i32_0 = arith.constant 0 : i32
    return %c0_i32, %arg0 : i32, i32
  }
}

</mosaic_0001>

<bundles_post_ra>
// kernel: tpu_custom_call.1
= control target key start
LH: loop header
LB: loop body
LE: loop exit
PB: predicated region body
PF: predicated region fallthrough
CT: control target
= control target key end

     0   :  { %8 = vsyncpa [#allocation3], 0  ;;  %s8336_s0 = inlined_call_operand.hbm [shape: f32[10,16,512], index: 0, kind: input, shape index: {}]   ;;  %s8337_s1 = inlined_call_operand.hbm [shape: f32[9,16], index: 1, kind: input, shape index: {}]   ;;  %s8338_s2 = inlined_call_operand.vmem [shape: f32[8,2], index: 2, kind: input, shape index: {}]   ;;  %s8339_s3 = inlined_call_operand.hbm [shape: f32[1,512], index: 3, kind: output, shape index: {}]  }
   0x1   :  { %10 = vsyncpa [#allocation3 + $0x1], 0 }
   0x2   :  { %11 = vsyncpa [#allocation6], 0 }
   0x3   :  { %12 = vsyncpa [#allocation4], 0 }
   0x4   :  { %14 = vsyncpa [#allocation4 + $0x1], 0  ;;  %s4679_s12 = smov 0   ;;  %s4681_s13 = smov 0  }
   0x5   :  { %s4683_s14 = smov 0   ;;  %s4685_s15 = smov 0  }
   0x6 LB: > { %s4700_s16 = sadd.s32 4294967295, %s4646_s15   ;;  %s4204_s17 = sadd.s32 4294967294, %s4646_s15   ;;  %s4646_s15 = sphi %s4685_s15, %s9277_s15   ;;  %s4642_s14 = sphi %s4683_s14, %s9276_s14   ;;  %s4638_s13 = sphi %s4681_s13, %s9275_s13   ;;  %s4634_s12 = sphi %s4679_s12, %s9274_s12  }
   0x7   : > { %s4704_s18 = sadd.s32 1, %s4646_s15   ;;  %s27_s19 = sadd.s32 1, %s4642_s14 }
   0x8   : > { %s24_s20 = ssub.s32 %s4646_s15, %s4704_s18  ;;  %p34_p0 = scmp.ne.s32.totalorder %s4642_s14, %s4638_s13 }
   0x9   : > { %p25_p1 = scmp.eq.s32.totalorder %s24_s20, 0  ;;  %p35_p2 = scmp.eq.s32.totalorder %s4646_s15, 0 }
   0xa   : > { %p40_p3 = scmp.ne.s32.totalorder %s4638_s13, %s4634_s12  ;;  %p8340_p4 = scmp.eq.s32.totalorder %s4700_s16, 0 }
   0xb   : > { %s4716_s21 = scalar_select %p25_p1, %s4642_s14, %s27_s19  }
   0xc   : > { %p4718_p5 = por %p35_p2, %p34_p0  ;;  %p4724_p6 = por %p8340_p4, %p40_p3 }
   0xd   : > { %p106_p7 = scmp.eq.s32.totalorder %s4700_s16, 1  ;;  %p112_p8 = scmp.eq.s32.totalorder %s4204_s17, 1 }
   0xe   : > { %s8549_s22 = scalar_select %p4718_p5, 1, 0 }
   0xf   : > { %s8550_s23 = scalar_select %p4724_p6, 1, 0 }
  0x10   : > { %p4205_p9 = scmp.ge.s32.totalorder %s4646_s15, 1  ;;  %p119_p10 = scmp.lt.s32.totalorder %s4646_s15, 3 }
  0x11   : > { %p4731_p11 = por %p106_p7, %p34_p0  ;;  %p4735_p12 = por %p112_p8, %p40_p3 }
  0x12   : > { %p4739_p13 = pnand %p4205_p9, %p119_p10  ;;  %s4648_s27 = smov [#allocation5]  }
  0x13   : > { %s8551_s24 = scalar_select %p4731_p11, 1, 0 }
  0x14   : > { %s8552_s25 = scalar_select %p4735_p12, 1, 0 }
  0x15   : > { %s8553_s26 = scalar_select %p4739_p13, 1, 0 }
  0x16   : > { %p4275_p1 = pneg %p4739_p13  ;;  %s131_s28 = sshll.u32 %s4648_s27, 4  ;;  %s132_s28 = int_to_ptr.vmem [resolvable:$true] %s131_s28 }
  0x17   : > { %s148_s30 = sand.u32 1, %s4642_s14   ;;  %s4518_s6 = scalar_lea.hbm %s8337_s1, 256 }
  0x18   : > { %p4747_p2 = pnand %p4275_p1, %p8340_p4  ;;  %p4519_p7 = scmp.ne.s32.totalorder %s8337_s1, %s4518_s6 }
  0x19   : > { %p4525_p1 = scmp.lt.u32.totalorder %s4518_s6, %s8337_s1 }
  0x1a   : > { %p4520_p8 = pneg %p4747_p2 }
  0x1c   : > { %p4521_p9 = pnand %p4520_p8, %p4519_p7 }
  0x1e   : > { %p4522_p10 = pneg %p4521_p9 }
  0x20   : > { %p4527_p4 = pnand %p4525_p1, %p4522_p10 }
  0x22   : > { %4530 = shalt.err (!%p4527_p4)
}
  0x23   : > { %s4531_s11 = scalar_lea.vmem %s132_s28, 256  ;;  %p4539_p11 = scmp.lt.s32.totalorder %s132_s28, %s132_s28 }
  0x24   : > { %p4532_p0 = scmp.ne.s32.totalorder %s132_s28, %s4531_s11  ;;  %p4540_p6 = scmp.lt.s32.totalorder %s4531_s11, %s4531_s11 }
  0x26   : > { %p4534_p3 = pnand %p4532_p0, %p4520_p8  ;;  %p4541_p13 = por %p4540_p6, %p4539_p11 }
  0x28   : > { %p4535_p12 = pneg %p4534_p3 }
  0x2a   : > { %p4542_p5 = pnand %p4541_p13, %p4535_p12 }
  0x2c   : > { %4545 = shalt.err (!%p4542_p5)
}
  0x2d   : > { %s4649_s17 = smov 128   ;;  %s4650_s19 = smov 8  }
  0x2e   : > { %4278 = dma.hbm_to_vmem [thread:$0]  (!%p4747_p2), %s8337_s1, 256, %s132_s28, [#allocation6], %s4649_s17, %s4649_s17, %s4650_s19  }
  0x2f   : > { %p8555_p4 = scmp.ne.s32.totalorder %s8549_s22, 0  ;;  %p8556_p7 = scmp.lt.s32.totalorder %s4646_s15, 2 }
  0x30   : > { %s4265_s5 = smul.u32 320, %s148_s30  ;;  %s4263_s6 = sshll.u32 %s4646_s15, 8 }
  0x31   : > { %p4774_p0 = pnand %p8556_p7, %p8555_p4  ;;  %s4782_s9 = scalar_lea.hbm %s8336_s0, %s4263_s6 }
  0x32   : > { %s152_s28 = scalar_lea.vmem [#allocation2], %s4265_s5  ;;  %s4786_s29 = scalar_lea.sflag [#allocation3], %s148_s30 }
  0x33   : > { %s159_s22 = sshll.u32 %s152_s28, 4  ;;  %s4546_s10 = scalar_lea.hbm %s4782_s9, 5120  ;;  %s4784_s22 = int_to_ptr.vmem [resolvable:$true] %s159_s22 }
  0x34   : > { %p4547_p5 = scmp.ne.s32.totalorder %s4782_s9, %s4546_s10  ;;  %p4548_p6 = pneg %p4774_p0 }
  0x35   : > { %s4551_s19 = scalar_lea.hbm %s8336_s0, 10240  ;;  %p4552_p13 = scmp.lt.u32.totalorder %s4782_s9, %s8336_s0 }
  0x36   : > { %p4549_p11 = pnand %p4548_p6, %p4547_p5  ;;  %p4553_p2 = scmp.lt.u32.totalorder %s4551_s19, %s4546_s10 }
  0x37   : > { %p4555_p8 = scmp.lt.u32.totalorder %s4546_s10, %s4782_s9 }
  0x38   : > { %p4550_p12 = pneg %p4549_p11  ;;  %p4554_p3 = por %p4553_p2, %p4552_p13 }
  0x3a   : > { %p4556_p9 = por %p4555_p8, %p4554_p3 }
  0x3c   : > { %p4557_p10 = pnand %p4556_p9, %p4550_p12 }
  0x3e   : > { %4560 = shalt.err (!%p4557_p10)
}
  0x3f   : > { %s4561_s30 = scalar_lea.vmem %s4784_s22, 5120  ;;  %s4651_s5 = smov [#allocation2]  }
  0x40   : > { %p4562_p1 = scmp.ne.s32.totalorder %s4784_s22, %s4561_s30  ;;  %s4566_s6 = sshll.u32 %s4651_s5, 4  ;;  %s4567_s6 = int_to_ptr.vmem [resolvable:$false] %s4566_s6 }
  0x41   : > { %s4568_s7 = scalar_lea.vmem %s4567_s6, 10240  ;;  %p4569_p5 = scmp.lt.s32.totalorder %s4784_s22, %s4567_s6 }
  0x42   : > { %p4564_p4 = pnand %p4562_p1, %p4548_p6  ;;  %p4570_p11 = scmp.lt.s32.totalorder %s4568_s7, %s4561_s30 }
  0x44   : > { %p4565_p7 = pneg %p4564_p4  ;;  %p4571_p13 = por %p4570_p11, %p4569_p5 }
  0x46   : > { %p4572_p2 = pnand %p4571_p13, %p4565_p7 }
  0x48   : > { %4575 = shalt.err (!%p4572_p2)
}
  0x49   : > { %s4652_s8 = smov 512   ;;  %s4653_s28 = smov 256  }
  0x4a   : > { %s4654_s10 = smov 16   ;;  %p8558_p6 = scmp.ne.s32.totalorder %s8553_s26, 0 }
  0x4b   : > { %4282 = dma.hbm_to_vmem [thread:$0]  (!%p4774_p0), %s4782_s9, 5120, %s4784_s22, %s4786_s29, %s4652_s8, %s4653_s28, %s4654_s10  }
  0x4c   : > { %171 = sbr.rel (%p8558_p6) target bundleno = 877 (0x36d), region = 32 }
  0x53   : > { %s4817_s11 = sand.u32 1, %s4638_s13   ;;  %p8559_p12 = scmp.ne.s32.totalorder %s8550_s23, 0 }
  0x54   : > { %s4266_s17 = smul.u32 320, %s4817_s11  ;;  %s174_s19 = scalar_lea.sflag [#allocation3], %s4817_s11 }
  0x56   : > { %s4821_s20 = scalar_lea.vmem [#allocation2], %s4266_s17 }
  0x57   : > { %4621 = dma.done.wait (%p8559_p12), %s174_s19, 5120  }
  0x58   : > { %4623 = vsyncadd (%p8559_p12), %s174_s19, 4294962176  ;;  %p8560_p0 = scmp.eq.s32.totalorder %s4700_s16, 0 }
  0x5a   : > { %4625 = dma.done.wait (%p8560_p0), [#allocation6], 256   ;;  %p8561_p3 = pmov %p8560_p0 }
  0x5b   : > { %v8344_v0 = vmov 0   ;;  %v4835_v1 = vld [vmem:[%s4821_s20 + $0x8] sm:$0xff]  ;;  %v4838_v2 = vld [vmem:[%s4821_s20 + $0x18] sm:$0xff]  ;;  %v4861_v11 = vld [vmem:[%s4821_s20] sm:$0xff]  ;;  %vm520_vm0 = vcmask 130048   ;;  %vm3907_vm1 = vcmask 1040384  }
  0x5c   : > { %4627 = vsyncadd (%p8561_p3), [#allocation6], 4294967040  ;;  %556 = vmatprep.mubr.bf16.mxu0 %v8344_v0  ;;  %599 = vmatprep.mubr.bf16.mxu1 %v8344_v0  ;;  %v4841_v3 = vld [vmem:[%s4821_s20 + $0x28] sm:$0xff]  ;;  %v4844_v4 = vld [vmem:[%s4821_s20 + $0x38] sm:$0xff]  ;;  %s4212_s4 = sshll.u32 %s4817_s11, 1  ;;  %s4264_s9 = sshll.u32 %s4700_s16, 5 }
  0x5d   : > { %4332 = vset.pattern.permute.xlu0 %v8344_v0  ;;  %v248_v5 = vmul.f32 %v4841_v3, %v4835_v1  ;;  %v4849_v6 = vld [vmem:[%s4821_s20 + $0x48] sm:$0xff]  ;;  %v4852_v7 = vld [vmem:[%s4821_s20 + $0x58] sm:$0xff]  ;;  %v250_v8 = vmul.f32 %v4844_v4, %v4838_v2  ;;  %v4864_v12 = vld [vmem:[%s4821_s20 + $0x10] sm:$0xff]  ;;  %s203_s22 = scalar_lea.vmem [#allocation7], %s4212_s4  ;;  %s8292_s5 = scalar_lea.hbm %s8339_s3, %s4264_s9 }
  0x5e   : > { %v252_v9 = vmul.f32 %v4849_v6, %v4835_v1  ;;  %v254_v10 = vmul.f32 %v4852_v7, %v4838_v2  ;;  %v4867_v13 = vld [vmem:[%s4821_s20 + $0x20] sm:$0xff]  ;;  %v4871_v14 = vmul.f32 %v4849_v6, %v4841_v3  ;;  %v4874_v15 = vld [vmem:[%s4821_s20 + $0x30] sm:$0xff]  ;;  %v4886_v19 = vmul.f32 %v4852_v7, %v4844_v4  ;;  %v428_v25 = vld [vmem:[#allocation5 + $0x8] sm:$0x1]  ;;  %s4124_s29 = sshll.u32 %s203_s22, 4  ;;  %s4110_s6 = scalar_lea.sflag [#allocation4], %s4817_s11  ;;  %s8294_s29 = int_to_ptr.vmem [resolvable:$true] %s4124_s29 }
  0x5f   : > { %v247_v16 = vmul.f32 %v4867_v13, %v4861_v11  ;;  %v4879_v17 = vld [vmem:[%s4821_s20 + $0x40] sm:$0xff]  ;;  %v4882_v18 = vld [vmem:[%s4821_s20 + $0x50] sm:$0xff]  ;;  %v431_v20 = vpack.c.bf16 %v250_v8, %v248_v5  ;;  %v249_v22 = vmul.f32 %v4874_v15, %v4864_v12  ;;  %v4893_v26 = vld [vmem:[%s4821_s20 + $0x68] sm:$0xff]  ;;  %s4576_s7 = scalar_lea.vmem %s8294_s29, 32  ;;  %p9271_p9 = scmp.ne.s32.totalorder %s8551_s24, 0 }
  0x60   : > { %v433_v21 = vpack.c.bf16 %v254_v10, %v252_v9  ;;  %v251_v23 = vmul.f32 %v4879_v17, %v4861_v11  ;;  %v427_v24 = vld [vmem:[#allocation5] sm:$0xff]  ;;  %v253_v27 = vmul.f32 %v4882_v18, %v4864_v12  ;;  %v4900_v29 = vld [vmem:[%s4821_s20 + $0x78] sm:$0xff]  ;;  %v256_v30 = vmul.f32 %v4893_v26, %v4835_v1  ;;  %v4908_v32 = vld [vmem:[%s4821_s20 + $0x70] sm:$0xff]  ;;  %p4577_p8 = scmp.ne.s32.totalorder %s8294_s29, %s4576_s7  ;;  %s4658_s16 = smov [#allocation7]  }
  0x61   : > { %v4897_v28 = vpack.c.bf16 %v428_v25, %v427_v24  ;;  %v4905_v31 = vld [vmem:[%s4821_s20 + $0x60] sm:$0xff]  ;;  %524 = vmatprep.subr.bf16.mxu0 %v431_v20  ;;  %v430_v34 = vpack.c.bf16 %v249_v22, %v247_v16  ;;  %v258_v35 = vmul.f32 %v4900_v29, %v4838_v2  ;;  %v4917_v37 = vld [vmem:[%s4821_s20 + $0x88] sm:$0xff]  ;;  %v4920_v38 = vld [vmem:[%s4821_s20 + $0x98] sm:$0xff]  ;;  %v257_v41 = vmul.f32 %v4908_v32, %v4864_v12  ;;  %s4580_s8 = sshll.u32 %s4658_s16, 4  ;;  %s4581_s8 = int_to_ptr.vmem [resolvable:$false] %s4580_s8 }
  0x62   : > { %567 = vmatprep.subr.bf16.mxu1 %v433_v21  ;;  %v255_v36 = vmul.f32 %v4905_v31, %v4861_v11  ;;  %v4923_v39 = vld [vmem:[%s4821_s20 + $0x80] sm:$0xff]  ;;  %v432_v40 = vpack.c.bf16 %v253_v27, %v251_v23  ;;  %v260_v42 = vmul.f32 %v4917_v37, %v4835_v1  ;;  %v262_v43 = vmul.f32 %v4920_v38, %v4838_v2  ;;  %v4932_v44 = vld [vmem:[%s4821_s20 + $0x90] sm:$0xff]  ;;  %v4935_v45 = vld [vmem:[%s4821_s20 + $0xa8] sm:$0xff]  ;;  %p4578_p10 = pnand %p4577_p8, %p9271_p9  ;;  %s4582_s28 = scalar_lea.vmem %s4581_s8, 64 }
  0x63   : > { %v4938_v46 = vld [vmem:[%s4821_s20 + $0xb8] sm:$0xff]  ;;  %525 = vmatpush1.bf16.msra.mxu0 %v430_v34  ;;  %v435_v47 = vpack.c.bf16 %v258_v35, %v256_v30  ;;  %v259_v48 = vmul.f32 %v4923_v39, %v4861_v11  ;;  %v261_v49 = vmul.f32 %v4932_v44, %v4864_v12  ;;  %v264_v50 = vmul.f32 %v4935_v45, %v4835_v1  ;;  %v4947_v51 = vld [vmem:[%s4821_s20 + $0xa0] sm:$0xff]  ;;  %v4950_v52 = vld [vmem:[%s4821_s20 + $0xb0] sm:$0xff]  ;;  %p4583_p4 = scmp.lt.s32.totalorder %s8294_s29, %s4581_s8  ;;  %p4584_p7 = scmp.lt.s32.totalorder %s4582_s28, %s4576_s7 }
  0x64   : > { %v4953_v53 = vld [vmem:[%s4821_s20 + $0xc8] sm:$0xff]  ;;  %568 = vmatpush1.bf16.msra.mxu1 %v432_v40  ;;  %v434_v54 = vpack.c.bf16 %v257_v41, %v255_v36  ;;  %v437_v55 = vpack.c.bf16 %v262_v43, %v260_v42  ;;  %v266_v56 = vmul.f32 %v4938_v46, %v4838_v2  ;;  %v4959_v57 = vmul.f32 %v4947_v51, %v4861_v11  ;;  %v4962_v58 = vld [vmem:[%s4821_s20 + $0xd8] sm:$0xff]  ;;  %v4965_v59 = vld [vmem:[%s4821_s20 + $0xc0] sm:$0xff]  ;;  %p4579_p1 = pneg %p4578_p10 }
  0x65   : > { %v4968_v60 = vld [vmem:[%s4821_s20 + $0xd0] sm:$0xff]  ;;  %610 = vmatprep.subr.bf16.mxu0 %v435_v47  ;;  %v436_v61 = vpack.c.bf16 %v261_v49, %v259_v48  ;;  %v265_v62 = vmul.f32 %v4950_v52, %v4864_v12  ;;  %v268_v63 = vmul.f32 %v4953_v53, %v4835_v1  ;;  %v270_v5 = vmul.f32 %v4962_v58, %v4838_v2  ;;  %v4977_v8 = vld [vmem:[%s4821_s20 + $0xe8] sm:$0xff]  ;;  %v4980_v9 = vld [vmem:[%s4821_s20 + $0xf8] sm:$0xff]  ;;  %p4585_p5 = por %p4584_p7, %p4583_p4 }
  0x66   : > { %v4983_v10 = vld [vmem:[%s4821_s20 + $0xe0] sm:$0xff]  ;;  %4213 = vmatmul.mubr.msk.bf16.vlgmr.msra.gmra.mrb[0].mxu0 %vm520_vm0, %v4897_v28  ;;  %653 = vmatprep.subr.bf16.mxu1 %v437_v55  ;;  %v439_v16 = vpack.c.bf16 %v266_v56, %v264_v50  ;;  %v267_v20 = vmul.f32 %v4965_v59, %v4861_v11  ;;  %v269_v21 = vmul.f32 %v4968_v60, %v4864_v12  ;;  %v4992_v22 = vld [vmem:[%s4821_s20 + $0xf0] sm:$0xff]  ;;  %v4995_v23 = vld [vmem:[%s4821_s20 + $0x108] sm:$0xff] }
  0x67   : > { %v4998_v24 = vld [vmem:[%s4821_s20 + $0x118] sm:$0xff]  ;;  %4214 = vmatmul.mubr.msk.bf16.vlgmr.msra.gmra.mrb[0].mxu1 %vm520_vm0, %v4897_v28  ;;  %611 = vmatpush1.bf16.msra.mxu0 %v434_v54  ;;  %v438_v25 = vpack.c.bf16 %v265_v62, %v4959_v57  ;;  %v441_v27 = vpack.c.bf16 %v270_v5, %v268_v63  ;;  %v272_v30 = vmul.f32 %v4977_v8, %v4835_v1  ;;  %v5006_v34 = vld [vmem:[%s4821_s20 + $0x100] sm:$0xff]  ;;  %v5009_v35 = vld [vmem:[%s4821_s20 + $0x110] sm:$0xff]  ;;  %p4586_p11 = pnand %p4585_p5, %p4579_p1 }
  0x68   : > { %v5012_v36 = vld [vmem:[%s4821_s20 + $0x128] sm:$0xff]  ;;  %654 = vmatpush1.bf16.msra.mxu1 %v436_v61  ;;  %642 = vmatprep.mubr.bf16.mxu0 %v8344_v0  ;;  %v440_v40 = vpack.c.bf16 %v269_v21, %v267_v20  ;;  %v274_v41 = vmul.f32 %v4980_v9, %v4838_v2  ;;  %v5019_v42 = vmul.f32 %v4983_v10, %v4861_v11  ;;  %v5022_v43 = vld [vmem:[%s4821_s20 + $0x138] sm:$0xff]  ;;  %v5025_v47 = vld [vmem:[%s4821_s20 + $0x120] sm:$0xff] }
  0x69   : > { %685 = vmatprep.mubr.bf16.mxu1 %v8344_v0  ;;  %696 = vmatprep.subr.bf16.mxu0 %v439_v16  ;;  %v5030_v48 = vmul.f32 %v4992_v22, %v4864_v12  ;;  %v276_v49 = vmul.f32 %v4995_v23, %v4835_v1  ;;  %v278_v50 = vmul.f32 %v4998_v24, %v4838_v2  ;;  %v5037_v54 = vld [vmem:[%s4821_s20 + $0x130] sm:$0xff]  ;;  %v2459_v55 = vld [vmem:[%s8338_s2] sm:$0xff] }
  0x6a   : > { %739 = vmatprep.subr.bf16.mxu1 %v441_v27  ;;  %v443_v56 = vpack.c.bf16 %v274_v41, %v272_v30  ;;  %v5044_v57 = vmul.f32 %v5006_v34, %v4861_v11  ;;  %v5048_v61 = vmul.f32 %v5009_v35, %v4864_v12  ;;  %v5052_v62 = vmul.f32 %v5012_v36, %v4835_v1 }
  0x6b   : > { %v442_v63 = vpack.c.bf16 %v5030_v48, %v5019_v42  ;;  %v445_v5 = vpack.c.bf16 %v278_v50, %v276_v49  ;;  %v5058_v16 = vmul.f32 %v5022_v43, %v4838_v2  ;;  %v5062_v20 = vmul.f32 %v5025_v47, %v4861_v11  ;;  %2462 = vperm.xlu0 %4332, %v2459_v55  }
  0x6c   : > { %v444_v21 = vpack.c.bf16 %v5048_v61, %v5044_v57  ;;  %v5068_v1 = vmul.f32 %v5037_v54, %v4864_v12  ;;  %v5072_v27 = vmul.f32 %v4879_v17, %v4867_v13  ;;  %v5076_v2 = vmul.f32 %v4882_v18, %v4874_v15 }
  0x6d   : > { %v447_v11 = vpack.c.bf16 %v5058_v16, %v5052_v62  ;;  %v5082_v30 = vmul.f32 %v4893_v26, %v4841_v3  ;;  %v5086_v41 = vmul.f32 %v4900_v29, %v4844_v4  ;;  %v5090_v12 = vmul.f32 %v4905_v31, %v4867_v13 }
  0x6e   : > { %4215 = vmatmul.mubr.msk.bf16.vlgmr.msra.gmra.mrb[4].mxu0 %vm520_vm0, %v4897_v28  ;;  %v5100_v49 = vmul.f32 %v4908_v32, %v4874_v15  ;;  %v5104_v50 = vmul.f32 %v4917_v37, %v4841_v3  ;;  %v5112_v61 = vmul.f32 %v4920_v38, %v4844_v4  ;;  %v5116_v62 = vmul.f32 %v4923_v39, %v4867_v13 }
  0x6f   : > { %8562 = vst [vmem:[#allocation11_spill] sm:$0xff] %v5090_v12  ;;  %4216 = vmatmul.mubr.msk.bf16.vlgmr.msra.gmra.mrb[4].mxu1 %vm520_vm0, %v4897_v28  ;;  %697 = vmatpush1.bf16.msra.mxu0 %v438_v25  ;;  %v5123_v25 = vmul.f32 %v4932_v44, %v4874_v15  ;;  %v5127_v57 = vmul.f32 %v4935_v45, %v4841_v3 }
  0x70   : > { %8563 = vst [vmem:[#allocation12_spill] sm:$0xff] %v5100_v49  ;;  %8564 = vst [vmem:[#allocation13_spill] sm:$0xff] %v5116_v62  ;;  %740 = vmatpush1.bf16.msra.mxu1 %v440_v40  ;;  %728 = vmatprep.mubr.bf16.mxu0 %v8344_v0  ;;  %v5134_v40 = vmul.f32 %v4938_v46, %v4844_v4  ;;  %v5138_v16 = vmul.f32 %v4947_v51, %v4867_v13 }
  0x71   : > { %8565 = vst [vmem:[#allocation14_spill] sm:$0xff] %v5123_v25  ;;  %8566 = vst [vmem:[#allocation15_spill] sm:$0xff] %v5127_v57  ;;  %771 = vmatprep.mubr.bf16.mxu1 %v8344_v0  ;;  %782 = vmatprep.subr.bf16.mxu0 %v443_v56  ;;  %v5144_v33 = vmul.f32 %v4950_v52, %v4874_v15  ;;  %v5148_v56 = vmul.f32 %v4953_v53, %v4841_v3  ;;  %v4656_v25 = vmov 1  }
  0x72   : > { %8567 = vst [vmem:[#allocation16_spill] sm:$0xff] %v5134_v40  ;;  %8568 = vst [vmem:[#allocation17_spill] sm:$0xff] %v5138_v16  ;;  %825 = vmatprep.subr.bf16.mxu1 %v445_v5  ;;  %v5152_v48 = vmul.f32 %v4962_v58, %v4844_v4  ;;  %v5158_v5 = vmul.f32 %v4965_v59, %v4867_v13  ;;  %v5162_v42 = vmul.f32 %v4968_v60, %v4874_v15 }
  0x73   : > { %8569 = vst [vmem:[#allocation18_spill] sm:$0xff] %v5144_v33  ;;  %v5166_v62 = vmul.f32 %v4977_v8, %v4841_v3  ;;  %4333 = vset.pattern.permute.xlu0 %v4656_v25  ;;  %v5174_v57 = vmul.f32 %v4980_v9, %v4844_v4  ;;  %v5178_v40 = vmul.f32 %v4983_v10, %v4867_v13 }
  0x74   : > { %8570 = vst [vmem:[#allocation19_spill] sm:$0xff] %v5158_v5  ;;  %8571 = vst [vmem:[#allocation20_spill] sm:$0xff] %v5162_v42  ;;  %2646 = vperm.xlu0 %4333, %v2459_v55   ;;  %v5184_v25 = vmul.f32 %v4992_v22, %v4874_v15  ;;  %v5188_v12 = vmul.f32 %v4995_v23, %v4841_v3  ;;  %v5192_v0 = vmul.f32 %v4998_v24, %v4844_v4 }
  0x75   : > { %8572 = vst [vmem:[#allocation21_spill] sm:$0xff] %v5166_v62  ;;  %8573 = vst [vmem:[#allocation22_spill] sm:$0xff] %v5174_v57  ;;  %v5200_v49 = vmul.f32 %v5006_v34, %v4867_v13  ;;  %v5204_v5 = vmul.f32 %v5009_v35, %v4874_v15  ;;  %v5208_v42 = vmul.f32 %v5012_v36, %v4841_v3  ;;  %v8574_v57 = vmov 0  }
  0x76   : > { %4217 = vmatmul.mubr.msk.bf16.vlgmr.msra.gmra.mrb[8].mxu0 %vm520_vm0, %v4897_v28  ;;  %v5218_v62 = vmul.f32 %v5022_v43, %v4844_v4  ;;  %v5225_v33 = vmul.f32 %v5025_v47, %v4867_v13  ;;  %v5240_v3 = vmul.f32 %v4900_v29, %v4852_v7  ;;  %v8579_v13 = vpack.c.bf16 %v4886_v19, %v4871_v14 }
  0x77   : > { %4218 = vmatmul.mubr.msk.bf16.vlgmr.msra.gmra.mrb[8].mxu1 %vm520_vm0, %v4897_v28  ;;  %783 = vmatpush1.bf16.msra.mxu0 %v442_v63  ;;  %v5229_v63 = vmul.f32 %v5037_v54, %v4874_v15  ;;  %v5253_v4 = vmul.f32 %v4908_v32, %v4882_v18  ;;  %v5257_v16 = vmul.f32 %v4917_v37, %v4849_v6 }
  0x78   : > { %826 = vmatpush1.bf16.msra.mxu1 %v444_v21  ;;  %814 = vmatprep.mubr.bf16.mxu0 %v8574_v57  ;;  %8575 = vst [vmem:[#allocation23_spill] sm:$0xff] %v5225_v33  ;;  %v5236_v21 = vmul.f32 %v4893_v26, %v4849_v6  ;;  %8578 = vst [vmem:[#allocation26_spill] sm:$0xff] %v5240_v3  ;;  %v5263_v14 = vmul.f32 %v4920_v38, %v4852_v7 }
  0x79   : > { %8576 = vst [vmem:[#allocation24_spill] sm:$0xff] %v5229_v63  ;;  %857 = vmatprep.mubr.bf16.mxu1 %v8574_v57  ;;  %868 = vmatprep.subr.bf16.mxu0 %v447_v11  ;;  %v5249_v11 = vmul.f32 %v4905_v31, %v4879_v17  ;;  %8581 = vst [vmem:[#allocation28_spill] sm:$0xff] %v5253_v4  ;;  %v5267_v19 = vmul.f32 %v4923_v39, %v4879_v17 }
  0x7a   : > { %8577 = vst [vmem:[#allocation25_spill] sm:$0xff] %v5236_v21  ;;  %911 = vmatprep.subr.bf16.mxu1 %v8579_v13  ;;  %8582 = vst [vmem:[#allocation29_spill] sm:$0xff] %v5257_v16  ;;  %v5271_v13 = vmul.f32 %v4932_v44, %v4882_v18  ;;  %v5277_v33 = vmul.f32 %v4935_v45, %v4849_v6  ;;  %v5281_v55 = vmul.f32 %v4938_v46, %v4852_v7 }
  0x7b   : > { %8580 = vst [vmem:[#allocation27_spill] sm:$0xff] %v5249_v11  ;;  %8583 = vst [vmem:[#allocation30_spill] sm:$0xff] %v5267_v19  ;;  %v5285_v63 = vmul.f32 %v4947_v51, %v4879_v17  ;;  %v5293_v15 = vmul.f32 %v4950_v52, %v4882_v18  ;;  %v5297_v11 = vmul.f32 %v4953_v53, %v4849_v6 }
  0x7c   : > { %8584 = vst [vmem:[#allocation31_spill] sm:$0xff] %v5271_v13  ;;  %8585 = vst [vmem:[#allocation32_spill] sm:$0xff] %v5277_v33  ;;  %v5305_v21 = vmul.f32 %v4962_v58, %v4852_v7  ;;  %v5309_v3 = vmul.f32 %v4965_v59, %v4879_v17  ;;  %v5313_v19 = vmul.f32 %v4968_v60, %v4882_v18 }
  0x7d   : > { %8586 = vst [vmem:[#allocation33_spill] sm:$0xff] %v5281_v55  ;;  %v8588_v13 = vpack.c.bf16 %v5068_v1, %v5062_v20  ;;  %v5324_v33 = vmul.f32 %v4977_v8, %v4849_v6  ;;  %v5328_v55 = vmul.f32 %v4980_v9, %v4852_v7  ;;  %v8589_v16 = vpack.c.bf16 %v5076_v2, %v5072_v27 }
  0x7e   : > { %4219 = vmatmul.mubr.msk.bf16.vlgmr.msra.gmra.mrb[12].mxu0 %vm520_vm0, %v4897_v28  ;;  %8587 = vst [vmem:[#allocation34_spill] sm:$0xff] %v5309_v3  ;;  %v8590_v4 = vpack.c.bf16 %v5086_v41, %v5082_v30  ;;  %v5350_v2 = vmul.f32 %v4992_v22, %v4882_v18  ;;  %v8592_v1 = vpack.c.bf16 %v5112_v61, %v5104_v50 }
  0x7f   : > { %4220 = vmatmul.mubr.msk.bf16.vlgmr.msra.gmra.mrb[12].mxu1 %vm520_vm0, %v4897_v28  ;;  %869 = vmatpush1.bf16.msra.mxu0 %v8588_v13  ;;  %v5340_v13 = vmul.f32 %v4983_v10, %v4879_v17  ;;  %v5361_v20 = vmul.f32 %v4998_v24, %v4852_v7  ;;  %v5365_v30 = vmul.f32 %v5006_v34, %v4879_v17 }
  0x80   : > { %912 = vmatpush1.bf16.msra.mxu1 %v8589_v16  ;;  %900 = vmatprep.mubr.bf16.mxu0 %v8574_v57  ;;  %v5354_v16 = vmul.f32 %v4995_v23, %v4849_v6  ;;  %v5369_v41 = vmul.f32 %v5009_v35, %v4882_v18  ;;  %v5379_v61 = vmul.f32 %v5022_v43, %v4852_v7 }
  0x81   : > { %943 = vmatprep.mubr.bf16.mxu1 %v8574_v57  ;;  %954 = vmatprep.subr.bf16.mxu0 %v8590_v4  ;;  %8593 = vst [vmem:[#allocation36_spill] sm:$0xff] %v5361_v20  ;;  %8594 = vst [vmem:[#allocation37_spill] sm:$0xff] %v5365_v30  ;;  %v5373_v4 = vmul.f32 %v5012_v36, %v4849_v6  ;;  %v5387_v27 = vmul.f32 %v5037_v54, %v4882_v18  ;;  %v8614_v30 = vld [vmem:[#allocation16_spill] sm:$0xff] }
  0x82   : > { %8591 = vst [vmem:[#allocation35_spill] sm:$0xff] %v5354_v16  ;;  %997 = vmatprep.subr.bf16.mxu1 %v8592_v1  ;;  %8595 = vst [vmem:[#allocation38_spill] sm:$0xff] %v5369_v41  ;;  %v5383_v1 = vmul.f32 %v5025_v47, %v4879_v17  ;;  %v5395_v50 = vmul.f32 %v4917_v37, %v4893_v26  ;;  %v5399_v7 = vmul.f32 %v4920_v38, %v4900_v29  ;;  %v8606_v41 = vld [vmem:[#allocation11_spill] sm:$0xff]  ;;  %v8610_v16 = vld [vmem:[#allocation13_spill] sm:$0xff] }
  0x83   : > { %8596 = vst [vmem:[#allocation39_spill] sm:$0xff] %v5373_v4  ;;  %8597 = vst [vmem:[#allocation40_spill] sm:$0xff] %v5379_v61  ;;  %v5407_v3 = vmul.f32 %v4923_v39, %v4905_v31  ;;  %v5411_v6 = vmul.f32 %v4932_v44, %v4908_v32  ;;  %v5419_v17 = vmul.f32 %v4935_v45, %v4893_v26  ;;  %v8609_v61 = vld [vmem:[#allocation14_spill] sm:$0xff] }
  0x84   : > { %8598 = vst [vmem:[#allocation41_spill] sm:$0xff] %v5383_v1  ;;  %8599 = vst [vmem:[#allocation42_spill] sm:$0xff] %v5387_v27  ;;  %v5423_v18 = vmul.f32 %v4938_v46, %v4900_v29  ;;  %v5427_v1 = vmul.f32 %v4947_v51, %v4905_v31  ;;  %v8605_v27 = vld [vmem:[#allocation12_spill] sm:$0xff]  ;;  %v8611_v20 = vpack.c.bf16 %v8609_v61, %v8610_v16 }
  0x85   : > { %8600 = vst [vmem:[#allocation43_spill] sm:$0xff] %v5395_v50  ;;  %8601 = vst [vmem:[#allocation44_spill] sm:$0xff] %v5399_v7  ;;  %v8607_v4 = vpack.c.bf16 %v8605_v27, %v8606_v41  ;;  %v5438_v50 = vmul.f32 %v4950_v52, %v4908_v32  ;;  %v5442_v7 = vmul.f32 %v4953_v53, %v4893_v26 }
  0x86   : > { %8602 = vst [vmem:[#allocation45_spill] sm:$0xff] %v5407_v3  ;;  %8603 = vst [vmem:[#allocation46_spill] sm:$0xff] %v5411_v6  ;;  %4221 = vmatmul.mubr.msk.bf16.vlgmr.msra.gmra.mrb[16].mxu0 %vm520_vm0, %v4897_v28  ;;  %v5452_v41 = vmul.f32 %v4962_v58, %v4900_v29  ;;  %v8615_v3 = vld [vmem:[#allocation15_spill] sm:$0xff]  ;;  %v5466_v16 = vmul.f32 %v4968_v60, %v4908_v32  ;;  %v5470_v61 = vmul.f32 %v4977_v8, %v4893_v26 }
  0x87   : > { %8604 = vst [vmem:[#allocation47_spill] sm:$0xff] %v5419_v17  ;;  %4222 = vmatmul.mubr.msk.bf16.vlgmr.msra.gmra.mrb[16].mxu1 %vm520_vm0, %v4897_v28  ;;  %955 = vmatpush1.bf16.msra.mxu0 %v8607_v4  ;;  %8608 = vst [vmem:[#allocation12_spill] sm:$0xff] %v5442_v7  ;;  %v5456_v4 = vmul.f32 %v4965_v59, %v4905_v31  ;;  %v8616_v6 = vpack.c.bf16 %v8614_v30, %v8615_v3 }
  0x88   : > { %998 = vmatpush1.bf16.msra.mxu1 %v8611_v20  ;;  %986 = vmatprep.mubr.bf16.mxu0 %v8574_v57  ;;  %8612 = vst [vmem:[#allocation11_spill] sm:$0xff] %v5452_v41  ;;  %8617 = vst [vmem:[#allocation13_spill] sm:$0xff] %v5466_v16  ;;  %v8619_v27 = vpack.c.bf16 %v5152_v48, %v5148_v56  ;;  %v5479_v3 = vmul.f32 %v4980_v9, %v4900_v29 }
  0x89   : > { %8613 = vst [vmem:[#allocation14_spill] sm:$0xff] %v5456_v4  ;;  %1029 = vmatprep.mubr.bf16.mxu1 %v8574_v57  ;;  %1040 = vmatprep.subr.bf16.mxu0 %v8616_v6  ;;  %8618 = vst [vmem:[#allocation16_spill] sm:$0xff] %v5470_v61  ;;  %v5483_v30 = vmul.f32 %v4983_v10, %v4905_v31  ;;  %v5487_v6 = vmul.f32 %v4992_v22, %v4908_v32 }
  0x8a   : > { %1083 = vmatprep.subr.bf16.mxu1 %v8619_v27  ;;  %v5493_v48 = vmul.f32 %v4995_v23, %v4893_v26  ;;  %v5497_v56 = vmul.f32 %v4998_v24, %v4900_v29  ;;  %v5501_v27 = vmul.f32 %v5006_v34, %v4905_v31  ;;  %v5509_v20 = vmul.f32 %v5009_v35, %v4908_v32 }
  0x8b   : > { %8620 = vst [vmem:[#allocation15_spill] sm:$0xff] %v5483_v30  ;;  %8621 = vst [vmem:[#allocation48_spill] sm:$0xff] %v5487_v6  ;;  %v5513_v4 = vmul.f32 %v5012_v36, %v4893_v26  ;;  %v5519_v41 = vmul.f32 %v5022_v43, %v4900_v29  ;;  %v5523_v17 = vmul.f32 %v5025_v47, %v4905_v31  ;;  %v8633_v30 = vld [vmem:[#allocation20_spill] sm:$0xff]  ;;  %v8634_v6 = vld [vmem:[#allocation19_spill] sm:$0xff] }
  0x8c   : > { %8622 = vst [vmem:[#allocation49_spill] sm:$0xff] %v5493_v48  ;;  %8623 = vst [vmem:[#allocation50_spill] sm:$0xff] %v5497_v56  ;;  %v5527_v7 = vmul.f32 %v5037_v54, %v4908_v32  ;;  %v5535_v16 = vmul.f32 %v4935_v45, %v4917_v37  ;;  %v5539_v29 = vmul.f32 %v4938_v46, %v4920_v38  ;;  %v8629_v32 = vld [vmem:[#allocation18_spill] sm:$0xff]  ;;  %v8630_v48 = vld [vmem:[#allocation17_spill] sm:$0xff] }
  0x8d   : > { %8624 = vst [vmem:[#allocation51_spill] sm:$0xff] %v5501_v27  ;;  %8625 = vst [vmem:[#allocation52_spill] sm:$0xff] %v5509_v20  ;;  %v5543_v31 = vmul.f32 %v4947_v51, %v4923_v39  ;;  %v8631_v56 = vpack.c.bf16 %v8629_v32, %v8630_v48  ;;  %v5556_v20 = vmul.f32 %v4950_v52, %v4932_v44  ;;  %v8636_v27 = vld [vmem:[#allocation22_spill] sm:$0xff]  ;;  %v8637_v26 = vld [vmem:[#allocation21_spill] sm:$0xff] }
  0x8e   : > { %8626 = vst [vmem:[#allocation53_spill] sm:$0xff] %v5523_v17  ;;  %4223 = vmatmul.mubr.msk.bf16.vlgmr.msra.gmra.mrb[20].mxu0 %vm520_vm0, %v4897_v28  ;;  %8627 = vst [vmem:[#allocation54_spill] sm:$0xff] %v5535_v16  ;;  %v8635_v61 = vpack.c.bf16 %v8633_v30, %v8634_v6  ;;  %v5570_v32 = vmul.f32 %v4962_v58, %v4920_v38  ;;  %v8638_v17 = vpack.c.bf16 %v8636_v27, %v8637_v26 }
  0x8f   : > { %8628 = vst [vmem:[#allocation55_spill] sm:$0xff] %v5543_v31  ;;  %4224 = vmatmul.mubr.msk.bf16.vlgmr.msra.gmra.mrb[20].mxu1 %vm520_vm0, %v4897_v28  ;;  %1041 = vmatpush1.bf16.msra.mxu0 %v8631_v56  ;;  %8632 = vst [vmem:[#allocation18_spill] sm:$0xff] %v5556_v20  ;;  %v5566_v56 = vmul.f32 %v4953_v53, %v4917_v37  ;;  %v5580_v30 = vmul.f32 %v4965_v59, %v4923_v39 }
  0x90   : > { %1084 = vmatpush1.bf16.msra.mxu1 %v8635_v61  ;;  %1072 = vmatprep.mubr.bf16.mxu0 %v8574_v57  ;;  %v5584_v6 = vmul.f32 %v4968_v60, %v4932_v44  ;;  %v8641_v48 = vpack.c.bf16 %v5192_v0, %v5188_v12  ;;  %v5597_v27 = vmul.f32 %v4980_v9, %v4920_v38 }
  0x91   : > { %1115 = vmatprep.mubr.bf16.mxu1 %v8574_v57  ;;  %1126 = vmatprep.subr.bf16.mxu0 %v8638_v17  ;;  %8639 = vst [vmem:[#allocation17_spill] sm:$0xff] %v5580_v30  ;;  %v5593_v17 = vmul.f32 %v4977_v8, %v4917_v37  ;;  %v5601_v26 = vmul.f32 %v4983_v10, %v4923_v39 }
  0x92   : > { %8640 = vst [vmem:[#allocation20_spill] sm:$0xff] %v5584_v6  ;;  %1169 = vmatprep.subr.bf16.mxu1 %v8641_v48  ;;  %v5607_v0 = vmul.f32 %v4992_v22, %v4932_v44  ;;  %v5611_v12 = vmul.f32 %v4995_v23, %v4917_v37  ;;  %v5615_v48 = vmul.f32 %v4998_v24, %v4920_v38 }
  0x93   : > { %8642 = vst [vmem:[#allocation19_spill] sm:$0xff] %v5593_v17  ;;  %v5621_v31 = vmul.f32 %v5006_v34, %v4923_v39  ;;  %v5625_v61 = vmul.f32 %v5009_v35, %v4932_v44  ;;  %v5629_v30 = vmul.f32 %v5012_v36, %v4917_v37  ;;  %v5637_v16 = vmul.f32 %v5022_v43, %v4920_v38 }
  0x94   : > { %v5641_v17 = vmul.f32 %v5025_v47, %v4923_v39  ;;  %v5649_v6 = vmul.f32 %v5037_v54, %v4932_v44  ;;  %v5653_v20 = vmul.f32 %v4953_v53, %v4935_v45  ;;  %v5657_v38 = vmul.f32 %v4962_v58, %v4938_v46 }
  0x95   : > { %8643 = vst [vmem:[#allocation22_spill] sm:$0xff] %v5621_v31  ;;  %8644 = vst [vmem:[#allocation21_spill] sm:$0xff] %v5625_v61  ;;  %v8647_v39 = vpack.c.bf16 %v5184_v25, %v5178_v40  ;;  %v5668_v44 = vmul.f32 %v4965_v59, %v4947_v51  ;;  %v5672_v31 = vmul.f32 %v4968_v60, %v4950_v52  ;;  %v8654_v40 = vld [vmem:[#allocation26_spill] sm:$0xff]  ;;  %v8655_v25 = vld [vmem:[#allocation25_spill] sm:$0xff] }
  0x96   : > { %8645 = vst [vmem:[#allocation56_spill] sm:$0xff] %v5641_v17  ;;  %4225 = vmatmul.mubr.msk.bf16.vlgmr.msra.gmra.mrb[24].mxu0 %vm520_vm0, %v4897_v28  ;;  %8646 = vst [vmem:[#allocation57_spill] sm:$0xff] %v5649_v6  ;;  %v8650_v61 = vpack.c.bf16 %v5204_v5, %v5200_v49  ;;  %v8652_v37 = vpack.c.bf16 %v5218_v62, %v5208_v42  ;;  %v5694_v5 = vmul.f32 %v4980_v9, %v4938_v46 }
  0x97   : > { %4226 = vmatmul.mubr.msk.bf16.vlgmr.msra.gmra.mrb[24].mxu1 %vm520_vm0, %v4897_v28  ;;  %1127 = vmatpush1.bf16.msra.mxu0 %v8647_v39  ;;  %8648 = vst [vmem:[#allocation58_spill] sm:$0xff] %v5668_v44  ;;  %8649 = vst [vmem:[#allocation59_spill] sm:$0xff] %v5672_v31  ;;  %v5684_v39 = vmul.f32 %v4977_v8, %v4935_v45  ;;  %v8656_v17 = vpack.c.bf16 %v8654_v40, %v8655_v25 }
  0x98   : > { %1170 = vmatpush1.bf16.msra.mxu1 %v8650_v61  ;;  %1158 = vmatprep.mubr.bf16.mxu0 %v8574_v57  ;;  %v5698_v61 = vmul.f32 %v4983_v10, %v4947_v51  ;;  %v5705_v6 = vmul.f32 %v4992_v22, %v4950_v52  ;;  %v5709_v42 = vmul.f32 %v4995_v23, %v4935_v45 }
  0x99   : > { %8651 = vst [vmem:[#allocation60_spill] sm:$0xff] %v5684_v39  ;;  %1201 = vmatprep.mubr.bf16.mxu1 %v8574_v57  ;;  %1212 = vmatprep.subr.bf16.mxu0 %v8652_v37  ;;  %v5713_v62 = vmul.f32 %v4998_v24, %v4938_v46  ;;  %v5717_v37 = vmul.f32 %v5006_v34, %v4947_v51 }
  0x9a   : > { %8653 = vst [vmem:[#allocation61_spill] sm:$0xff] %v5698_v61  ;;  %1255 = vmatprep.subr.bf16.mxu1 %v8656_v17  ;;  %8657 = vst [vmem:[#allocation26_spill] sm:$0xff] %v5705_v6  ;;  %v5723_v17 = vmul.f32 %v5009_v35, %v4950_v52  ;;  %v5727_v25 = vmul.f32 %v5012_v36, %v4935_v45  ;;  %v5731_v49 = vmul.f32 %v5022_v43, %v4938_v46  ;;  %v8671_v61 = vld [vmem:[#allocation27_spill] sm:$0xff] }
  0x9b   : > { %8658 = vst [vmem:[#allocation25_spill] sm:$0xff] %v5717_v37  ;;  %v5739_v40 = vmul.f32 %v5025_v47, %v4947_v51  ;;  %v5743_v39 = vmul.f32 %v5037_v54, %v4950_v52  ;;  %v5751_v44 = vmul.f32 %v4977_v8, %v4953_v53  ;;  %v5755_v31 = vmul.f32 %v4980_v9, %v4962_v58  ;;  %v8673_v51 = vld [vmem:[#allocation29_spill] sm:$0xff] }
  0x9c   : > { %8659 = vst [vmem:[#allocation62_spill] sm:$0xff] %v5723_v17  ;;  %8660 = vst [vmem:[#allocation63_spill] sm:$0xff] %v5727_v25  ;;  %v5763_v52 = vmul.f32 %v4983_v10, %v4965_v59  ;;  %v5767_v46 = vmul.f32 %v4992_v22, %v4968_v60  ;;  %v5771_v45 = vmul.f32 %v4995_v23, %v4953_v53  ;;  %v8667_v25 = vld [vmem:[#allocation24_spill] sm:$0xff] }
  0x9d   : > { %8661 = vst [vmem:[#allocation64_spill] sm:$0xff] %v5731_v49  ;;  %8662 = vst [vmem:[#allocation65_spill] sm:$0xff] %v5739_v40  ;;  %v8668_v49 = vld [vmem:[#allocation23_spill] sm:$0xff]  ;;  %v5782_v40 = vmul.f32 %v4998_v24, %v4962_v58  ;;  %v8670_v17 = vld [vmem:[#allocation28_spill] sm:$0xff] }
  0x9e   : > { %8663 = vst [vmem:[#allocation66_spill] sm:$0xff] %v5743_v39  ;;  %8664 = vst [vmem:[#allocation67_spill] sm:$0xff] %v5751_v44  ;;  %4227 = vmatmul.mubr.msk.bf16.vlgmr.msra.gmra.mrb[28].mxu0 %vm520_vm0, %v4897_v28  ;;  %v8669_v37 = vpack.c.bf16 %v8667_v25, %v8668_v49  ;;  %v5786_v39 = vmul.f32 %v5006_v34, %v4965_v59  ;;  %v8672_v6 = vpack.c.bf16 %v8670_v17, %v8671_v61  ;;  %v8675_v49 = vld [vmem:[#allocation33_spill] sm:$0xff] }
  0x9f   : > { %8665 = vst [vmem:[#allocation68_spill] sm:$0xff] %v5763_v52  ;;  %8666 = vst [vmem:[#allocation69_spill] sm:$0xff] %v5767_v46  ;;  %4228 = vmatmul.mubr.msk.bf16.vlgmr.msra.gmra.mrb[28].mxu1 %vm520_vm0, %v4897_v28  ;;  %1244 = vmatprep.mubr.bf16.mxu0 %v8574_v57  ;;  %v5800_v25 = vmul.f32 %v5012_v36, %v4953_v53  ;;  %v8674_v44 = vpack.c.bf16 %v5263_v14, %v8673_v51  ;;  %v8676_v53 = vld [vmem:[#allocation32_spill] sm:$0xff] }
  0xa0   : > { %1213 = vmatpush1.bf16.msra.mxu0 %v8669_v37  ;;  %1256 = vmatpush1.bf16.msra.mxu1 %v8672_v6  ;;  %v5796_v37 = vmul.f32 %v5009_v35, %v4968_v60  ;;  %v5810_v61 = vmul.f32 %v5022_v43, %v4962_v58  ;;  %v5814_v17 = vmul.f32 %v5025_v47, %v4965_v59 }
  0xa1   : > { %1287 = vmatprep.mubr.bf16.mxu1 %v8574_v57  ;;  %1298 = vmatprep.subr.bf16.mxu0 %v8674_v44  ;;  %v8677_v52 = vpack.c.bf16 %v8675_v49, %v8676_v53  ;;  %v5823_v14 = vmul.f32 %v5037_v54, %v4968_v60  ;;  %v5827_v44 = vmul.f32 %v4995_v23, %v4977_v8 }
  0xa2   : > { %v5831_v58 = vmul.f32 %v4998_v24, %v4980_v9  ;;  %v5837_v51 = vmul.f32 %v5006_v34, %v4983_v10  ;;  %v5845_v60 = vmul.f32 %v5012_v36, %v4977_v8  ;;  %v5853_v46 = vmul.f32 %v5022_v43, %v4980_v9 }
  0xa3   : > { %1341 = vmatprep.subr.bf16.mxu1 %v8677_v52  ;;  %v5841_v52 = vmul.f32 %v5009_v35, %v4992_v22  ;;  %v5857_v59 = vmul.f32 %v5025_v47, %v4983_v10  ;;  %v5863_v8 = vmul.f32 %v5037_v54, %v4992_v22  ;;  %v5867_v49 = vmul.f32 %v5012_v36, %v4995_v23  ;;  %v8678_v23 = vld [vmem:[#allocation31_spill] sm:$0xff] }
  0xa4   : > { %v5871_v53 = vmul.f32 %v5022_v43, %v4998_v24  ;;  %v517_v9 = vpack.c.bf16 %v5853_v46, %v5845_v60  ;;  %v5879_v10 = vmul.f32 %v5025_v47, %v5006_v34  ;;  %v5883_v22 = vmul.f32 %v5037_v54, %v5009_v35  ;;  %v8679_v24 = vld [vmem:[#allocation30_spill] sm:$0xff] }
  0xa5   : > { %v8680_v36 = vpack.c.bf16 %v8678_v23, %v8679_v24  ;;  %v516_v43 = vpack.c.bf16 %v5863_v8, %v5857_v59  ;;  %v8681_v34 = vpack.c.bf16 %v5293_v15, %v5285_v63  ;;  %v8682_v47 = vpack.c.bf16 %v5305_v21, %v5297_v11  ;;  %v8684_v63 = vld [vmem:[#allocation34_spill] sm:$0xff]  ;;  %v8690_v11 = vld [vmem:[#allocation40_spill] sm:$0xff]  ;;  %v8691_v24 = vld [vmem:[#allocation39_spill] sm:$0xff] }
  0xa6   : > { %4229 = vmatmul.mubr.msk.bf16.vlgmr.msra.gmra.mrb[32].mxu0 %vm520_vm0, %v4897_v28  ;;  %v519_v6 = vpack.c.bf16 %v5871_v53, %v5867_v49  ;;  %v518_v35 = vpack.c.bf16 %v5883_v22, %v5879_v10  ;;  %v8683_v54 = vpack.c.bf16 %v5328_v55, %v5324_v33  ;;  %v8685_v15 = vpack.c.bf16 %v5313_v19, %v8684_v63  ;;  %v8687_v33 = vld [vmem:[#allocation36_spill] sm:$0xff]  ;;  %v8688_v55 = vld [vmem:[#allocation35_spill] sm:$0xff]  ;;  %v8693_v19 = vld [vmem:[#allocation38_spill] sm:$0xff] }
  0xa7   : > { %4230 = vmatmul.mubr.msk.bf16.vlgmr.msra.gmra.mrb[32].mxu1 %vm520_vm0, %v4897_v28  ;;  %1299 = vmatpush1.bf16.msra.mxu0 %v8680_v36  ;;  %v8686_v23 = vpack.c.bf16 %v5350_v2, %v5340_v13  ;;  %v8689_v21 = vpack.c.bf16 %v8687_v33, %v8688_v55  ;;  %v8692_v36 = vpack.c.bf16 %v8690_v11, %v8691_v24  ;;  %v8694_v13 = vld [vmem:[#allocation37_spill] sm:$0xff]  ;;  %v8699_v63 = vld [vmem:[#allocation44_spill] sm:$0xff]  ;;  %v8702_v33 = vld [vmem:[#allocation47_spill] sm:$0xff] }
  0xa8   : > { %1342 = vmatpush1.bf16.msra.mxu1 %v8681_v34  ;;  %1330 = vmatprep.mubr.bf16.mxu0 %v8574_v57  ;;  %v8695_v2 = vpack.c.bf16 %v8693_v19, %v8694_v13  ;;  %v8696_v34 = vld [vmem:[#allocation42_spill] sm:$0xff]  ;;  %v8703_v55 = vpack.c.bf16 %v5423_v18, %v8702_v33  ;;  %v8705_v11 = vld [vmem:[#allocation45_spill] sm:$0xff]  ;;  %v8708_v18 = vld [vmem:[#allocation11_spill] sm:$0xff] }
  0xa9   : > { %1373 = vmatprep.mubr.bf16.mxu1 %v8574_v57  ;;  %1384 = vmatprep.subr.bf16.mxu0 %v8682_v47  ;;  %v8697_v47 = vld [vmem:[#allocation41_spill] sm:$0xff]  ;;  %v8709_v19 = vld [vmem:[#allocation12_spill] sm:$0xff] }
  0xaa   : > { %1427 = vmatprep.subr.bf16.mxu1 %v8683_v54  ;;  %v8698_v54 = vpack.c.bf16 %v8696_v34, %v8697_v47  ;;  %v8710_v13 = vpack.c.bf16 %v8708_v18, %v8709_v19  ;;  %v8730_v19 = vpack.c.bf16 %v5570_v32, %v5566_v56  ;;  %v8739_v32 = vpack.c.bf16 %v5615_v48, %v5611_v12 }
  0xab   : > { %v8745_v12 = vpack.c.bf16 %v5657_v38, %v5653_v20  ;;  %v8752_v20 = vld [vmem:[#allocation60_spill] sm:$0xff]  ;;  %v8755_v38 = vld [vmem:[#allocation26_spill] sm:$0xff] }
  0xae   : > { %4231 = vmatmul.mubr.msk.bf16.vlgmr.msra.gmra.mrb[36].mxu0 %vm520_vm0, %v4897_v28 }
  0xaf   : > { %4232 = vmatmul.mubr.msk.bf16.vlgmr.msra.gmra.mrb[36].mxu1 %vm520_vm0, %v4897_v28  ;;  %1385 = vmatpush1.bf16.msra.mxu0 %v8685_v15  ;;  %v8700_v15 = vld [vmem:[#allocation43_spill] sm:$0xff] }
  0xb0   : > { %1428 = vmatpush1.bf16.msra.mxu1 %v8686_v23  ;;  %1416 = vmatprep.mubr.bf16.mxu0 %v8574_v57  ;;  %v8701_v23 = vpack.c.bf16 %v8699_v63, %v8700_v15  ;;  %v8717_v63 = vld [vmem:[#allocation15_spill] sm:$0xff] }
  0xb1   : > { %1459 = vmatprep.mubr.bf16.mxu1 %v8574_v57  ;;  %1470 = vmatprep.subr.bf16.mxu0 %v8689_v21  ;;  %v8704_v21 = vld [vmem:[#allocation46_spill] sm:$0xff] }
  0xb2   : > { %1513 = vmatprep.subr.bf16.mxu1 %v8692_v36  ;;  %v8706_v24 = vpack.c.bf16 %v8704_v21, %v8705_v11  ;;  %v8707_v36 = vpack.c.bf16 %v5438_v50, %v5427_v1  ;;  %v8713_v50 = vld [vmem:[#allocation13_spill] sm:$0xff]  ;;  %v8714_v1 = vld [vmem:[#allocation14_spill] sm:$0xff]  ;;  %v8723_v21 = vld [vmem:[#allocation52_spill] sm:$0xff] }
  0xb3   : > { %v8715_v47 = vpack.c.bf16 %v8713_v50, %v8714_v1  ;;  %v8724_v11 = vld [vmem:[#allocation51_spill] sm:$0xff]  ;;  %v8735_v50 = vld [vmem:[#allocation17_spill] sm:$0xff] }
  0xb6   : > { %4233 = vmatmul.mubr.msk.bf16.vlgmr.msra.gmra.mrb[40].mxu0 %vm520_vm0, %v4897_v28 }
  0xb7   : > { %4234 = vmatmul.mubr.msk.bf16.vlgmr.msra.gmra.mrb[40].mxu1 %vm520_vm0, %v4897_v28  ;;  %1471 = vmatpush1.bf16.msra.mxu0 %v8695_v2  ;;  %v8711_v2 = vld [vmem:[#allocation16_spill] sm:$0xff] }
  0xb8   : > { %1514 = vmatpush1.bf16.msra.mxu1 %v8698_v54  ;;  %1502 = vmatprep.mubr.bf16.mxu0 %v8574_v57  ;;  %v8712_v34 = vpack.c.bf16 %v5479_v3, %v8711_v2  ;;  %v8716_v54 = vld [vmem:[#allocation48_spill] sm:$0xff]  ;;  %v8719_v3 = vld [vmem:[#allocation50_spill] sm:$0xff] }
  0xb9   : > { %1545 = vmatprep.mubr.bf16.mxu1 %v8574_v57  ;;  %1556 = vmatprep.subr.bf16.mxu0 %v8701_v23  ;;  %v8718_v15 = vpack.c.bf16 %v8716_v54, %v8717_v63  ;;  %v8720_v23 = vld [vmem:[#allocation49_spill] sm:$0xff]  ;;  %v8742_v63 = vld [vmem:[#allocation22_spill] sm:$0xff] }
  0xba   : > { %1599 = vmatprep.subr.bf16.mxu1 %v8703_v55  ;;  %v8721_v33 = vpack.c.bf16 %v8719_v3, %v8720_v23  ;;  %v8722_v55 = vpack.c.bf16 %v5519_v41, %v5513_v4  ;;  %v8728_v41 = vld [vmem:[#allocation54_spill] sm:$0xff]  ;;  %v8741_v54 = vld [vmem:[#allocation21_spill] sm:$0xff]  ;;  %v8749_v3 = vld [vmem:[#allocation59_spill] sm:$0xff] }
  0xbb   : > { %v8729_v4 = vpack.c.bf16 %v5539_v29, %v8728_v41  ;;  %v8737_v29 = vld [vmem:[#allocation19_spill] sm:$0xff]  ;;  %v8750_v23 = vld [vmem:[#allocation58_spill] sm:$0xff] }
  0xbc   : > { %v8738_v56 = vpack.c.bf16 %v5597_v27, %v8737_v29  ;;  %v8744_v27 = vpack.c.bf16 %v5637_v16, %v5629_v30  ;;  %v8753_v16 = vpack.c.bf16 %v5694_v5, %v8752_v20  ;;  %v8754_v30 = vpack.c.bf16 %v5713_v62, %v5709_v42  ;;  %v8761_v5 = vld [vmem:[#allocation64_spill] sm:$0xff]  ;;  %v8762_v42 = vld [vmem:[#allocation63_spill] sm:$0xff] }
  0xbd   : > { %v8763_v62 = vpack.c.bf16 %v8761_v5, %v8762_v42  ;;  %v8775_v29 = vpack.c.bf16 %v5823_v14, %v5814_v17 }
  0xbe   : > { %4235 = vmatmul.mubr.msk.bf16.vlgmr.msra.gmra.mrb[44].mxu0 %vm520_vm0, %v4897_v28 }
  0xbf   : > { %4236 = vmatmul.mubr.msk.bf16.vlgmr.msra.gmra.mrb[44].mxu1 %vm520_vm0, %v4897_v28  ;;  %1557 = vmatpush1.bf16.msra.mxu0 %v8706_v24  ;;  %v8725_v24 = vpack.c.bf16 %v8723_v21, %v8724_v11  ;;  %v8758_v11 = vld [vmem:[#allocation62_spill] sm:$0xff] }
  0xc0   : > { %1600 = vmatpush1.bf16.msra.mxu1 %v8707_v36  ;;  %1588 = vmatprep.mubr.bf16.mxu0 %v8574_v57  ;;  %v8726_v36 = vld [vmem:[#allocation53_spill] sm:$0xff] }
  0xc1   : > { %1631 = vmatprep.mubr.bf16.mxu1 %v8574_v57  ;;  %1642 = vmatprep.subr.bf16.mxu0 %v8710_v13  ;;  %v8727_v18 = vpack.c.bf16 %v5527_v7, %v8726_v36  ;;  %v8731_v7 = vld [vmem:[#allocation18_spill] sm:$0xff]  ;;  %v8732_v13 = vld [vmem:[#allocation55_spill] sm:$0xff] }
  0xc2   : > { %1685 = vmatprep.subr.bf16.mxu1 %v8712_v34  ;;  %v8733_v2 = vpack.c.bf16 %v8731_v7, %v8732_v13  ;;  %v8734_v34 = vld [vmem:[#allocation20_spill] sm:$0xff]  ;;  %v8769_v13 = vld [vmem:[#allocation69_spill] sm:$0xff] }
  0xc3   : > { %v8736_v1 = vpack.c.bf16 %v8734_v34, %v8735_v50  ;;  %v8773_v50 = vpack.c.bf16 %v5810_v61, %v5800_v25 }
  0xc6   : > { %4237 = vmatmul.mubr.msk.bf16.vlgmr.msra.gmra.mrb[48].mxu0 %vm520_vm0, %v4897_v28 }
  0xc7   : > { %4238 = vmatmul.mubr.msk.bf16.vlgmr.msra.gmra.mrb[48].mxu1 %vm520_vm0, %v4897_v28  ;;  %1643 = vmatpush1.bf16.msra.mxu0 %v8715_v47  ;;  %v8740_v47 = vpack.c.bf16 %v5607_v0, %v5601_v26  ;;  %v8746_v26 = vld [vmem:[#allocation57_spill] sm:$0xff]  ;;  %v8747_v0 = vld [vmem:[#allocation56_spill] sm:$0xff] }
  0xc8   : > { %1686 = vmatpush1.bf16.msra.mxu1 %v8718_v15  ;;  %1674 = vmatprep.mubr.bf16.mxu0 %v8574_v57  ;;  %v8743_v15 = vpack.c.bf16 %v8741_v54, %v8742_v63  ;;  %v8748_v48 = vpack.c.bf16 %v8746_v26, %v8747_v0 }
  0xc9   : > { %1717 = vmatprep.mubr.bf16.mxu1 %v8574_v57  ;;  %1728 = vmatprep.subr.bf16.mxu0 %v8721_v33  ;;  %v8751_v33 = vpack.c.bf16 %v8749_v3, %v8750_v23 }
  0xca   : > { %1771 = vmatprep.subr.bf16.mxu1 %v8722_v55  ;;  %v8756_v55 = vld [vmem:[#allocation61_spill] sm:$0xff] }
  0xcb   : > { %v8757_v21 = vpack.c.bf16 %v8755_v38, %v8756_v55 }
  0xce   : > { %4239 = vmatmul.mubr.msk.bf16.vlgmr.msra.gmra.mrb[52].mxu0 %vm520_vm0, %v4897_v28 }
  0xcf   : > { %4240 = vmatmul.mubr.msk.bf16.vlgmr.msra.gmra.mrb[52].mxu1 %vm520_vm0, %v4897_v28  ;;  %1729 = vmatpush1.bf16.msra.mxu0 %v8725_v24  ;;  %v8759_v24 = vld [vmem:[#allocation25_spill] sm:$0xff] }
  0xd0   : > { %1772 = vmatpush1.bf16.msra.mxu1 %v8727_v18  ;;  %1760 = vmatprep.mubr.bf16.mxu0 %v8574_v57  ;;  %v8760_v36 = vpack.c.bf16 %v8758_v11, %v8759_v24  ;;  %v8764_v18 = vld [vmem:[#allocation67_spill] sm:$0xff] }
  0xd1   : > { %1803 = vmatprep.mubr.bf16.mxu1 %v8574_v57  ;;  %1814 = vmatprep.subr.bf16.mxu0 %v8729_v4  ;;  %v8765_v41 = vpack.c.bf16 %v5755_v31, %v8764_v18  ;;  %v8766_v4 = vld [vmem:[#allocation66_spill] sm:$0xff]  ;;  %v8772_v31 = vpack.c.bf16 %v5782_v40, %v5771_v45  ;;  %v8776_v40 = vpack.c.bf16 %v5831_v58, %v5827_v44 }
  0xd2   : > { %1857 = vmatprep.subr.bf16.mxu1 %v8730_v19  ;;  %v8767_v19 = vld [vmem:[#allocation65_spill] sm:$0xff] }
  0xd3   : > { %v8768_v7 = vpack.c.bf16 %v8766_v4, %v8767_v19 }
  0xd6   : > { %4241 = vmatmul.mubr.msk.bf16.vlgmr.msra.gmra.mrb[56].mxu0 %vm520_vm0, %v4897_v28 }
  0xd7   : > { %4242 = vmatmul.mubr.msk.bf16.vlgmr.msra.gmra.mrb[56].mxu1 %vm520_vm0, %v4897_v28  ;;  %1815 = vmatpush1.bf16.msra.mxu0 %v8733_v2  ;;  %v8770_v2 = vld [vmem:[#allocation68_spill] sm:$0xff] }
  0xd8   : > { %1858 = vmatpush1.bf16.msra.mxu1 %v8736_v1  ;;  %1846 = vmatprep.mubr.bf16.mxu0 %v8574_v57  ;;  %v8771_v34 = vpack.c.bf16 %v8769_v13, %v8770_v2  ;;  %v8774_v1 = vpack.c.bf16 %v5796_v37, %v5786_v39  ;;  %v8777_v39 = vpack.c.bf16 %v5841_v52, %v5837_v51 }
  0xd9   : > { %1889 = vmatprep.mubr.bf16.mxu1 %v8574_v57  ;;  %1900 = vmatprep.subr.bf16.mxu0 %v8738_v56 }
  0xda   : > { %1943 = vmatprep.subr.bf16.mxu1 %v8739_v32 }
  0xde   : > { %4243 = vmatmul.mubr.msk.bf16.vlgmr.msra.gmra.mrb[60].mxu0 %vm520_vm0, %v4897_v28 }
  0xdf   : > { %4244 = vmatmul.mubr.msk.bf16.vlgmr.msra.gmra.mrb[60].mxu1 %vm520_vm0, %v4897_v28  ;;  %1901 = vmatpush1.bf16.msra.mxu0 %v8740_v47 }
  0xe0   : > { %1944 = vmatpush1.bf16.msra.mxu1 %v8743_v15  ;;  %1932 = vmatprep.mubr.bf16.mxu0 %v8574_v57 }
  0xe1   : > { %1975 = vmatprep.mubr.bf16.mxu1 %v8574_v57  ;;  %1986 = vmatprep.subr.bf16.mxu0 %v8744_v27 }
  0xe2   : > { %2029 = vmatprep.subr.bf16.mxu1 %v8745_v12 }
  0xe6   : > { %4245 = vmatmul.mubr.msk.bf16.vlgmr.msra.gmra.mrb[64].mxu0 %vm520_vm0, %v4897_v28 }
  0xe7   : > { %4246 = vmatmul.mubr.msk.bf16.vlgmr.msra.gmra.mrb[64].mxu1 %vm520_vm0, %v4897_v28  ;;  %1987 = vmatpush1.bf16.msra.mxu0 %v8748_v48 }
  0xe8   : > { %2030 = vmatpush1.bf16.msra.mxu1 %v8751_v33  ;;  %2018 = vmatprep.mubr.bf16.mxu0 %v8574_v57 }
  0xe9   : > { %2061 = vmatprep.mubr.bf16.mxu1 %v8574_v57  ;;  %2072 = vmatprep.subr.bf16.mxu0 %v8753_v16 }
  0xea   : > { %2115 = vmatprep.subr.bf16.mxu1 %v8754_v30  ;;  %v6130_v45 = vpop.permute.xlu0 %2462 }
  0xee   : > { %4247 = vmatmul.mubr.msk.bf16.vlgmr.msra.gmra.mrb[68].mxu0 %vm520_vm0, %v4897_v28 }
  0xef   : > { %4248 = vmatmul.mubr.msk.bf16.vlgmr.msra.gmra.mrb[68].mxu1 %vm520_vm0, %v4897_v28  ;;  %2073 = vmatpush1.bf16.msra.mxu0 %v8757_v21 }
  0xf0   : > { %2116 = vmatpush1.bf16.msra.mxu1 %v8760_v36  ;;  %2104 = vmatprep.mubr.bf16.mxu0 %v8574_v57 }
  0xf1   : > { %2147 = vmatprep.mubr.bf16.mxu1 %v8574_v57  ;;  %2158 = vmatprep.subr.bf16.mxu0 %v8763_v62 }
  0xf2   : > { %2201 = vmatprep.subr.bf16.mxu1 %v8765_v41 }
  0xf3   : > { %v6132_v37 = vpop.permute.xlu0 %2646 }
  0xf6   : > { %4249 = vmatmul.mubr.msk.bf16.vlgmr.msra.gmra.mrb[72].mxu0 %vm520_vm0, %v4897_v28 }
  0xf7   : > { %4250 = vmatmul.mubr.msk.bf16.vlgmr.msra.gmra.mrb[72].mxu1 %vm520_vm0, %v4897_v28  ;;  %2159 = vmatpush1.bf16.msra.mxu0 %v8768_v7 }
  0xf8   : > { %2202 = vmatpush1.bf16.msra.mxu1 %v8771_v34  ;;  %2190 = vmatprep.mubr.bf16.mxu0 %v8574_v57 }
  0xf9   : > { %2233 = vmatprep.mubr.bf16.mxu1 %v8574_v57  ;;  %2244 = vmatprep.subr.bf16.mxu0 %v8772_v31 }
  0xfa   : > { %2287 = vmatprep.subr.bf16.mxu1 %v8773_v50 }
  0xfe   : > { %4251 = vmatmul.mubr.msk.bf16.vlgmr.msra.gmra.mrb[76].mxu0 %vm520_vm0, %v4897_v28 }
  0xff   : > { %4252 = vmatmul.mubr.msk.bf16.vlgmr.msra.gmra.mrb[76].mxu1 %vm520_vm0, %v4897_v28  ;;  %2245 = vmatpush1.bf16.msra.mxu0 %v8774_v1 }
 0x100   : > { %2288 = vmatpush1.bf16.msra.mxu1 %v8775_v29  ;;  %2276 = vmatprep.mubr.bf16.mxu0 %v8574_v57 }
 0x101   : > { %2319 = vmatprep.mubr.bf16.mxu1 %v8574_v57  ;;  %2330 = vmatprep.subr.bf16.mxu0 %v8776_v40 }
 0x102   : > { %2373 = vmatprep.subr.bf16.mxu1 %v517_v9 }
 0x106   : > { %4253 = vmatmul.mubr.msk.bf16.vlgmr.msra.gmra.mrb[80].mxu0 %vm520_vm0, %v4897_v28 }
 0x107   : > { %4254 = vmatmul.mubr.msk.bf16.vlgmr.msra.gmra.mrb[80].mxu1 %vm520_vm0, %v4897_v28  ;;  %2331 = vmatpush1.bf16.msra.mxu0 %v8777_v39 }
 0x108   : > { %2374 = vmatpush1.bf16.msra.mxu1 %v516_v43  ;;  %2362 = vmatprep.mubr.bf16.mxu0 %v8574_v57 }
 0x109   : > { %2405 = vmatprep.mubr.bf16.mxu1 %v8574_v57  ;;  %2416 = vmatprep.subr.bf16.mxu0 %v519_v6 }
 0x10e   : > { %4255 = vmatmul.mubr.msk.bf16.vlgmr.msra.gmra.mrb[84].mxu0 %vm520_vm0, %v4897_v28 }
 0x10f   : > { %4256 = vmatmul.mubr.msk.bf16.vlgmr.msra.gmra.mrb[84].mxu1 %vm520_vm0, %v4897_v28  ;;  %2417 = vmatpush1.bf16.msra.mxu0 %v518_v35 }
 0x110   : > { %2448 = vmatprep.mubr.bf16.mxu0 %v8574_v57 }
 0x116   : > { %4257 = vmatmul.mubr.msk.bf16.vlgmr.msra.gmra.mrb[88].mxu0 %vm520_vm0, %v4897_v28 }
 0x139   : > { %v558_v46 = vpop.f32.mrb[0].mxu0 }
 0x13a   : > { %v2465_v25 = vadd.f32 %v6130_v45, %v558_v46  ;;  %v560_v6 = vpop.f32.mrb[1].mxu0  ;;  %v601_v61 = vpop.f32.mrb[0].mxu1 }
 0x13b   : > { %v2466_v17 = vadd.f32 %v6130_v45, %v560_v6  ;;  %v6136_v14 = vpop.f32.mrb[2].mxu0  ;;  %v2467_v44 = vadd.f32 %v6130_v45, %v601_v61  ;;  %v603_v58 = vpop.f32.mrb[1].mxu1 }
 0x13c   : > { %8778 = vst [vmem:[#allocation24_spill] sm:$0xff] %v6136_v14  ;;  %v2555_v57 = vmax.f32 %v2465_v25, 0.0  ;;  %v6139_v59 = vpop.f32.mrb[3].mxu0  ;;  %v2468_v28 = vadd.f32 %v6130_v45, %v603_v58  ;;  %v6142_v51 = vpop.f32.mrb[2].mxu1 }
 0x13d   : > { %8779 = vst [vmem:[#allocation23_spill] sm:$0xff] %v6139_v59  ;;  %8780 = vst [vmem:[#allocation28_spill] sm:$0xff] %v6142_v51  ;;  %v2556_v52 = vmax.f32 %v2466_v17, 0.0  ;;  %v2557_v60 = vmax.f32 %v2467_v44, 0.0  ;;  %v6144_v49 = vpop.f32.mrb[3].mxu1 }
 0x13e   : > { %8781 = vst [vmem:[#allocation27_spill] sm:$0xff] %v6144_v49  ;;  %v2558_v53 = vmax.f32 %v2468_v28, 0.0  ;;  %v2649_v8 = vmul.f32 %v6132_v37, %v2555_v57 }
 0x13f   : > { %v2651_v9 = vmul.f32 %v6132_v37, %v2557_v60  ;;  %v2650_v10 = vmul.f32 %v6132_v37, %v2556_v52 }
 0x140   : > { %v2652_v22 = vmul.f32 %v6132_v37, %v2558_v53  ;;  %v2739_v43 = vrot.slane %v2649_v8, 4 }
 0x141   : > { %v2751_v35 = vrot.slane %v2651_v9, 4  ;;  %v644_v56 = vpop.f32.mrb[4].mxu0  ;;  %v2745_v32 = vrot.slane %v2650_v10, 4 }
 0x142   : > { %v2757_v47 = vrot.slane %v2652_v22, 4  ;;  %v2469_v54 = vadd.f32 %v6130_v45, %v644_v56  ;;  %v2740_v63 = vadd.f32 %v2739_v43, %v2649_v8  ;;  %v687_v15 = vpop.f32.mrb[4].mxu1  ;;  %v646_v27 = vpop.f32.mrb[5].mxu0 }
 0x143   : > { %v2752_v12 = vadd.f32 %v2751_v35, %v2651_v9  ;;  %v2471_v26 = vadd.f32 %v6130_v45, %v687_v15  ;;  %v2470_v0 = vadd.f32 %v6130_v45, %v646_v27  ;;  %v2746_v48 = vadd.f32 %v2745_v32, %v2650_v10  ;;  %v689_v3 = vpop.f32.mrb[5].mxu1  ;;  %v6153_v23 = vpop.f32.mrb[6].mxu0 }
 0x144   : > { %8782 = vst [vmem:[#allocation29_spill] sm:$0xff] %v6153_v23  ;;  %v2758_v33 = vadd.f32 %v2757_v47, %v2652_v22  ;;  %v2559_v20 = vmax.f32 %v2469_v54, 0.0  ;;  %v2741_v16 = vrot.slane %v2740_v63, 2  ;;  %v2472_v30 = vadd.f32 %v6130_v45, %v689_v3  ;;  %v6156_v38 = vpop.f32.mrb[7].mxu0  ;;  %v6158_v55 = vpop.f32.mrb[6].mxu1 }
 0x145   : > { %8783 = vst [vmem:[#allocation33_spill] sm:$0xff] %v6156_v38  ;;  %8784 = vst [vmem:[#allocation32_spill] sm:$0xff] %v6158_v55  ;;  %v2753_v21 = vrot.slane %v2752_v12, 2  ;;  %v2561_v11 = vmax.f32 %v2471_v26, 0.0  ;;  %v2560_v24 = vmax.f32 %v2470_v0, 0.0  ;;  %v2747_v36 = vrot.slane %v2746_v48, 2 }
 0x146   : > { %v6160_v5 = vpop.f32.mrb[7].mxu1  ;;  %v2759_v42 = vrot.slane %v2758_v33, 2  ;;  %v2653_v62 = vmul.f32 %v6132_v37, %v2559_v20  ;;  %v2742_v18 = vadd.f32 %v2741_v16, %v2740_v63  ;;  %v2562_v41 = vmax.f32 %v2472_v30, 0.0 }
 0x147   : > { %8785 = vst [vmem:[#allocation31_spill] sm:$0xff] %v6160_v5  ;;  %v2754_v4 = vadd.f32 %v2753_v21, %v2752_v12  ;;  %v2655_v19 = vmul.f32 %v6132_v37, %v2561_v11  ;;  %v2654_v7 = vmul.f32 %v6132_v37, %v2560_v24  ;;  %v2748_v13 = vadd.f32 %v2747_v36, %v2746_v48 }
 0x148   : > { %v2760_v2 = vadd.f32 %v2759_v42, %v2758_v33  ;;  %v2743_v34 = vrot.slane %v2742_v18, 1  ;;  %v2763_v31 = vrot.slane %v2653_v62, 4  ;;  %v2656_v50 = vmul.f32 %v6132_v37, %v2562_v41 }
 0x149   : > { %v2755_v1 = vrot.slane %v2754_v4, 1  ;;  %v2775_v29 = vrot.slane %v2655_v19, 4  ;;  %v2749_v40 = vrot.slane %v2748_v13, 1  ;;  %v2769_v39 = vrot.slane %v2654_v7, 4  ;;  %v730_v46 = vpop.f32.mrb[8].mxu0 }
 0x14a   : > { %v2761_v25 = vrot.slane %v2760_v2, 1  ;;  %v6166_v6 = vadd.f32 %v2743_v34, %v2742_v18  ;;  %v2764_v61 = vadd.f32 %v2763_v31, %v2653_v62  ;;  %v2781_v17 = vrot.slane %v2656_v50, 4  ;;  %v773_v44 = vpop.f32.mrb[8].mxu1  ;;  %v732_v58 = vpop.f32.mrb[9].mxu0 }
 0x14b   : > { %v6168_v57 = vadd.f32 %v2755_v1, %v2754_v4  ;;  %v2776_v28 = vadd.f32 %v2775_v29, %v2655_v19  ;;  %v6170_v52 = vadd.f32 %v2749_v40, %v2748_v13  ;;  %v2770_v60 = vadd.f32 %v2769_v39, %v2654_v7  ;;  %v775_v53 = vpop.f32.mrb[9].mxu1  ;;  %v6172_v8 = vpop.f32.mrb[10].mxu0 }
 0x14c   : > { %8787 = vst [vmem:[#allocation34_spill] sm:$0xff] %v6172_v8  ;;  %v6174_v9 = vadd.f32 %v2761_v25, %v2760_v2  ;;  %v2765_v10 = vrot.slane %v2764_v61, 2  ;;  %v2782_v22 = vadd.f32 %v2781_v17, %v2656_v50  ;;  %v2473_v43 = vadd.f32 %v6130_v45, %v730_v46  ;;  %v6177_v35 = vpop.f32.mrb[11].mxu0  ;;  %v6179_v56 = vpop.f32.mrb[10].mxu1 }
 0x14d   : > { %8786 = vst [vmem:[#allocation30_spill] sm:$0xff] %v6170_v52  ;;  %8789 = vst [vmem:[#allocation35_spill] sm:$0xff] %v6177_v35  ;;  %v2777_v32 = vrot.slane %v2776_v28, 2  ;;  %v2771_v47 = vrot.slane %v2770_v60, 2  ;;  %v2475_v54 = vadd.f32 %v6130_v45, %v773_v44  ;;  %v2474_v63 = vadd.f32 %v6130_v45, %v732_v58  ;;  %v6183_v15 = vpop.f32.mrb[11].mxu1 }
 0x14e   : > { %8788 = vst [vmem:[#allocation36_spill] sm:$0xff] %v6174_v9  ;;  %8790 = vst [vmem:[#allocation40_spill] sm:$0xff] %v6179_v56  ;;  %v2766_v27 = vadd.f32 %v2765_v10, %v2764_v61  ;;  %v2783_v12 = vrot.slane %v2782_v22, 2  ;;  %v2563_v26 = vmax.f32 %v2473_v43, 0.0  ;;  %v2476_v0 = vadd.f32 %v6130_v45, %v775_v53 }
 0x14f   : > { %8791 = vst [vmem:[#allocation39_spill] sm:$0xff] %v6183_v15  ;;  %v2778_v48 = vadd.f32 %v2777_v32, %v2776_v28  ;;  %v2772_v3 = vadd.f32 %v2771_v47, %v2770_v60  ;;  %v2565_v33 = vmax.f32 %v2475_v54, 0.0  ;;  %v2564_v20 = vmax.f32 %v2474_v63, 0.0 }
 0x150   : > { %v2767_v16 = vrot.slane %v2766_v27, 1  ;;  %v2784_v30 = vadd.f32 %v2783_v12, %v2782_v22  ;;  %v2657_v21 = vmul.f32 %v6132_v37, %v2563_v26  ;;  %v2566_v11 = vmax.f32 %v2476_v0, 0.0 }
 0x151   : > { %v2779_v24 = vrot.slane %v2778_v48, 1  ;;  %v2773_v36 = vrot.slane %v2772_v3, 1  ;;  %v2659_v42 = vmul.f32 %v6132_v37, %v2565_v33  ;;  %v2658_v62 = vmul.f32 %v6132_v37, %v2564_v20  ;;  %v816_v18 = vpop.f32.mrb[12].mxu0 }
 0x152   : > { %v6189_v41 = vadd.f32 %v2767_v16, %v2766_v27  ;;  %v2785_v4 = vrot.slane %v2784_v30, 1  ;;  %v2787_v19 = vrot.slane %v2657_v21, 4  ;;  %v2660_v7 = vmul.f32 %v6132_v37, %v2566_v11  ;;  %v859_v13 = vpop.f32.mrb[12].mxu1  ;;  %v818_v2 = vpop.f32.mrb[13].mxu0 }
 0x153   : > { %v6192_v34 = vadd.f32 %v2779_v24, %v2778_v48  ;;  %v6194_v31 = vadd.f32 %v2773_v36, %v2772_v3  ;;  %v2799_v50 = vrot.slane %v2659_v42, 4  ;;  %v2793_v1 = vrot.slane %v2658_v62, 4  ;;  %v861_v29 = vpop.f32.mrb[13].mxu1  ;;  %v6196_v40 = vpop.f32.mrb[14].mxu0 }
 0x154   : > { %8793 = vst [vmem:[#allocation37_spill] sm:$0xff] %v6196_v40  ;;  %v3279_v39 = vmax.f32 %v6166_v6, %v6189_v41  ;;  %v6200_v46 = vadd.f32 %v2785_v4, %v2784_v30  ;;  %v2788_v25 = vadd.f32 %v2787_v19, %v2657_v21  ;;  %v2805_v61 = vrot.slane %v2660_v7, 4  ;;  %v6202_v17 = vpop.f32.mrb[15].mxu0  ;;  %v6204_v44 = vpop.f32.mrb[14].mxu1 }
 0x155   : > { %8792 = vst [vmem:[#allocation38_spill] sm:$0xff] %v6194_v31  ;;  %8795 = vst [vmem:[#allocation41_spill] sm:$0xff] %v6202_v17  ;;  %v3280_v58 = vmax.f32 %v6168_v57, %v6192_v34  ;;  %v3323_v28 = vmax.f32 %v6170_v52, %v6194_v31  ;;  %v2800_v60 = vadd.f32 %v2799_v50, %v2659_v42  ;;  %v6210_v10 = vpop.f32.mrb[15].mxu1 }
 0x156   : > { %8794 = vst [vmem:[#allocation42_spill] sm:$0xff] %v6200_v46  ;;  %8796 = vst [vmem:[#allocation44_spill] sm:$0xff] %v6204_v44  ;;  %v2794_v53 = vadd.f32 %v2793_v1, %v2658_v62  ;;  %v3324_v22 = vmax.f32 %v6174_v9, %v6200_v46  ;;  %v2789_v43 = vrot.slane %v2788_v25, 2  ;;  %v2806_v32 = vadd.f32 %v2805_v61, %v2660_v7 }
 0x157   : > { %8797 = vst [vmem:[#allocation43_spill] sm:$0xff] %v6210_v10  ;;  %v2477_v47 = vadd.f32 %v6130_v45, %v816_v18  ;;  %v2801_v54 = vrot.slane %v2800_v60, 2  ;;  %v2479_v27 = vadd.f32 %v6130_v45, %v859_v13  ;;  %v2478_v12 = vadd.f32 %v6130_v45, %v818_v2 }
 0x158   : > { %v2795_v63 = vrot.slane %v2794_v53, 2  ;;  %v2790_v26 = vadd.f32 %v2789_v43, %v2788_v25  ;;  %v2807_v0 = vrot.slane %v2806_v32, 2  ;;  %v2480_v3 = vadd.f32 %v6130_v45, %v861_v29 }
 0x159   : > { %v2567_v48 = vmax.f32 %v2477_v47, 0.0  ;;  %v2802_v33 = vadd.f32 %v2801_v54, %v2800_v60  ;;  %v2569_v16 = vmax.f32 %v2479_v27, 0.0  ;;  %v2568_v30 = vmax.f32 %v2478_v12, 0.0  ;;  %v902_v21 = vpop.f32.mrb[16].mxu0 }
 0x15a   : > { %v2796_v20 = vadd.f32 %v2795_v63, %v2794_v53  ;;  %v2791_v11 = vrot.slane %v2790_v26, 1  ;;  %v2808_v24 = vadd.f32 %v2807_v0, %v2806_v32  ;;  %v2570_v42 = vmax.f32 %v2480_v3, 0.0  ;;  %v945_v62 = vpop.f32.mrb[16].mxu1  ;;  %v904_v18 = vpop.f32.mrb[17].mxu0 }
 0x15b   : > { %v2661_v36 = vmul.f32 %v6132_v37, %v2567_v48  ;;  %v2803_v4 = vrot.slane %v2802_v33, 1  ;;  %v2663_v7 = vmul.f32 %v6132_v37, %v2569_v16  ;;  %v2662_v13 = vmul.f32 %v6132_v37, %v2568_v30  ;;  %v947_v2 = vpop.f32.mrb[17].mxu1  ;;  %v6221_v50 = vpop.f32.mrb[18].mxu0 }
 0x15c   : > { %v2797_v19 = vrot.slane %v2796_v20, 1  ;;  %8798 = vst [vmem:[#allocation47_spill] sm:$0xff] %v6221_v50  ;;  %v6223_v1 = vadd.f32 %v2791_v11, %v2790_v26  ;;  %v2809_v29 = vrot.slane %v2808_v24, 1  ;;  %v2664_v61 = vmul.f32 %v6132_v37, %v2570_v42  ;;  %v6226_v60 = vpop.f32.mrb[19].mxu0  ;;  %v6228_v53 = vpop.f32.mrb[18].mxu1 }
 0x15d   : > { %v2811_v25 = vrot.slane %v2661_v36, 4  ;;  %8799 = vst [vmem:[#allocation46_spill] sm:$0xff] %v6226_v60  ;;  %8800 = vst [vmem:[#allocation45_spill] sm:$0xff] %v6228_v53  ;;  %v6230_v43 = vadd.f32 %v2803_v4, %v2802_v33  ;;  %v2823_v47 = vrot.slane %v2663_v7, 4  ;;  %v2817_v54 = vrot.slane %v2662_v13, 4  ;;  %v6234_v63 = vpop.f32.mrb[19].mxu1 }
 0x15e   : > { %v6232_v32 = vadd.f32 %v2797_v19, %v2796_v20  ;;  %8802 = vst [vmem:[#allocation12_spill] sm:$0xff] %v6234_v63  ;;  %v6237_v27 = vmax.f32 %v3279_v39, %v6223_v1  ;;  %v6239_v12 = vadd.f32 %v2809_v29, %v2808_v24  ;;  %v2829_v0 = vrot.slane %v2664_v61, 4 }
 0x15f   : > { %v2812_v26 = vadd.f32 %v2811_v25, %v2661_v36  ;;  %v6242_v48 = vmax.f32 %v3280_v58, %v6230_v43  ;;  %v2824_v33 = vadd.f32 %v2823_v47, %v2663_v7  ;;  %v2818_v20 = vadd.f32 %v2817_v54, %v2662_v13 }
 0x160   : > { %8801 = vst [vmem:[#allocation11_spill] sm:$0xff] %v6232_v32  ;;  %8803 = vst [vmem:[#allocation16_spill] sm:$0xff] %v6239_v12  ;;  %v6245_v3 = vmax.f32 %v3323_v28, %v6232_v32  ;;  %v6248_v16 = vmax.f32 %v3324_v22, %v6239_v12  ;;  %v2830_v11 = vadd.f32 %v2829_v0, %v2664_v61 }
 0x161   : > { %v2813_v30 = vrot.slane %v2812_v26, 2  ;;  %v2481_v39 = vadd.f32 %v6130_v45, %v902_v21  ;;  %v2825_v42 = vrot.slane %v2824_v33, 2  ;;  %v2819_v24 = vrot.slane %v2818_v20, 2  ;;  %v988_v58 = vpop.f32.mrb[20].mxu0 }
 0x162   : > { %v2483_v36 = vadd.f32 %v6130_v45, %v945_v62  ;;  %v2482_v4 = vadd.f32 %v6130_v45, %v904_v18  ;;  %v2831_v29 = vrot.slane %v2830_v11, 2  ;;  %v2484_v7 = vadd.f32 %v6130_v45, %v947_v2  ;;  %v1031_v13 = vpop.f32.mrb[20].mxu1  ;;  %v990_v25 = vpop.f32.mrb[21].mxu0 }
 0x163   : > { %v2814_v19 = vadd.f32 %v2813_v30, %v2812_v26  ;;  %v2571_v28 = vmax.f32 %v2481_v39, 0.0  ;;  %v2826_v22 = vadd.f32 %v2825_v42, %v2824_v33  ;;  %v2820_v47 = vadd.f32 %v2819_v24, %v2818_v20  ;;  %v1033_v0 = vpop.f32.mrb[21].mxu1  ;;  %v6254_v21 = vpop.f32.mrb[22].mxu0 }
 0x164   : > { %v2573_v54 = vmax.f32 %v2483_v36, 0.0  ;;  %v2572_v61 = vmax.f32 %v2482_v4, 0.0  ;;  %8804 = vst [vmem:[#allocation13_spill] sm:$0xff] %v6254_v21  ;;  %v2832_v60 = vadd.f32 %v2831_v29, %v2830_v11  ;;  %v2574_v18 = vmax.f32 %v2484_v7, 0.0  ;;  %v6257_v10 = vpop.f32.mrb[23].mxu0  ;;  %v6259_v26 = vpop.f32.mrb[22].mxu1 }
 0x165   : > { %v2815_v63 = vrot.slane %v2814_v19, 1  ;;  %v2665_v62 = vmul.f32 %v6132_v37, %v2571_v28  ;;  %8805 = vst [vmem:[#allocation14_spill] sm:$0xff] %v6257_v10  ;;  %8806 = vst [vmem:[#allocation48_spill] sm:$0xff] %v6259_v26  ;;  %v2827_v30 = vrot.slane %v2826_v22, 1  ;;  %v2821_v2 = vrot.slane %v2820_v47, 1  ;;  %v6263_v20 = vpop.f32.mrb[23].mxu1 }
 0x166   : > { %v2667_v39 = vmul.f32 %v6132_v37, %v2573_v54  ;;  %v2666_v33 = vmul.f32 %v6132_v37, %v2572_v61  ;;  %8807 = vst [vmem:[#allocation15_spill] sm:$0xff] %v6263_v20  ;;  %v2833_v24 = vrot.slane %v2832_v60, 1  ;;  %v2668_v11 = vmul.f32 %v6132_v37, %v2574_v18 }
 0x167   : > { %v6265_v42 = vadd.f32 %v2815_v63, %v2814_v19  ;;  %v2835_v36 = vrot.slane %v2665_v62, 4  ;;  %v6268_v4 = vadd.f32 %v2827_v30, %v2826_v22  ;;  %v6270_v29 = vadd.f32 %v2821_v2, %v2820_v47 }
 0x168   : > { %v2847_v28 = vrot.slane %v2667_v39, 4  ;;  %v2841_v7 = vrot.slane %v2666_v33, 4  ;;  %v6274_v54 = vadd.f32 %v2833_v24, %v2832_v60  ;;  %v2853_v17 = vrot.slane %v2668_v11, 4 }
 0x169   : > { %8808 = vst [vmem:[#allocation50_spill] sm:$0xff] %v6270_v29  ;;  %v3283_v10 = vmax.f32 %v6237_v27, %v6265_v42  ;;  %v2836_v61 = vadd.f32 %v2835_v36, %v2665_v62  ;;  %v3284_v63 = vmax.f32 %v6242_v48, %v6268_v4  ;;  %v3327_v19 = vmax.f32 %v6245_v3, %v6270_v29  ;;  %v1074_v30 = vpop.f32.mrb[24].mxu0 }
 0x16a   : > { %8809 = vst [vmem:[#allocation49_spill] sm:$0xff] %v6274_v54  ;;  %v2848_v18 = vadd.f32 %v2847_v28, %v2667_v39  ;;  %v2842_v22 = vadd.f32 %v2841_v7, %v2666_v33  ;;  %v3328_v47 = vmax.f32 %v6248_v16, %v6274_v54  ;;  %v2854_v20 = vadd.f32 %v2853_v17, %v2668_v11  ;;  %v1117_v60 = vpop.f32.mrb[24].mxu1  ;;  %v1076_v24 = vpop.f32.mrb[25].mxu0 }
 0x16b   : > { %v2837_v2 = vrot.slane %v2836_v61, 2  ;;  %v2485_v27 = vadd.f32 %v6130_v45, %v988_v58  ;;  %v2487_v15 = vadd.f32 %v6130_v45, %v1031_v13  ;;  %v2486_v48 = vadd.f32 %v6130_v45, %v990_v25  ;;  %v1119_v35 = vpop.f32.mrb[25].mxu1  ;;  %v6285_v3 = vpop.f32.mrb[26].mxu0 }
 0x16c   : > { %v2849_v62 = vrot.slane %v2848_v18, 2  ;;  %v2843_v36 = vrot.slane %v2842_v22, 2  ;;  %8810 = vst [vmem:[#allocation52_spill] sm:$0xff] %v6285_v3  ;;  %v2855_v33 = vrot.slane %v2854_v20, 2  ;;  %v2488_v16 = vadd.f32 %v6130_v45, %v1033_v0  ;;  %v6288_v7 = vpop.f32.mrb[27].mxu0  ;;  %v6290_v17 = vpop.f32.mrb[26].mxu1 }
 0x16d   : > { %v2838_v39 = vadd.f32 %v2837_v2, %v2836_v61  ;;  %v2575_v28 = vmax.f32 %v2485_v27, 0.0  ;;  %8811 = vst [vmem:[#allocation51_spill] sm:$0xff] %v6288_v7  ;;  %8812 = vst [vmem:[#allocation53_spill] sm:$0xff] %v6290_v17  ;;  %v2577_v5 = vmax.f32 %v2487_v15, 0.0  ;;  %v2576_v38 = vmax.f32 %v2486_v48, 0.0  ;;  %v6292_v49 = vpop.f32.mrb[27].mxu1 }
 0x16e   : > { %v2850_v58 = vadd.f32 %v2849_v62, %v2848_v18  ;;  %v2844_v11 = vadd.f32 %v2843_v36, %v2842_v22  ;;  %8813 = vst [vmem:[#allocation54_spill] sm:$0xff] %v6292_v49  ;;  %v2856_v25 = vadd.f32 %v2855_v33, %v2854_v20  ;;  %v2578_v3 = vmax.f32 %v2488_v16, 0.0 }
 0x16f   : > { %v2839_v13 = vrot.slane %v2838_v39, 1  ;;  %v2669_v59 = vmul.f32 %v6132_v37, %v2575_v28  ;;  %v2671_v27 = vmul.f32 %v6132_v37, %v2577_v5  ;;  %v2670_v0 = vmul.f32 %v6132_v37, %v2576_v38 }
 0x170   : > { %v2851_v61 = vrot.slane %v2850_v58, 1  ;;  %v2845_v2 = vrot.slane %v2844_v11, 1  ;;  %v2857_v17 = vrot.slane %v2856_v25, 1  ;;  %v2672_v15 = vmul.f32 %v6132_v37, %v2578_v3 }
 0x171   : > { %v6297_v7 = vadd.f32 %v2839_v13, %v2838_v39  ;;  %v2859_v18 = vrot.slane %v2669_v59, 4  ;;  %v2871_v20 = vrot.slane %v2671_v27, 4  ;;  %v2865_v36 = vrot.slane %v2670_v0, 4  ;;  %v6304_v48 = vpop.f32.mrb[28].mxu0 }
 0x172   : > { %v6300_v22 = vadd.f32 %v2851_v61, %v2850_v58  ;;  %v6302_v62 = vadd.f32 %v2845_v2, %v2844_v11  ;;  %v6309_v5 = vadd.f32 %v2857_v17, %v2856_v25  ;;  %v2877_v39 = vrot.slane %v2672_v15, 4  ;;  %v6311_v28 = vpop.f32.mrb[28].mxu1  ;;  %v6313_v16 = vpop.f32.mrb[29].mxu0 }
 0x173   : > { %v6307_v33 = vmax.f32 %v3283_v10, %v6297_v7  ;;  %v2860_v38 = vadd.f32 %v2859_v18, %v2669_v59  ;;  %v2872_v11 = vadd.f32 %v2871_v20, %v2671_v27  ;;  %v2866_v13 = vadd.f32 %v2865_v36, %v2670_v0  ;;  %v6321_v61 = vpop.f32.mrb[29].mxu1  ;;  %v6323_v10 = vpop.f32.mrb[30].mxu0 }
 0x174   : > { %8814 = vst [vmem:[#allocation18_spill] sm:$0xff] %v6302_v62  ;;  %8815 = vst [vmem:[#allocation55_spill] sm:$0xff] %v6309_v5  ;;  %v6316_v3 = vmax.f32 %v3284_v63, %v6300_v22  ;;  %v6319_v58 = vmax.f32 %v3327_v19, %v6302_v62  ;;  %v6326_v17 = vmax.f32 %v3328_v47, %v6309_v5  ;;  %v6329_v18 = vpop.f32.mrb[31].mxu0  ;;  %v6331_v63 = vpop.f32.mrb[30].mxu1 }
 0x175   : > { %8816 = vst [vmem:[#allocation20_spill] sm:$0xff] %v6323_v10  ;;  %v2861_v59 = vrot.slane %v2860_v38, 2  ;;  %v2878_v25 = vadd.f32 %v2877_v39, %v2672_v15  ;;  %v2489_v2 = vadd.f32 %v6130_v45, %v1074_v30  ;;  %8817 = vst [vmem:[#allocation17_spill] sm:$0xff] %v6329_v18  ;;  %v2873_v49 = vrot.slane %v2872_v11, 2  ;;  %v6335_v20 = vpop.f32.mrb[31].mxu1 }
 0x176   : > { %8818 = vst [vmem:[#allocation19_spill] sm:$0xff] %v6331_v63  ;;  %v2867_v19 = vrot.slane %v2866_v13, 2  ;;  %v2491_v27 = vadd.f32 %v6130_v45, %v1117_v60  ;;  %v2490_v0 = vadd.f32 %v6130_v45, %v1076_v24  ;;  %8819 = vst [vmem:[#allocation21_spill] sm:$0xff] %v6335_v20  ;;  %v2492_v26 = vadd.f32 %v6130_v45, %v1119_v35 }
 0x177   : > { %v2862_v36 = vadd.f32 %v2861_v59, %v2860_v38  ;;  %v2879_v10 = vrot.slane %v2878_v25, 2  ;;  %v2579_v47 = vmax.f32 %v2489_v2, 0.0  ;;  %v2874_v15 = vadd.f32 %v2873_v49, %v2872_v11 }
 0x178   : > { %v2868_v39 = vadd.f32 %v2867_v19, %v2866_v13  ;;  %v2581_v30 = vmax.f32 %v2491_v27, 0.0  ;;  %v2580_v21 = vmax.f32 %v2490_v0, 0.0  ;;  %v2582_v50 = vmax.f32 %v2492_v26, 0.0 }
 0x179   : > { %v2863_v18 = vrot.slane %v2862_v36, 1  ;;  %v2880_v53 = vadd.f32 %v2879_v10, %v2878_v25  ;;  %v2673_v63 = vmul.f32 %v6132_v37, %v2579_v47  ;;  %v2875_v44 = vrot.slane %v2874_v15, 1  ;;  %v6341_v38 = vpop.f32.mrb[32].mxu0 }
 0x17a   : > { %v2869_v60 = vrot.slane %v2868_v39, 1  ;;  %v2675_v24 = vmul.f32 %v6132_v37, %v2581_v30  ;;  %v2674_v20 = vmul.f32 %v6132_v37, %v2580_v21  ;;  %v2676_v11 = vmul.f32 %v6132_v37, %v2582_v50  ;;  %v6346_v13 = vpop.f32.mrb[32].mxu1  ;;  %v6348_v10 = vpop.f32.mrb[33].mxu0 }
 0x17b   : > { %v6343_v59 = vadd.f32 %v2863_v18, %v2862_v36  ;;  %v2881_v35 = vrot.slane %v2880_v53, 1  ;;  %v2883_v49 = vrot.slane %v2673_v63, 4  ;;  %v6350_v25 = vadd.f32 %v2875_v44, %v2874_v15  ;;  %v6354_v27 = vpop.f32.mrb[33].mxu1  ;;  %v6356_v21 = vpop.f32.mrb[34].mxu0 }
 0x17c   : > { %v6352_v26 = vadd.f32 %v2869_v60, %v2868_v39  ;;  %v2895_v2 = vrot.slane %v2675_v24, 4  ;;  %v2889_v19 = vrot.slane %v2674_v20, 4  ;;  %8821 = vst [vmem:[#allocation57_spill] sm:$0xff] %v6356_v21  ;;  %v2901_v36 = vrot.slane %v2676_v11, 4  ;;  %v6362_v47 = vpop.f32.mrb[35].mxu0  ;;  %v6364_v30 = vpop.f32.mrb[34].mxu1 }
 0x17d   : > { %v3287_v18 = vmax.f32 %v6307_v33, %v6343_v59  ;;  %v6360_v0 = vadd.f32 %v2881_v35, %v2880_v53  ;;  %v2884_v50 = vadd.f32 %v2883_v49, %v2673_v63  ;;  %8823 = vst [vmem:[#allocation59_spill] sm:$0xff] %v6362_v47  ;;  %8824 = vst [vmem:[#allocation58_spill] sm:$0xff] %v6364_v30  ;;  %v6370_v21 = vpop.f32.mrb[35].mxu1 }
 0x17e   : > { %8820 = vst [vmem:[#allocation22_spill] sm:$0xff] %v6352_v26  ;;  %v3288_v44 = vmax.f32 %v6316_v3, %v6350_v25  ;;  %v3331_v15 = vmax.f32 %v6319_v58, %v6352_v26  ;;  %v2896_v39 = vadd.f32 %v2895_v2, %v2675_v24  ;;  %v2890_v60 = vadd.f32 %v2889_v19, %v2674_v20 }
 0x17f   : > { %8822 = vst [vmem:[#allocation56_spill] sm:$0xff] %v6360_v0  ;;  %8825 = vst [vmem:[#allocation60_spill] sm:$0xff] %v6370_v21  ;;  %v3332_v53 = vmax.f32 %v6326_v17, %v6360_v0  ;;  %v2885_v33 = vrot.slane %v2884_v50, 2  ;;  %v2902_v63 = vadd.f32 %v2901_v36, %v2676_v11  ;;  %v2493_v35 = vadd.f32 %v6130_v45, %v6304_v48 }
 0x180   : > { %v2897_v49 = vrot.slane %v2896_v39, 2  ;;  %v2891_v47 = vrot.slane %v2890_v60, 2  ;;  %v2495_v3 = vadd.f32 %v6130_v45, %v6311_v28  ;;  %v2494_v58 = vadd.f32 %v6130_v45, %v6313_v16 }
 0x181   : > { %v2886_v24 = vadd.f32 %v2885_v33, %v2884_v50  ;;  %v2903_v20 = vrot.slane %v2902_v63, 2  ;;  %v2583_v2 = vmax.f32 %v2493_v35, 0.0  ;;  %v2496_v19 = vadd.f32 %v6130_v45, %v6321_v61  ;;  %v6382_v30 = vpop.f32.mrb[36].mxu0 }
 0x182   : > { %v2898_v17 = vadd.f32 %v2897_v49, %v2896_v39  ;;  %v2892_v21 = vadd.f32 %v2891_v47, %v2890_v60  ;;  %v2585_v11 = vmax.f32 %v2495_v3, 0.0  ;;  %v2584_v36 = vmax.f32 %v2494_v58, 0.0  ;;  %v6385_v8 = vpop.f32.mrb[36].mxu1  ;;  %v6387_v16 = vpop.f32.mrb[37].mxu0 }
 0x183   : > { %v2887_v48 = vrot.slane %v2886_v24, 1  ;;  %v2904_v40 = vadd.f32 %v2903_v20, %v2902_v63  ;;  %v2677_v56 = vmul.f32 %v6132_v37, %v2583_v2  ;;  %v2586_v28 = vmax.f32 %v2496_v19, 0.0  ;;  %v6391_v47 = vpop.f32.mrb[37].mxu1  ;;  %v6393_v39 = vpop.f32.mrb[38].mxu0 }
 0x184   : > { %v2899_v50 = vrot.slane %v2898_v17, 1  ;;  %v2893_v33 = vrot.slane %v2892_v21, 1  ;;  %v2679_v35 = vmul.f32 %v6132_v37, %v2585_v11  ;;  %v2678_v61 = vmul.f32 %v6132_v37, %v2584_v36  ;;  %8826 = vst [vmem:[#allocation26_spill] sm:$0xff] %v6393_v39  ;;  %v6398_v58 = vpop.f32.mrb[39].mxu0  ;;  %v6400_v20 = vpop.f32.mrb[38].mxu1 }
 0x185   : > { %v6395_v60 = vadd.f32 %v2887_v48, %v2886_v24  ;;  %v2905_v63 = vrot.slane %v2904_v40, 1  ;;  %v2907_v49 = vrot.slane %v2677_v56, 4  ;;  %v2680_v3 = vmul.f32 %v6132_v37, %v2586_v28  ;;  %8827 = vst [vmem:[#allocation61_spill] sm:$0xff] %v6398_v58  ;;  %8828 = vst [vmem:[#allocation62_spill] sm:$0xff] %v6400_v20  ;;  %v6406_v55 = vpop.f32.mrb[39].mxu1 }
 0x186   : > { %v6402_v2 = vadd.f32 %v2899_v50, %v2898_v17  ;;  %v6404_v19 = vadd.f32 %v2893_v33, %v2892_v21  ;;  %v2919_v11 = vrot.slane %v2679_v35, 4  ;;  %v2913_v36 = vrot.slane %v2678_v61, 4  ;;  %8830 = vst [vmem:[#allocation64_spill] sm:$0xff] %v6406_v55 }
 0x187   : > { %v6409_v39 = vmax.f32 %v3287_v18, %v6395_v60  ;;  %v6411_v24 = vadd.f32 %v2905_v63, %v2904_v40  ;;  %v2908_v48 = vadd.f32 %v2907_v49, %v2677_v56  ;;  %v2925_v23 = vrot.slane %v2680_v3, 4 }
 0x188   : > { %8829 = vst [vmem:[#allocation25_spill] sm:$0xff] %v6404_v19  ;;  %v6414_v28 = vmax.f32 %v3288_v44, %v6402_v2  ;;  %v6417_v58 = vmax.f32 %v3331_v15, %v6404_v19  ;;  %v2920_v17 = vadd.f32 %v2919_v11, %v2679_v35  ;;  %v2914_v21 = vadd.f32 %v2913_v36, %v2678_v61 }
 0x189   : > { %8831 = vst [vmem:[#allocation63_spill] sm:$0xff] %v6411_v24  ;;  %v6420_v50 = vmax.f32 %v3332_v53, %v6411_v24  ;;  %v2909_v33 = vrot.slane %v2908_v48, 2  ;;  %v2926_v55 = vadd.f32 %v2925_v23, %v2680_v3  ;;  %v2497_v18 = vadd.f32 %v6130_v45, %v6341_v38  ;;  %v6428_v15 = vpop.f32.mrb[40].mxu0 }
 0x18a   : > { %v2921_v40 = vrot.slane %v2920_v17, 2  ;;  %v2915_v63 = vrot.slane %v2914_v21, 2  ;;  %v2499_v56 = vadd.f32 %v6130_v45, %v6346_v13  ;;  %v2498_v44 = vadd.f32 %v6130_v45, %v6348_v10  ;;  %v6432_v23 = vpop.f32.mrb[40].mxu1  ;;  %v6434_v3 = vpop.f32.mrb[41].mxu0 }
 0x18b   : > { %v2910_v35 = vadd.f32 %v2909_v33, %v2908_v48  ;;  %v2927_v61 = vrot.slane %v2926_v55, 2  ;;  %v2587_v49 = vmax.f32 %v2497_v18, 0.0  ;;  %v2500_v53 = vadd.f32 %v6130_v45, %v6354_v27  ;;  %v6436_v13 = vpop.f32.mrb[41].mxu1  ;;  %v6438_v51 = vpop.f32.mrb[42].mxu0 }
 0x18c   : > { %v2922_v38 = vadd.f32 %v2921_v40, %v2920_v17  ;;  %v2916_v11 = vadd.f32 %v2915_v63, %v2914_v21  ;;  %v2589_v36 = vmax.f32 %v2499_v56, 0.0  ;;  %v2588_v20 = vmax.f32 %v2498_v44, 0.0  ;;  %8832 = vst [vmem:[#allocation67_spill] sm:$0xff] %v6438_v51  ;;  %v6441_v18 = vpop.f32.mrb[43].mxu0  ;;  %v6443_v27 = vpop.f32.mrb[42].mxu1 }
 0x18d   : > { %v2911_v10 = vrot.slane %v2910_v35, 1  ;;  %v2928_v14 = vadd.f32 %v2927_v61, %v2926_v55  ;;  %v2681_v48 = vmul.f32 %v6132_v37, %v2587_v49  ;;  %v2590_v33 = vmax.f32 %v2500_v53, 0.0  ;;  %8833 = vst [vmem:[#allocation66_spill] sm:$0xff] %v6441_v18  ;;  %8834 = vst [vmem:[#allocation65_spill] sm:$0xff] %v6443_v27  ;;  %v6447_v40 = vpop.f32.mrb[43].mxu1 }
 0x18e   : > { %v2923_v24 = vrot.slane %v2922_v38, 1  ;;  %v2917_v19 = vrot.slane %v2916_v11, 1  ;;  %v2683_v17 = vmul.f32 %v6132_v37, %v2589_v36  ;;  %v2682_v21 = vmul.f32 %v6132_v37, %v2588_v20  ;;  %8835 = vst [vmem:[#allocation69_spill] sm:$0xff] %v6447_v40 }
 0x18f   : > { %v6449_v63 = vadd.f32 %v2911_v10, %v2910_v35  ;;  %v2929_v56 = vrot.slane %v2928_v14, 1  ;;  %v2931_v44 = vrot.slane %v2681_v48, 4  ;;  %v2684_v55 = vmul.f32 %v6132_v37, %v2590_v33 }
 0x190   : > { %v6452_v61 = vadd.f32 %v2923_v24, %v2922_v38  ;;  %v6454_v49 = vadd.f32 %v2917_v19, %v2916_v11  ;;  %v2943_v53 = vrot.slane %v2683_v17, 4  ;;  %v2937_v18 = vrot.slane %v2682_v21, 4 }
 0x191   : > { %v3291_v27 = vmax.f32 %v6409_v39, %v6449_v63  ;;  %v6458_v36 = vadd.f32 %v2929_v56, %v2928_v14  ;;  %v2932_v20 = vadd.f32 %v2931_v44, %v2681_v48  ;;  %v2949_v51 = vrot.slane %v2684_v55, 4  ;;  %v6464_v38 = vpop.f32.mrb[44].mxu0 }
 0x192   : > { %8836 = vst [vmem:[#allocation68_spill] sm:$0xff] %v6454_v49  ;;  %v3292_v35 = vmax.f32 %v6414_v28, %v6452_v61  ;;  %v3335_v10 = vmax.f32 %v6417_v58, %v6454_v49  ;;  %v2944_v33 = vadd.f32 %v2943_v53, %v2683_v17  ;;  %v2938_v24 = vadd.f32 %v2937_v18, %v2682_v21  ;;  %v6470_v39 = vpop.f32.mrb[44].mxu1  ;;  %v6472_v48 = vpop.f32.mrb[45].mxu0 }
 0x193   : > { %8837 = vst [vmem:[#allocation70_spill] sm:$0xff] %v6458_v36  ;;  %v3336_v19 = vmax.f32 %v6420_v50, %v6458_v36  ;;  %v2933_v11 = vrot.slane %v2932_v20, 2  ;;  %v2950_v40 = vadd.f32 %v2949_v51, %v2684_v55  ;;  %v2501_v14 = vadd.f32 %v6130_v45, %v6382_v30  ;;  %v6478_v17 = vpop.f32.mrb[45].mxu1  ;;  %v6480_v50 = vpop.f32.mrb[46].mxu0 }
 0x194   : > { %v2945_v28 = vrot.slane %v2944_v33, 2  ;;  %v2939_v56 = vrot.slane %v2938_v24, 2  ;;  %v2503_v58 = vadd.f32 %v6130_v45, %v6385_v8  ;;  %v2502_v18 = vadd.f32 %v6130_v45, %v6387_v16  ;;  %8838 = vst [vmem:[#allocation71_spill] sm:$0xff] %v6480_v50  ;;  %v6484_v55 = vpop.f32.mrb[47].mxu0  ;;  %v6486_v53 = vpop.f32.mrb[46].mxu1 }
 0x195   : > { %v2934_v51 = vadd.f32 %v2933_v11, %v2932_v20  ;;  %v2951_v21 = vrot.slane %v2950_v40, 2  ;;  %v2591_v44 = vmax.f32 %v2501_v14, 0.0  ;;  %v2504_v30 = vadd.f32 %v6130_v45, %v6391_v47  ;;  %8839 = vst [vmem:[#allocation72_spill] sm:$0xff] %v6484_v55  ;;  %8840 = vst [vmem:[#allocation73_spill] sm:$0xff] %v6486_v53  ;;  %v6488_v26 = vpop.f32.mrb[47].mxu1 }
 0x196   : > { %v2946_v36 = vadd.f32 %v2945_v28, %v2944_v33  ;;  %v2940_v49 = vadd.f32 %v2939_v56, %v2938_v24  ;;  %v2593_v8 = vmax.f32 %v2503_v58, 0.0  ;;  %v2592_v0 = vmax.f32 %v2502_v18, 0.0  ;;  %8841 = vst [vmem:[#allocation74_spill] sm:$0xff] %v6488_v26 }
 0x197   : > { %v2935_v16 = vrot.slane %v2934_v51, 1  ;;  %v2952_v5 = vadd.f32 %v2951_v21, %v2950_v40  ;;  %v2685_v50 = vmul.f32 %v6132_v37, %v2591_v44  ;;  %v2594_v20 = vmax.f32 %v2504_v30, 0.0 }
 0x198   : > { %v2947_v11 = vrot.slane %v2946_v36, 1  ;;  %v2941_v14 = vrot.slane %v2940_v49, 1  ;;  %v2687_v62 = vmul.f32 %v6132_v37, %v2593_v8  ;;  %v2686_v47 = vmul.f32 %v6132_v37, %v2592_v0 }
 0x199   : > { %v6493_v55 = vadd.f32 %v2935_v16, %v2934_v51  ;;  %v2953_v53 = vrot.slane %v2952_v5, 1  ;;  %v2955_v33 = vrot.slane %v2685_v50, 4  ;;  %v2688_v24 = vmul.f32 %v6132_v37, %v2594_v20  ;;  %v6500_v18 = vpop.f32.mrb[48].mxu0 }
 0x19a   : > { %v6496_v28 = vadd.f32 %v2947_v11, %v2946_v36  ;;  %v6498_v56 = vadd.f32 %v2941_v14, %v2940_v49  ;;  %v2967_v40 = vrot.slane %v2687_v62, 4  ;;  %v2961_v58 = vrot.slane %v2686_v47, 4  ;;  %v6507_v30 = vpop.f32.mrb[48].mxu1  ;;  %v6509_v8 = vpop.f32.mrb[49].mxu0 }
 0x19b   : > { %8842 = vst [vmem:[#allocation75_spill] sm:$0xff] %v6493_v55  ;;  %v6503_v21 = vmax.f32 %v3291_v27, %v6493_v55  ;;  %v6505_v44 = vadd.f32 %v2953_v53, %v2952_v5  ;;  %v2956_v0 = vadd.f32 %v2955_v33, %v2685_v50  ;;  %v2973_v51 = vrot.slane %v2688_v24, 4  ;;  %v6517_v11 = vpop.f32.mrb[49].mxu1  ;;  %v6519_v27 = vpop.f32.mrb[50].mxu0 }
 0x19c   : > { %8843 = vst [vmem:[#allocation76_spill] sm:$0xff] %v6496_v28  ;;  %8844 = vst [vmem:[#allocation77_spill] sm:$0xff] %v6498_v56  ;;  %v6512_v36 = vmax.f32 %v3292_v35, %v6496_v28  ;;  %v6515_v49 = vmax.f32 %v3335_v10, %v6498_v56  ;;  %v2968_v16 = vadd.f32 %v2967_v40, %v2687_v62  ;;  %v6526_v33 = vpop.f32.mrb[51].mxu0  ;;  %v6528_v35 = vpop.f32.mrb[50].mxu1 }
 0x19d   : > { %8845 = vst [vmem:[#allocation78_spill] sm:$0xff] %v6505_v44  ;;  %v2962_v20 = vadd.f32 %v2961_v58, %v2686_v47  ;;  %8846 = vst [vmem:[#allocation79_spill] sm:$0xff] %v6519_v27  ;;  %v6522_v5 = vmax.f32 %v3336_v19, %v6505_v44  ;;  %v2957_v50 = vrot.slane %v2956_v0, 2  ;;  %v2974_v53 = vadd.f32 %v2973_v51, %v2688_v24  ;;  %v6534_v40 = vpop.f32.mrb[51].mxu1 }
 0x19e   : > { %v2505_v14 = vadd.f32 %v6130_v45, %v6428_v15  ;;  %8847 = vst [vmem:[#allocation80_spill] sm:$0xff] %v6526_v33  ;;  %8848 = vst [vmem:[#allocation81_spill] sm:$0xff] %v6528_v35  ;;  %v2969_v10 = vrot.slane %v2968_v16, 2  ;;  %v2507_v62 = vadd.f32 %v6130_v45, %v6432_v23  ;;  %v2506_v47 = vadd.f32 %v6130_v45, %v6434_v3 }
 0x19f   : > { %v2963_v26 = vrot.slane %v2962_v20, 2  ;;  %8849 = vst [vmem:[#allocation82_spill] sm:$0xff] %v6534_v40  ;;  %v2958_v19 = vadd.f32 %v2957_v50, %v2956_v0  ;;  %v2975_v58 = vrot.slane %v2974_v53, 2  ;;  %v2508_v15 = vadd.f32 %v6130_v45, %v6436_v13 }
 0x1a0   : > { %v2595_v24 = vmax.f32 %v2505_v14, 0.0  ;;  %v2970_v51 = vadd.f32 %v2969_v10, %v2968_v16  ;;  %v2597_v27 = vmax.f32 %v2507_v62, 0.0  ;;  %v2596_v35 = vmax.f32 %v2506_v47, 0.0 }
 0x1a1   : > { %v2964_v33 = vadd.f32 %v2963_v26, %v2962_v20  ;;  %v2959_v44 = vrot.slane %v2958_v19, 1  ;;  %v2976_v56 = vadd.f32 %v2975_v58, %v2974_v53  ;;  %v2598_v23 = vmax.f32 %v2508_v15, 0.0  ;;  %v6541_v50 = vpop.f32.mrb[52].mxu0 }
 0x1a2   : > { %v2689_v54 = vmul.f32 %v6132_v37, %v2595_v24  ;;  %v2971_v29 = vrot.slane %v2970_v51, 1  ;;  %v2691_v3 = vmul.f32 %v6132_v37, %v2597_v27  ;;  %v2690_v0 = vmul.f32 %v6132_v37, %v2596_v35  ;;  %v6546_v20 = vpop.f32.mrb[52].mxu1  ;;  %v6548_v53 = vpop.f32.mrb[53].mxu0 }
 0x1a3   : > { %v2965_v12 = vrot.slane %v2964_v33, 1  ;;  %v6543_v14 = vadd.f32 %v2959_v44, %v2958_v19  ;;  %v2977_v13 = vrot.slane %v2976_v56, 1  ;;  %v2692_v26 = vmul.f32 %v6132_v37, %v2598_v23  ;;  %v6554_v58 = vpop.f32.mrb[53].mxu1  ;;  %v6556_v35 = vpop.f32.mrb[54].mxu0 }
 0x1a4   : > { %v2979_v16 = vrot.slane %v2689_v54, 4  ;;  %v6550_v10 = vadd.f32 %v2971_v29, %v2970_v51  ;;  %v2991_v47 = vrot.slane %v2691_v3, 4  ;;  %v2985_v27 = vrot.slane %v2690_v0, 4  ;;  %8853 = vst [vmem:[#allocation86_spill] sm:$0xff] %v6556_v35  ;;  %v6562_v23 = vpop.f32.mrb[55].mxu0  ;;  %v6564_v40 = vpop.f32.mrb[54].mxu1 }
 0x1a5   : > { %8850 = vst [vmem:[#allocation83_spill] sm:$0xff] %v6543_v14  ;;  %v6552_v62 = vadd.f32 %v2965_v12, %v2964_v33  ;;  %v3295_v44 = vmax.f32 %v6503_v21, %v6543_v14  ;;  %v6560_v19 = vadd.f32 %v2977_v13, %v2976_v56  ;;  %v2997_v15 = vrot.slane %v2692_v26, 4  ;;  %8855 = vst [vmem:[#allocation88_spill] sm:$0xff] %v6562_v23  ;;  %v6570_v35 = vpop.f32.mrb[55].mxu1 }
 0x1a6   : > { %8851 = vst [vmem:[#allocation84_spill] sm:$0xff] %v6550_v10  ;;  %v2980_v24 = vadd.f32 %v2979_v16, %v2689_v54  ;;  %8856 = vst [vmem:[#allocation89_spill] sm:$0xff] %v6564_v40  ;;  %v3296_v12 = vmax.f32 %v6512_v36, %v6550_v10  ;;  %v2992_v33 = vadd.f32 %v2991_v47, %v2691_v3 }
 0x1a7   : > { %8852 = vst [vmem:[#allocation85_spill] sm:$0xff] %v6552_v62  ;;  %8854 = vst [vmem:[#allocation87_spill] sm:$0xff] %v6560_v19  ;;  %v3339_v29 = vmax.f32 %v6515_v49, %v6552_v62  ;;  %v2986_v51 = vadd.f32 %v2985_v27, %v2690_v0  ;;  %v3340_v56 = vmax.f32 %v6522_v5, %v6560_v19 }
 0x1a8   : > { %8857 = vst [vmem:[#allocation90_spill] sm:$0xff] %v6570_v35  ;;  %v2981_v21 = vrot.slane %v2980_v24, 2  ;;  %v2998_v54 = vadd.f32 %v2997_v15, %v2692_v26  ;;  %v2509_v13 = vadd.f32 %v6130_v45, %v6464_v38  ;;  %v2993_v16 = vrot.slane %v2992_v33, 2 }
 0x1a9   : > { %v2987_v23 = vrot.slane %v2986_v51, 2  ;;  %v2511_v36 = vadd.f32 %v6130_v45, %v6470_v39  ;;  %v2510_v49 = vadd.f32 %v6130_v45, %v6472_v48  ;;  %v2512_v27 = vadd.f32 %v6130_v45, %v6478_v17  ;;  %v6582_v40 = vpop.f32.mrb[56].mxu0 }
 0x1aa   : > { %v2982_v3 = vadd.f32 %v2981_v21, %v2980_v24  ;;  %v2999_v0 = vrot.slane %v2998_v54, 2  ;;  %v2599_v47 = vmax.f32 %v2509_v13, 0.0  ;;  %v2994_v5 = vadd.f32 %v2993_v16, %v2992_v33  ;;  %v6585_v32 = vpop.f32.mrb[56].mxu1  ;;  %v6587_v48 = vpop.f32.mrb[57].mxu0 }
 0x1ab   : > { %v2988_v35 = vadd.f32 %v2987_v23, %v2986_v51  ;;  %v2601_v26 = vmax.f32 %v2511_v36, 0.0  ;;  %v2600_v15 = vmax.f32 %v2510_v49, 0.0  ;;  %v2602_v39 = vmax.f32 %v2512_v27, 0.0  ;;  %v6591_v23 = vpop.f32.mrb[57].mxu1  ;;  %v6593_v33 = vpop.f32.mrb[58].mxu0 }
 0x1ac   : > { %v2983_v38 = vrot.slane %v2982_v3, 1  ;;  %v3000_v19 = vadd.f32 %v2999_v0, %v2998_v54  ;;  %v2693_v62 = vmul.f32 %v6132_v37, %v2599_v47  ;;  %v2995_v24 = vrot.slane %v2994_v5, 1  ;;  %8858 = vst [vmem:[#allocation91_spill] sm:$0xff] %v6593_v33  ;;  %v6598_v49 = vpop.f32.mrb[59].mxu0  ;;  %v6600_v0 = vpop.f32.mrb[58].mxu1 }
 0x1ad   : > { %v2989_v21 = vrot.slane %v2988_v35, 1  ;;  %v2695_v13 = vmul.f32 %v6132_v37, %v2601_v26  ;;  %v2694_v17 = vmul.f32 %v6132_v37, %v2600_v15  ;;  %v2696_v36 = vmul.f32 %v6132_v37, %v2602_v39  ;;  %8860 = vst [vmem:[#allocation93_spill] sm:$0xff] %v6598_v49  ;;  %8861 = vst [vmem:[#allocation94_spill] sm:$0xff] %v6600_v0  ;;  %v6606_v46 = vpop.f32.mrb[59].mxu1 }
 0x1ae   : > { %v6595_v51 = vadd.f32 %v2983_v38, %v2982_v3  ;;  %v3001_v54 = vrot.slane %v3000_v19, 1  ;;  %v3003_v16 = vrot.slane %v2693_v62, 4  ;;  %v6602_v47 = vadd.f32 %v2995_v24, %v2994_v5  ;;  %8864 = vst [vmem:[#allocation97_spill] sm:$0xff] %v6606_v46 }
 0x1af   : > { %v6604_v27 = vadd.f32 %v2989_v21, %v2988_v35  ;;  %v3015_v26 = vrot.slane %v2695_v13, 4  ;;  %v3009_v15 = vrot.slane %v2694_v17, 4  ;;  %v3021_v31 = vrot.slane %v2696_v36, 4 }
 0x1b0   : > { %8859 = vst [vmem:[#allocation92_spill] sm:$0xff] %v6595_v51  ;;  %8862 = vst [vmem:[#allocation95_spill] sm:$0xff] %v6602_v47  ;;  %v6609_v33 = vmax.f32 %v3295_v44, %v6595_v51  ;;  %v6611_v3 = vadd.f32 %v3001_v54, %v3000_v19  ;;  %v3004_v38 = vadd.f32 %v3003_v16, %v2693_v62 }
 0x1b1   : > { %8863 = vst [vmem:[#allocation96_spill] sm:$0xff] %v6604_v27  ;;  %v6614_v39 = vmax.f32 %v3296_v12, %v6602_v47  ;;  %v6617_v49 = vmax.f32 %v3339_v29, %v6604_v27  ;;  %v3016_v5 = vadd.f32 %v3015_v26, %v2695_v13  ;;  %v3010_v35 = vadd.f32 %v3009_v15, %v2694_v17  ;;  %v6628_v29 = vpop.f32.mrb[60].mxu0 }
 0x1b2   : > { %8865 = vst [vmem:[#allocation98_spill] sm:$0xff] %v6611_v3  ;;  %v6620_v24 = vmax.f32 %v3340_v56, %v6611_v3  ;;  %v3005_v21 = vrot.slane %v3004_v38, 2  ;;  %v3022_v46 = vadd.f32 %v3021_v31, %v2696_v36  ;;  %v2513_v44 = vadd.f32 %v6130_v45, %v6500_v18  ;;  %v6632_v31 = vpop.f32.mrb[60].mxu1  ;;  %v6634_v36 = vpop.f32.mrb[61].mxu0 }
 0x1b3   : > { %v3017_v19 = vrot.slane %v3016_v5, 2  ;;  %v3011_v54 = vrot.slane %v3010_v35, 2  ;;  %v2515_v62 = vadd.f32 %v6130_v45, %v6507_v30  ;;  %v2514_v12 = vadd.f32 %v6130_v45, %v6509_v8  ;;  %v6636_v30 = vpop.f32.mrb[61].mxu1  ;;  %v6638_v3 = vpop.f32.mrb[62].mxu0 }
 0x1b4   : > { %v3006_v13 = vadd.f32 %v3005_v21, %v3004_v38  ;;  %v3023_v17 = vrot.slane %v3022_v46, 2  ;;  %v2603_v16 = vmax.f32 %v2513_v44, 0.0  ;;  %v2516_v56 = vadd.f32 %v6130_v45, %v6517_v11  ;;  %8866 = vst [vmem:[#allocation99_spill] sm:$0xff] %v6638_v3  ;;  %v6641_v44 = vpop.f32.mrb[63].mxu0  ;;  %v6643_v11 = vpop.f32.mrb[62].mxu1 }
 0x1b5   : > { %v3018_v18 = vadd.f32 %v3017_v19, %v3016_v5  ;;  %v3012_v26 = vadd.f32 %v3011_v54, %v3010_v35  ;;  %v2605_v15 = vmax.f32 %v2515_v62, 0.0  ;;  %v2604_v0 = vmax.f32 %v2514_v12, 0.0  ;;  %8867 = vst [vmem:[#allocation100_spill] sm:$0xff] %v6641_v44  ;;  %8868 = vst [vmem:[#allocation101_spill] sm:$0xff] %v6643_v11  ;;  %v6647_v19 = vpop.f32.mrb[63].mxu1 }
 0x1b6   : > { %v3007_v8 = vrot.slane %v3006_v13, 1  ;;  %v3024_v27 = vadd.f32 %v3023_v17, %v3022_v46  ;;  %v2697_v38 = vmul.f32 %v6132_v37, %v2603_v16  ;;  %v2606_v21 = vmax.f32 %v2516_v56, 0.0  ;;  %8869 = vst [vmem:[#allocation102_spill] sm:$0xff] %v6647_v19 }
 0x1b7   : > { %v3019_v47 = vrot.slane %v3018_v18, 1  ;;  %v3013_v51 = vrot.slane %v3012_v26, 1  ;;  %v2699_v5 = vmul.f32 %v6132_v37, %v2605_v15  ;;  %v2698_v35 = vmul.f32 %v6132_v37, %v2604_v0 }
 0x1b8   : > { %v6649_v54 = vadd.f32 %v3007_v8, %v3006_v13  ;;  %v3025_v62 = vrot.slane %v3024_v27, 1  ;;  %v3027_v12 = vrot.slane %v2697_v38, 4  ;;  %v2700_v46 = vmul.f32 %v6132_v37, %v2606_v21 }
 0x1b9   : > { %v6652_v17 = vadd.f32 %v3019_v47, %v3018_v18  ;;  %v6654_v16 = vadd.f32 %v3013_v51, %v3012_v26  ;;  %v3039_v56 = vrot.slane %v2699_v5, 4  ;;  %v3033_v44 = vrot.slane %v2698_v35, 4  ;;  %v6664_v18 = vpop.f32.mrb[64].mxu0 }
 0x1ba   : > { %8870 = vst [vmem:[#allocation103_spill] sm:$0xff] %v6649_v54  ;;  %v3299_v11 = vmax.f32 %v6609_v33, %v6649_v54  ;;  %v6658_v15 = vadd.f32 %v3025_v62, %v3024_v27  ;;  %v3028_v0 = vadd.f32 %v3027_v12, %v2697_v38  ;;  %v3045_v3 = vrot.slane %v2700_v46, 4  ;;  %v6670_v27 = vpop.f32.mrb[64].mxu1  ;;  %v6672_v38 = vpop.f32.mrb[65].mxu0 }
 0x1bb   : > { %8871 = vst [vmem:[#allocation104_spill] sm:$0xff] %v6652_v17  ;;  %8872 = vst [vmem:[#allocation105_spill] sm:$0xff] %v6654_v16  ;;  %v3300_v13 = vmax.f32 %v6614_v39, %v6652_v17  ;;  %v3343_v8 = vmax.f32 %v6617_v49, %v6654_v16  ;;  %v3040_v21 = vadd.f32 %v3039_v56, %v2699_v5  ;;  %v6678_v5 = vpop.f32.mrb[65].mxu1 }
 0x1bc   : > { %8873 = vst [vmem:[#allocation106_spill] sm:$0xff] %v6658_v15  ;;  %v3034_v47 = vadd.f32 %v3033_v44, %v2698_v35  ;;  %v3344_v51 = vmax.f32 %v6620_v24, %v6658_v15  ;;  %v3029_v26 = vrot.slane %v3028_v0, 2  ;;  %v3046_v19 = vadd.f32 %v3045_v3, %v2700_v46  ;;  %v6680_v24 = vpop.f32.mrb[66].mxu0  ;;  %v6686_v56 = vpop.f32.mrb[66].mxu1 }
 0x1bd   : > { %v2517_v33 = vadd.f32 %v6130_v45, %v6541_v50  ;;  %v3041_v39 = vrot.slane %v3040_v21, 2  ;;  %v2519_v49 = vadd.f32 %v6130_v45, %v6546_v20  ;;  %v2518_v44 = vadd.f32 %v6130_v45, %v6548_v53  ;;  %8874 = vst [vmem:[#allocation107_spill] sm:$0xff] %v6680_v24  ;;  %v6684_v46 = vpop.f32.mrb[67].mxu0  ;;  %8876 = vst [vmem:[#allocation109_spill] sm:$0xff] %v6686_v56  ;;  %v6688_v54 = vpop.f32.mrb[67].mxu1 }
 0x1be   : > { %v3035_v62 = vrot.slane %v3034_v47, 2  ;;  %v3030_v3 = vadd.f32 %v3029_v26, %v3028_v0  ;;  %v3047_v35 = vrot.slane %v3046_v19, 2  ;;  %v2520_v50 = vadd.f32 %v6130_v45, %v6554_v58  ;;  %8875 = vst [vmem:[#allocation108_spill] sm:$0xff] %v6684_v46  ;;  %8877 = vst [vmem:[#allocation110_spill] sm:$0xff] %v6688_v54 }
 0x1bf   : > { %v2607_v12 = vmax.f32 %v2517_v33, 0.0  ;;  %v3042_v15 = vadd.f32 %v3041_v39, %v3040_v21  ;;  %v2609_v20 = vmax.f32 %v2519_v49, 0.0  ;;  %v2608_v17 = vmax.f32 %v2518_v44, 0.0 }
 0x1c0   : > { %v3036_v16 = vadd.f32 %v3035_v62, %v3034_v47  ;;  %v3031_v53 = vrot.slane %v3030_v3, 1  ;;  %v3048_v9 = vadd.f32 %v3047_v35, %v3046_v19  ;;  %v2610_v0 = vmax.f32 %v2520_v50, 0.0 }
 0x1c1   : > { %v2701_v24 = vmul.f32 %v6132_v37, %v2607_v12  ;;  %v3043_v26 = vrot.slane %v3042_v15, 1  ;;  %v2703_v52 = vmul.f32 %v6132_v37, %v2609_v20  ;;  %v2702_v58 = vmul.f32 %v6132_v37, %v2608_v17  ;;  %v6700_v44 = vpop.f32.mrb[68].mxu0 }
 0x1c2   : > { %v3037_v33 = vrot.slane %v3036_v16, 1  ;;  %v6693_v46 = vadd.f32 %v3031_v53, %v3030_v3  ;;  %v3049_v56 = vrot.slane %v3048_v9, 1  ;;  %v2704_v47 = vmul.f32 %v6132_v37, %v2610_v0  ;;  %v6707_v50 = vpop.f32.mrb[68].mxu1  ;;  %v6709_v20 = vpop.f32.mrb[69].mxu0 }
 0x1c3   : > { %v3051_v21 = vrot.slane %v2701_v24, 4  ;;  %v6696_v39 = vadd.f32 %v3043_v26, %v3042_v15  ;;  %v3063_v19 = vrot.slane %v2703_v52, 4  ;;  %v3057_v49 = vrot.slane %v2702_v58, 4  ;;  %v6717_v26 = vpop.f32.mrb[69].mxu1 }
 0x1c4   : > { %8878 = vst [vmem:[#allocation111_spill] sm:$0xff] %v6693_v46  ;;  %v6698_v62 = vadd.f32 %v3037_v33, %v3036_v16  ;;  %v6703_v35 = vmax.f32 %v3299_v11, %v6693_v46  ;;  %v6705_v12 = vadd.f32 %v3049_v56, %v3048_v9  ;;  %v3069_v3 = vrot.slane %v2704_v47, 4  ;;  %v6719_v11 = vpop.f32.mrb[70].mxu0 }
 0x1c5   : > { %8879 = vst [vmem:[#allocation112_spill] sm:$0xff] %v6696_v39  ;;  %v3052_v17 = vadd.f32 %v3051_v21, %v2701_v24  ;;  %v6712_v15 = vmax.f32 %v3300_v13, %v6696_v39  ;;  %v3064_v53 = vadd.f32 %v3063_v19, %v2703_v52  ;;  %v3058_v0 = vadd.f32 %v3057_v49, %v2702_v58  ;;  %v6726_v21 = vpop.f32.mrb[71].mxu0  ;;  %v6728_v13 = vpop.f32.mrb[70].mxu1 }
 0x1c6   : > { %8880 = vst [vmem:[#allocation113_spill] sm:$0xff] %v6698_v62  ;;  %8881 = vst [vmem:[#allocation114_spill] sm:$0xff] %v6705_v12  ;;  %v6715_v16 = vmax.f32 %v3343_v8, %v6698_v62  ;;  %v6722_v9 = vmax.f32 %v3344_v51, %v6705_v12  ;;  %v3070_v56 = vadd.f32 %v3069_v3, %v2704_v47  ;;  %v6734_v19 = vpop.f32.mrb[71].mxu1 }
 0x1c7   : > { %8882 = vst [vmem:[#allocation115_spill] sm:$0xff] %v6719_v11  ;;  %v3053_v24 = vrot.slane %v3052_v17, 2  ;;  %v2521_v33 = vadd.f32 %v6130_v45, %v6582_v40  ;;  %8883 = vst [vmem:[#allocation116_spill] sm:$0xff] %v6726_v21  ;;  %v3065_v8 = vrot.slane %v3064_v53, 2  ;;  %v3059_v54 = vrot.slane %v3058_v0, 2 }
 0x1c8   : > { %8884 = vst [vmem:[#allocation117_spill] sm:$0xff] %v6728_v13  ;;  %v2523_v52 = vadd.f32 %v6130_v45, %v6585_v32  ;;  %v2522_v58 = vadd.f32 %v6130_v45, %v6587_v48  ;;  %8885 = vst [vmem:[#allocation118_spill] sm:$0xff] %v6734_v19  ;;  %v3071_v49 = vrot.slane %v3070_v56, 2  ;;  %v2524_v40 = vadd.f32 %v6130_v45, %v6591_v23 }
 0x1c9   : > { %v3054_v51 = vadd.f32 %v3053_v24, %v3052_v17  ;;  %v2611_v47 = vmax.f32 %v2521_v33, 0.0  ;;  %v3066_v3 = vadd.f32 %v3065_v8, %v3064_v53  ;;  %v3060_v21 = vadd.f32 %v3059_v54, %v3058_v0  ;;  %v6741_v24 = vpop.f32.mrb[72].mxu0 }
 0x1ca   : > { %v2613_v11 = vmax.f32 %v2523_v52, 0.0  ;;  %v2612_v13 = vmax.f32 %v2522_v58, 0.0  ;;  %v3072_v62 = vadd.f32 %v3071_v49, %v3070_v56  ;;  %v2614_v32 = vmax.f32 %v2524_v40, 0.0  ;;  %v6746_v0 = vpop.f32.mrb[72].mxu1  ;;  %v6748_v56 = vpop.f32.mrb[73].mxu0 }
 0x1cb   : > { %v3055_v12 = vrot.slane %v3054_v51, 1  ;;  %v2705_v39 = vmul.f32 %v6132_v37, %v2611_v47  ;;  %v3067_v46 = vrot.slane %v3066_v3, 1  ;;  %v3061_v10 = vrot.slane %v3060_v21, 1  ;;  %v6754_v49 = vpop.f32.mrb[73].mxu1 }
 0x1cc   : > { %v2707_v48 = vmul.f32 %v6132_v37, %v2613_v11  ;;  %v2706_v17 = vmul.f32 %v6132_v37, %v2612_v13  ;;  %v3073_v23 = vrot.slane %v3072_v62, 1  ;;  %v2708_v54 = vmul.f32 %v6132_v37, %v2614_v32  ;;  %v6756_v13 = vpop.f32.mrb[74].mxu0  ;;  %v6764_v19 = vpop.f32.mrb[74].mxu1 }
 0x1cd   : > { %v6743_v33 = vadd.f32 %v3055_v12, %v3054_v51  ;;  %v3075_v53 = vrot.slane %v2705_v39, 4  ;;  %v6750_v8 = vadd.f32 %v3067_v46, %v3066_v3  ;;  %v6752_v52 = vadd.f32 %v3061_v10, %v3060_v21  ;;  %8889 = vst [vmem:[#allocation122_spill] sm:$0xff] %v6756_v13  ;;  %v6762_v32 = vpop.f32.mrb[75].mxu0  ;;  %8892 = vst [vmem:[#allocation125_spill] sm:$0xff] %v6764_v19  ;;  %v6770_v13 = vpop.f32.mrb[75].mxu1 }
 0x1ce   : > { %v3087_v58 = vrot.slane %v2707_v48, 4  ;;  %v3081_v11 = vrot.slane %v2706_v17, 4  ;;  %v6760_v51 = vadd.f32 %v3073_v23, %v3072_v62  ;;  %v3093_v40 = vrot.slane %v2708_v54, 4  ;;  %8891 = vst [vmem:[#allocation124_spill] sm:$0xff] %v6762_v32  ;;  %8893 = vst [vmem:[#allocation126_spill] sm:$0xff] %v6770_v13 }
 0x1cf   : > { %8886 = vst [vmem:[#allocation119_spill] sm:$0xff] %v6743_v33  ;;  %8887 = vst [vmem:[#allocation120_spill] sm:$0xff] %v6750_v8  ;;  %v3303_v12 = vmax.f32 %v6703_v35, %v6743_v33  ;;  %v3076_v47 = vadd.f32 %v3075_v53, %v2705_v39  ;;  %v3304_v10 = vmax.f32 %v6712_v15, %v6750_v8 }
 0x1d0   : > { %8888 = vst [vmem:[#allocation121_spill] sm:$0xff] %v6752_v52  ;;  %8890 = vst [vmem:[#allocation123_spill] sm:$0xff] %v6760_v51  ;;  %v3347_v46 = vmax.f32 %v6715_v16, %v6752_v52  ;;  %v3088_v21 = vadd.f32 %v3087_v58, %v2707_v48  ;;  %v3082_v3 = vadd.f32 %v3081_v11, %v2706_v17 }
 0x1d1   : > { %v3348_v62 = vmax.f32 %v6722_v9, %v6760_v51  ;;  %v3077_v35 = vrot.slane %v3076_v47, 2  ;;  %v3094_v39 = vadd.f32 %v3093_v40, %v2708_v54  ;;  %v2525_v23 = vadd.f32 %v6130_v45, %v6628_v29  ;;  %v6782_v19 = vpop.f32.mrb[76].mxu0 }
 0x1d2   : > { %v3089_v53 = vrot.slane %v3088_v21, 2  ;;  %v3083_v32 = vrot.slane %v3082_v3, 2  ;;  %v2527_v15 = vadd.f32 %v6130_v45, %v6632_v31  ;;  %v2526_v16 = vadd.f32 %v6130_v45, %v6634_v36  ;;  %v6785_v8 = vpop.f32.mrb[76].mxu1  ;;  %v6787_v36 = vpop.f32.mrb[77].mxu0 }
 0x1d3   : > { %v3078_v48 = vadd.f32 %v3077_v35, %v3076_v47  ;;  %v3095_v17 = vrot.slane %v3094_v39, 2  ;;  %v2615_v58 = vmax.f32 %v2525_v23, 0.0  ;;  %v2528_v11 = vadd.f32 %v6130_v45, %v6636_v30 }
 0x1d4   : > { %v3090_v9 = vadd.f32 %v3089_v53, %v3088_v21  ;;  %v3084_v13 = vadd.f32 %v3083_v32, %v3082_v3  ;;  %v2617_v54 = vmax.f32 %v2527_v15, 0.0  ;;  %v2616_v40 = vmax.f32 %v2526_v16, 0.0  ;;  %v6791_v32 = vpop.f32.mrb[77].mxu1  ;;  %v6793_v21 = vpop.f32.mrb[78].mxu0 }
 0x1d5   : > { %v3079_v29 = vrot.slane %v3078_v48, 1  ;;  %v3096_v51 = vadd.f32 %v3095_v17, %v3094_v39  ;;  %v2709_v52 = vmul.f32 %v6132_v37, %v2615_v58  ;;  %v2618_v31 = vmax.f32 %v2528_v11, 0.0  ;;  %8894 = vst [vmem:[#allocation127_spill] sm:$0xff] %v6793_v21  ;;  %v6798_v16 = vpop.f32.mrb[79].mxu0  ;;  %v6800_v17 = vpop.f32.mrb[78].mxu1 }
 0x1d6   : > { %v3091_v47 = vrot.slane %v3090_v9, 1  ;;  %v3085_v35 = vrot.slane %v3084_v13, 1  ;;  %v2711_v23 = vmul.f32 %v6132_v37, %v2617_v54  ;;  %v2710_v30 = vmul.f32 %v6132_v37, %v2616_v40  ;;  %8896 = vst [vmem:[#allocation129_spill] sm:$0xff] %v6798_v16  ;;  %8897 = vst [vmem:[#allocation130_spill] sm:$0xff] %v6800_v17  ;;  %v6806_v33 = vpop.f32.mrb[79].mxu1 }
 0x1d7   : > { %v6795_v3 = vadd.f32 %v3079_v29, %v3078_v48  ;;  %v3097_v39 = vrot.slane %v3096_v51, 1  ;;  %v3099_v53 = vrot.slane %v2709_v52, 4  ;;  %v2712_v15 = vmul.f32 %v6132_v37, %v2618_v31  ;;  %8900 = vst [vmem:[#allocation133_spill] sm:$0xff] %v6806_v33 }
 0x1d8   : > { %v6802_v58 = vadd.f32 %v3091_v47, %v3090_v9  ;;  %v6804_v11 = vadd.f32 %v3085_v35, %v3084_v13  ;;  %v3111_v54 = vrot.slane %v2711_v23, 4  ;;  %v3105_v40 = vrot.slane %v2710_v30, 4 }
 0x1d9   : > { %8895 = vst [vmem:[#allocation128_spill] sm:$0xff] %v6795_v3  ;;  %v6809_v21 = vmax.f32 %v3303_v12, %v6795_v3  ;;  %v6811_v48 = vadd.f32 %v3097_v39, %v3096_v51  ;;  %v3100_v29 = vadd.f32 %v3099_v53, %v2709_v52  ;;  %v3117_v14 = vrot.slane %v2712_v15, 4 }
 0x1da   : > { %8898 = vst [vmem:[#allocation131_spill] sm:$0xff] %v6802_v58  ;;  %8899 = vst [vmem:[#allocation132_spill] sm:$0xff] %v6804_v11  ;;  %v6814_v31 = vmax.f32 %v3304_v10, %v6802_v58  ;;  %v6817_v16 = vmax.f32 %v3347_v46, %v6804_v11  ;;  %v3112_v9 = vadd.f32 %v3111_v54, %v2711_v23  ;;  %v6828_v46 = vpop.f32.mrb[80].mxu0 }
 0x1db   : > { %8901 = vst [vmem:[#allocation134_spill] sm:$0xff] %v6811_v48  ;;  %v3106_v13 = vadd.f32 %v3105_v40, %v2710_v30  ;;  %v6820_v47 = vmax.f32 %v3348_v62, %v6811_v48  ;;  %v3101_v35 = vrot.slane %v3100_v29, 2  ;;  %v3118_v33 = vadd.f32 %v3117_v14, %v2712_v15  ;;  %v6832_v14 = vpop.f32.mrb[80].mxu1  ;;  %v6834_v15 = vpop.f32.mrb[81].mxu0 }
 0x1dc   : > { %v2529_v12 = vadd.f32 %v6130_v45, %v6664_v18  ;;  %v3113_v51 = vrot.slane %v3112_v9, 2  ;;  %v2531_v52 = vadd.f32 %v6130_v45, %v6670_v27  ;;  %v2530_v10 = vadd.f32 %v6130_v45, %v6672_v38  ;;  %v6836_v27 = vpop.f32.mrb[81].mxu1  ;;  %v6838_v48 = vpop.f32.mrb[82].mxu0 }
 0x1dd   : > { %v3107_v39 = vrot.slane %v3106_v13, 2  ;;  %v3102_v23 = vadd.f32 %v3101_v35, %v3100_v29  ;;  %v3119_v30 = vrot.slane %v3118_v33, 2  ;;  %v2532_v62 = vadd.f32 %v6130_v45, %v6678_v5  ;;  %8902 = vst [vmem:[#allocation135_spill] sm:$0xff] %v6838_v48  ;;  %v6843_v5 = vpop.f32.mrb[82].mxu1 }
 0x1de   : > { %v2619_v53 = vmax.f32 %v2529_v12, 0.0  ;;  %v3114_v18 = vadd.f32 %v3113_v51, %v3112_v9  ;;  %v2621_v40 = vmax.f32 %v2531_v52, 0.0  ;;  %v2620_v17 = vmax.f32 %v2530_v10, 0.0  ;;  %v6841_v12 = vpop.f32.mrb[83].mxu0  ;;  %8904 = vst [vmem:[#allocation137_spill] sm:$0xff] %v6843_v5  ;;  %v6847_v51 = vpop.f32.mrb[83].mxu1 }
 0x1df   : > { %v3108_v54 = vadd.f32 %v3107_v39, %v3106_v13  ;;  %v3103_v38 = vrot.slane %v3102_v23, 1  ;;  %v3120_v11 = vadd.f32 %v3119_v30, %v3118_v33  ;;  %v2622_v35 = vmax.f32 %v2532_v62, 0.0  ;;  %8903 = vst [vmem:[#allocation136_spill] sm:$0xff] %v6841_v12  ;;  %8905 = vst [vmem:[#allocation138_spill] sm:$0xff] %v6847_v51 }
 0x1e0   : > { %v2713_v29 = vmul.f32 %v6132_v37, %v2619_v53  ;;  %v3115_v58 = vrot.slane %v3114_v18, 1  ;;  %v2715_v9 = vmul.f32 %v6132_v37, %v2621_v40  ;;  %v2714_v13 = vmul.f32 %v6132_v37, %v2620_v17 }
 0x1e1   : > { %v3109_v3 = vrot.slane %v3108_v54, 1  ;;  %v6849_v39 = vadd.f32 %v3103_v38, %v3102_v23  ;;  %v3121_v52 = vrot.slane %v3120_v11, 1  ;;  %v2716_v33 = vmul.f32 %v6132_v37, %v2622_v35 }
 0x1e2   : > { %v3123_v10 = vrot.slane %v2713_v29, 4  ;;  %v6852_v30 = vadd.f32 %v3115_v58, %v3114_v18  ;;  %v3135_v62 = vrot.slane %v2715_v9, 4  ;;  %v3129_v12 = vrot.slane %v2714_v13, 4  ;;  %v6864_v18 = vpop.f32.mrb[84].mxu0 }
 0x1e3   : > { %8906 = vst [vmem:[#allocation139_spill] sm:$0xff] %v6849_v39  ;;  %v6854_v53 = vadd.f32 %v3109_v3, %v3108_v54  ;;  %v3307_v5 = vmax.f32 %v6809_v21, %v6849_v39  ;;  %v6858_v40 = vadd.f32 %v3121_v52, %v3120_v11  ;;  %v3141_v48 = vrot.slane %v2716_v33, 4  ;;  %v6870_v11 = vpop.f32.mrb[84].mxu1 }
 0x1e4   : > { %8907 = vst [vmem:[#allocation140_spill] sm:$0xff] %v6852_v30  ;;  %v3124_v17 = vadd.f32 %v3123_v10, %v2713_v29  ;;  %v3308_v23 = vmax.f32 %v6814_v31, %v6852_v30  ;;  %v3136_v35 = vadd.f32 %v3135_v62, %v2715_v9  ;;  %v3130_v58 = vadd.f32 %v3129_v12, %v2714_v13  ;;  %v6872_v29 = vpop.f32.mrb[85].mxu0  ;;  %v6878_v9 = vpop.f32.mrb[85].mxu1 }
 0x1e5   : > { %8908 = vst [vmem:[#allocation141_spill] sm:$0xff] %v6854_v53  ;;  %8909 = vst [vmem:[#allocation142_spill] sm:$0xff] %v6858_v40  ;;  %v3351_v38 = vmax.f32 %v6817_v16, %v6854_v53  ;;  %v3352_v3 = vmax.f32 %v6820_v47, %v6858_v40  ;;  %v3142_v51 = vadd.f32 %v3141_v48, %v2716_v33  ;;  %v6880_v47 = vpop.f32.mrb[86].mxu0  ;;  %v6886_v62 = vpop.f32.mrb[86].mxu1 }
 0x1e6   : > { %v3125_v54 = vrot.slane %v3124_v17, 2  ;;  %v2533_v21 = vadd.f32 %v6130_v45, %v6700_v44  ;;  %v3137_v31 = vrot.slane %v3136_v35, 2  ;;  %v3131_v52 = vrot.slane %v3130_v58, 2  ;;  %8910 = vst [vmem:[#allocation143_spill] sm:$0xff] %v6880_v47  ;;  %v6884_v33 = vpop.f32.mrb[87].mxu0  ;;  %8912 = vst [vmem:[#allocation145_spill] sm:$0xff] %v6886_v62 }
 0x1e7   : > { %v2535_v16 = vadd.f32 %v6130_v45, %v6707_v50  ;;  %v2534_v12 = vadd.f32 %v6130_v45, %v6709_v20  ;;  %v3143_v13 = vrot.slane %v3142_v51, 2  ;;  %v2536_v44 = vadd.f32 %v6130_v45, %v6717_v26  ;;  %8911 = vst [vmem:[#allocation144_spill] sm:$0xff] %v6884_v33  ;;  %v6888_v39 = vpop.f32.mrb[87].mxu1 }
 0x1e8   : > { %v3126_v48 = vadd.f32 %v3125_v54, %v3124_v17  ;;  %v2623_v10 = vmax.f32 %v2533_v21, 0.0  ;;  %v3138_v40 = vadd.f32 %v3137_v31, %v3136_v35  ;;  %v3132_v53 = vadd.f32 %v3131_v52, %v3130_v58  ;;  %8913 = vst [vmem:[#allocation146_spill] sm:$0xff] %v6888_v39 }
 0x1e9   : > { %v2625_v50 = vmax.f32 %v2535_v16, 0.0  ;;  %v2624_v30 = vmax.f32 %v2534_v12, 0.0  ;;  %v3144_v28 = vadd.f32 %v3143_v13, %v3142_v51  ;;  %v2626_v17 = vmax.f32 %v2536_v44, 0.0  ;;  %v6900_v12 = vpop.f32.mrb[88].mxu0 }
 0x1ea   : > { %v3127_v20 = vrot.slane %v3126_v48, 1  ;;  %v2717_v47 = vmul.f32 %v6132_v37, %v2623_v10  ;;  %v3139_v54 = vrot.slane %v3138_v40, 1  ;;  %v3133_v21 = vrot.slane %v3132_v53, 1  ;;  %v6907_v44 = vpop.f32.mrb[89].mxu0 }
 0x1eb   : > { %v2719_v55 = vmul.f32 %v6132_v37, %v2625_v50  ;;  %v2718_v26 = vmul.f32 %v6132_v37, %v2624_v30  ;;  %v3145_v62 = vrot.slane %v3144_v28, 1  ;;  %v2720_v58 = vmul.f32 %v6132_v37, %v2626_v17 }
 0x1ec   : > { %v6893_v33 = vadd.f32 %v3127_v20, %v3126_v48  ;;  %v3147_v35 = vrot.slane %v2717_v47, 4  ;;  %v6896_v31 = vadd.f32 %v3139_v54, %v3138_v40  ;;  %v6898_v52 = vadd.f32 %v3133_v21, %v3132_v53 }
 0x1ed   : > { %v3159_v51 = vrot.slane %v2719_v55, 4  ;;  %v3153_v16 = vrot.slane %v2718_v26, 4  ;;  %v6905_v10 = vadd.f32 %v3145_v62, %v3144_v28  ;;  %v3165_v48 = vrot.slane %v2720_v58, 4 }
 0x1ee   : > { %8914 = vst [vmem:[#allocation147_spill] sm:$0xff] %v6896_v31  ;;  %8915 = vst [vmem:[#allocation148_spill] sm:$0xff] %v6898_v52  ;;  %v6903_v13 = vmax.f32 %v3307_v5, %v6893_v33  ;;  %v3148_v30 = vadd.f32 %v3147_v35, %v2717_v47  ;;  %v6910_v50 = vmax.f32 %v3308_v23, %v6896_v31 }
 0x1ef   : > { %8916 = vst [vmem:[#allocation149_spill] sm:$0xff] %v6905_v10  ;;  %v6913_v40 = vmax.f32 %v3351_v38, %v6898_v52  ;;  %v3160_v53 = vadd.f32 %v3159_v51, %v2719_v55  ;;  %v3154_v20 = vadd.f32 %v3153_v16, %v2718_v26  ;;  %v6916_v17 = vmax.f32 %v3352_v3, %v6905_v10 }
 0x1f0   : > { %v3149_v54 = vrot.slane %v3148_v30, 2  ;;  %v3166_v5 = vadd.f32 %v3165_v48, %v2720_v58  ;;  %v2537_v28 = vadd.f32 %v6130_v45, %v6741_v24  ;;  %v2539_v21 = vadd.f32 %v6130_v45, %v6746_v0 }
 0x1f1   : > { %v3161_v47 = vrot.slane %v3160_v53, 2  ;;  %v3155_v62 = vrot.slane %v3154_v20, 2  ;;  %v2538_v23 = vadd.f32 %v6130_v45, %v6748_v56  ;;  %v2540_v3 = vadd.f32 %v6130_v45, %v6754_v49 }
 0x1f2   : > { %v3150_v38 = vadd.f32 %v3149_v54, %v3148_v30  ;;  %v3167_v35 = vrot.slane %v3166_v5, 2  ;;  %v2627_v55 = vmax.f32 %v2537_v28, 0.0  ;;  %v2629_v58 = vmax.f32 %v2539_v21, 0.0 }
 0x1f3   : > { %v3162_v26 = vadd.f32 %v3161_v47, %v3160_v53  ;;  %v3156_v51 = vadd.f32 %v3155_v62, %v3154_v20  ;;  %v2628_v16 = vmax.f32 %v2538_v23, 0.0  ;;  %v2630_v10 = vmax.f32 %v2540_v3, 0.0 }
 0x1f4   : > { %v3151_v48 = vrot.slane %v3150_v38, 1  ;;  %v3168_v24 = vadd.f32 %v3167_v35, %v3166_v5  ;;  %v2721_v39 = vmul.f32 %v6132_v37, %v2627_v55  ;;  %v2723_v31 = vmul.f32 %v6132_v37, %v2629_v58  ;;  %v6948_v58 = vpop.f32.mrb[90].mxu0 }
 0x1f5   : > { %v3163_v52 = vrot.slane %v3162_v26, 1  ;;  %v3157_v0 = vrot.slane %v3156_v51, 1  ;;  %v2722_v56 = vmul.f32 %v6132_v37, %v2628_v16  ;;  %v2724_v49 = vmul.f32 %v6132_v37, %v2630_v10  ;;  %8917 = vst [vmem:[#allocation150_spill] sm:$0xff] %v6948_v58 }
 0x1f6   : > { %v6929_v30 = vadd.f32 %v3151_v48, %v3150_v38  ;;  %v3169_v54 = vrot.slane %v3168_v24, 1  ;;  %v3171_v28 = vrot.slane %v2721_v39, 4  ;;  %v3183_v5 = vrot.slane %v2723_v31, 4 }
 0x1f7   : > { %v6932_v53 = vadd.f32 %v3163_v52, %v3162_v26  ;;  %v6934_v20 = vadd.f32 %v3157_v0, %v3156_v51  ;;  %v3177_v47 = vrot.slane %v2722_v56, 4  ;;  %v3189_v35 = vrot.slane %v2724_v49, 4 }
 0x1f8   : > { %v3311_v62 = vmax.f32 %v6903_v13, %v6929_v30  ;;  %v6938_v21 = vadd.f32 %v3169_v54, %v3168_v24  ;;  %v3172_v23 = vadd.f32 %v3171_v28, %v2721_v39  ;;  %v3184_v10 = vadd.f32 %v3183_v5, %v2723_v31  ;;  %v6954_v31 = vpop.f32.mrb[91].mxu0 }
 0x1f9   : > { %v3312_v38 = vmax.f32 %v6910_v50, %v6932_v53  ;;  %v3355_v55 = vmax.f32 %v6913_v40, %v6934_v20  ;;  %v3178_v52 = vadd.f32 %v3177_v47, %v2722_v56  ;;  %v3190_v51 = vadd.f32 %v3189_v35, %v2724_v49  ;;  %8918 = vst [vmem:[#allocation151_spill] sm:$0xff] %v6954_v31 }
 0x1fa   : > { %v3356_v3 = vmax.f32 %v6916_v17, %v6938_v21  ;;  %v3173_v26 = vrot.slane %v3172_v23, 2  ;;  %v2541_v13 = vadd.f32 %v6130_v45, %v6782_v19  ;;  %v3185_v39 = vrot.slane %v3184_v10, 2 }
 0x1fb   : > { %v3179_v16 = vrot.slane %v3178_v52, 2  ;;  %v2543_v50 = vadd.f32 %v6130_v45, %v6785_v8  ;;  %v2542_v40 = vadd.f32 %v6130_v45, %v6787_v36  ;;  %v3191_v24 = vrot.slane %v3190_v51, 2 }
 0x1fc   : > { %v3174_v48 = vadd.f32 %v3173_v26, %v3172_v23  ;;  %v2631_v17 = vmax.f32 %v2541_v13, 0.0  ;;  %v2544_v0 = vadd.f32 %v6130_v45, %v6791_v32  ;;  %v3186_v56 = vadd.f32 %v3185_v39, %v3184_v10 }
 0x1fd   : > { %v3180_v19 = vadd.f32 %v3179_v16, %v3178_v52  ;;  %v2633_v54 = vmax.f32 %v2543_v50, 0.0  ;;  %v2632_v28 = vmax.f32 %v2542_v40, 0.0  ;;  %v3192_v5 = vadd.f32 %v3191_v24, %v3190_v51 }
 0x1fe   : > { %v3175_v49 = vrot.slane %v3174_v48, 1  ;;  %v2725_v47 = vmul.f32 %v6132_v37, %v2631_v17  ;;  %v2634_v8 = vmax.f32 %v2544_v0, 0.0  ;;  %v3187_v35 = vrot.slane %v3186_v56, 1 }
 0x1ff   : > { %v3181_v58 = vrot.slane %v3180_v19, 1  ;;  %v2727_v36 = vmul.f32 %v6132_v37, %v2633_v54  ;;  %v2726_v23 = vmul.f32 %v6132_v37, %v2632_v28  ;;  %v3193_v13 = vrot.slane %v3192_v5, 1 }
 0x200   : > { %v6961_v26 = vadd.f32 %v3175_v49, %v3174_v48  ;;  %v3195_v31 = vrot.slane %v2725_v47, 4  ;;  %v2728_v32 = vmul.f32 %v6132_v37, %v2634_v8  ;;  %v6964_v10 = vadd.f32 %v3187_v35, %v3186_v56 }
 0x201   : > { %v6966_v52 = vadd.f32 %v3181_v58, %v3180_v19  ;;  %v3207_v51 = vrot.slane %v2727_v36, 4  ;;  %v3201_v39 = vrot.slane %v2726_v23, 4  ;;  %v6971_v50 = vadd.f32 %v3193_v13, %v3192_v5 }
 0x202   : > { %v6969_v16 = vmax.f32 %v3311_v62, %v6961_v26  ;;  %v3196_v40 = vadd.f32 %v3195_v31, %v2725_v47  ;;  %v3213_v24 = vrot.slane %v2728_v32, 4  ;;  %v6974_v48 = vmax.f32 %v3312_v38, %v6964_v10 }
 0x203   : > { %8919 = vst [vmem:[#allocation152_spill] sm:$0xff] %v6971_v50  ;;  %v6977_v17 = vmax.f32 %v3355_v55, %v6966_v52  ;;  %v3208_v0 = vadd.f32 %v3207_v51, %v2727_v36  ;;  %v3202_v56 = vadd.f32 %v3201_v39, %v2726_v23  ;;  %v6980_v58 = vmax.f32 %v3356_v3, %v6971_v50 }
 0x204   : > { %v3197_v19 = vrot.slane %v3196_v40, 2  ;;  %v3214_v54 = vadd.f32 %v3213_v24, %v2728_v32  ;;  %v2545_v62 = vadd.f32 %v6130_v45, %v6828_v46  ;;  %v2547_v31 = vadd.f32 %v6130_v45, %v6832_v14 }
 0x205   : > { %v3209_v28 = vrot.slane %v3208_v0, 2  ;;  %v3203_v49 = vrot.slane %v3202_v56, 2  ;;  %v2546_v38 = vadd.f32 %v6130_v45, %v6834_v15  ;;  %v2548_v3 = vadd.f32 %v6130_v45, %v6836_v27 }
 0x206   : > { %v3198_v55 = vadd.f32 %v3197_v19, %v3196_v40  ;;  %v3215_v5 = vrot.slane %v3214_v54, 2  ;;  %v2635_v47 = vmax.f32 %v2545_v62, 0.0  ;;  %v2637_v36 = vmax.f32 %v2547_v31, 0.0 }
 0x207   : > { %v3210_v8 = vadd.f32 %v3209_v28, %v3208_v0  ;;  %v3204_v35 = vadd.f32 %v3203_v49, %v3202_v56  ;;  %v2636_v23 = vmax.f32 %v2546_v38, 0.0  ;;  %v2638_v51 = vmax.f32 %v2548_v3, 0.0 }
 0x208   : > { %v3199_v13 = vrot.slane %v3198_v55, 1  ;;  %v3216_v46 = vadd.f32 %v3215_v5, %v3214_v54  ;;  %v2729_v32 = vmul.f32 %v6132_v37, %v2635_v47  ;;  %v2731_v24 = vmul.f32 %v6132_v37, %v2637_v36 }
 0x209   : > { %v3211_v39 = vrot.slane %v3210_v8, 1  ;;  %v3205_v14 = vrot.slane %v3204_v35, 1  ;;  %v2730_v15 = vmul.f32 %v6132_v37, %v2636_v23  ;;  %v2732_v27 = vmul.f32 %v6132_v37, %v2638_v51 }
 0x20a   : > { %v6993_v40 = vadd.f32 %v3199_v13, %v3198_v55  ;;  %v3217_v19 = vrot.slane %v3216_v46, 1  ;;  %v3219_v62 = vrot.slane %v2729_v32, 4  ;;  %v3231_v54 = vrot.slane %v2731_v24, 4 }
 0x20b   : > { %v6996_v0 = vadd.f32 %v3211_v39, %v3210_v8  ;;  %v6998_v56 = vadd.f32 %v3205_v14, %v3204_v35  ;;  %v3225_v28 = vrot.slane %v2730_v15, 4  ;;  %v3237_v5 = vrot.slane %v2732_v27, 4 }
 0x20c   : > { %v3315_v49 = vmax.f32 %v6969_v16, %v6993_v40  ;;  %v7002_v31 = vadd.f32 %v3217_v19, %v3216_v46  ;;  %v3220_v38 = vadd.f32 %v3219_v62, %v2729_v32  ;;  %v3232_v3 = vadd.f32 %v3231_v54, %v2731_v24 }
 0x20d   : > { %8920 = vst [vmem:[#allocation153_spill] sm:$0xff] %v6998_v56  ;;  %v3316_v55 = vmax.f32 %v6974_v48, %v6996_v0  ;;  %v3359_v47 = vmax.f32 %v6977_v17, %v6998_v56  ;;  %v3226_v8 = vadd.f32 %v3225_v28, %v2730_v15  ;;  %v3238_v23 = vadd.f32 %v3237_v5, %v2732_v27 }
 0x20e   : > { %8921 = vst [vmem:[#allocation154_spill] sm:$0xff] %v7002_v31  ;;  %v3360_v35 = vmax.f32 %v6980_v58, %v7002_v31  ;;  %v3221_v36 = vrot.slane %v3220_v38, 2  ;;  %v2549_v16 = vadd.f32 %v6130_v45, %v6864_v18  ;;  %v3233_v13 = vrot.slane %v3232_v3, 2 }
 0x20f   : > { %v3227_v46 = vrot.slane %v3226_v8, 2  ;;  %v2551_v32 = vadd.f32 %v6130_v45, %v6870_v11  ;;  %v2550_v48 = vadd.f32 %v6130_v45, %v6872_v29  ;;  %v3239_v17 = vrot.slane %v3238_v23, 2 }
 0x210   : > { %v3222_v51 = vadd.f32 %v3221_v36, %v3220_v38  ;;  %v2639_v39 = vmax.f32 %v2549_v16, 0.0  ;;  %v2552_v14 = vadd.f32 %v6130_v45, %v6878_v9  ;;  %v3234_v58 = vadd.f32 %v3233_v13, %v3232_v3 }
 0x211   : > { %v3228_v24 = vadd.f32 %v3227_v46, %v3226_v8  ;;  %v2641_v15 = vmax.f32 %v2551_v32, 0.0  ;;  %v2640_v19 = vmax.f32 %v2550_v48, 0.0  ;;  %v3240_v18 = vadd.f32 %v3239_v17, %v3238_v23 }
 0x212   : > { %v3223_v62 = vrot.slane %v3222_v51, 1  ;;  %v2733_v27 = vmul.f32 %v6132_v37, %v2639_v39  ;;  %v2642_v54 = vmax.f32 %v2552_v14, 0.0  ;;  %v3235_v28 = vrot.slane %v3234_v58, 1 }
 0x213   : > { %v3229_v11 = vrot.slane %v3228_v24, 1  ;;  %v2735_v5 = vmul.f32 %v6132_v37, %v2641_v15  ;;  %v2734_v29 = vmul.f32 %v6132_v37, %v2640_v19  ;;  %v3241_v36 = vrot.slane %v3240_v18, 1 }
 0x214   : > { %v7021_v38 = vadd.f32 %v3223_v62, %v3222_v51  ;;  %v3243_v16 = vrot.slane %v2733_v27, 4  ;;  %v2736_v9 = vmul.f32 %v6132_v37, %v2642_v54  ;;  %v7024_v3 = vadd.f32 %v3235_v28, %v3234_v58 }
 0x215   : > { %v7026_v8 = vadd.f32 %v3229_v11, %v3228_v24  ;;  %v3255_v23 = vrot.slane %v2735_v5, 4  ;;  %v3249_v13 = vrot.slane %v2734_v29, 4  ;;  %v7029_v32 = vadd.f32 %v3241_v36, %v3240_v18 }
 0x216   : > { %v3317_v46 = vmax.f32 %v3315_v49, %v7021_v38  ;;  %v3244_v48 = vadd.f32 %v3243_v16, %v2733_v27  ;;  %v3261_v17 = vrot.slane %v2736_v9, 4  ;;  %v3318_v39 = vmax.f32 %v3316_v55, %v7024_v3 }
 0x217   : > { %8922 = vst [vmem:[#allocation155_spill] sm:$0xff] %v7026_v8  ;;  %8923 = vst [vmem:[#allocation156_spill] sm:$0xff] %v7029_v32  ;;  %v3361_v51 = vmax.f32 %v3359_v47, %v7026_v8  ;;  %v3256_v14 = vadd.f32 %v3255_v23, %v2735_v5  ;;  %v3250_v15 = vadd.f32 %v3249_v13, %v2734_v29 }
 0x218   : > { %v3362_v19 = vmax.f32 %v3360_v35, %v7029_v32  ;;  %v3245_v58 = vrot.slane %v3244_v48, 2  ;;  %v3262_v62 = vadd.f32 %v3261_v17, %v2736_v9  ;;  %v2553_v24 = vadd.f32 %v6130_v45, %v6900_v12 }
 0x219   : > { %v3257_v54 = vrot.slane %v3256_v14, 2  ;;  %v3251_v28 = vrot.slane %v3250_v15, 2  ;;  %v2554_v49 = vadd.f32 %v6130_v45, %v6907_v44 }
 0x21a   : > { %v3246_v18 = vadd.f32 %v3245_v58, %v3244_v48  ;;  %v3263_v27 = vrot.slane %v3262_v62, 2  ;;  %v2643_v11 = vmax.f32 %v2553_v24, 0.0 }
 0x21b   : > { %v3258_v55 = vadd.f32 %v3257_v54, %v3256_v14  ;;  %v3252_v36 = vadd.f32 %v3251_v28, %v3250_v15  ;;  %v2644_v47 = vmax.f32 %v2554_v49, 0.0 }
 0x21c   : > { %v3247_v5 = vrot.slane %v3246_v18, 1  ;;  %v3264_v29 = vadd.f32 %v3263_v27, %v3262_v62  ;;  %v2737_v35 = vmul.f32 %v6132_v37, %v2643_v11 }
 0x21d   : > { %v3259_v16 = vrot.slane %v3258_v55, 1  ;;  %v3253_v9 = vrot.slane %v3252_v36, 1  ;;  %v2738_v23 = vmul.f32 %v6132_v37, %v2644_v47 }
 0x21e   : > { %v7040_v12 = vadd.f32 %v3247_v5, %v3246_v18  ;;  %v3265_v13 = vrot.slane %v3264_v29, 1  ;;  %v3267_v17 = vrot.slane %v2737_v35, 4 }
 0x21f   : > { %v7042_v31 = vadd.f32 %v3259_v16, %v3258_v55  ;;  %v7044_v45 = vadd.f32 %v3253_v9, %v3252_v36  ;;  %v3273_v44 = vrot.slane %v2738_v23, 4 }
 0x220   : > { %v3319_v48 = vmax.f32 %v3317_v46, %v7040_v12  ;;  %v7047_v14 = vadd.f32 %v3265_v13, %v3264_v29  ;;  %v3268_v15 = vadd.f32 %v3267_v17, %v2737_v35 }
 0x221   : > { %8924 = vst [vmem:[#allocation157_spill] sm:$0xff] %v7044_v45  ;;  %v3320_v58 = vmax.f32 %v3318_v39, %v7042_v31  ;;  %v3363_v62 = vmax.f32 %v3361_v51, %v7044_v45  ;;  %v3274_v24 = vadd.f32 %v3273_v44, %v2738_v23  ;;  %v8950_v44 = vld [vmem:[#allocation68_spill] sm:$0xff] }
 0x222   : > { %8925 = vst [vmem:[#allocation158_spill] sm:$0xff] %v7047_v14  ;;  %v3364_v37 = vmax.f32 %v3362_v19, %v7047_v14  ;;  %v3269_v54 = vrot.slane %v3268_v15, 2 }
 0x223   : > { %v3275_v28 = vrot.slane %v3274_v24, 2 }
 0x224   : > { %v3270_v49 = vadd.f32 %v3269_v54, %v3268_v15 }
 0x225   : > { %v3276_v18 = vadd.f32 %v3275_v28, %v3274_v24  ;;  %v8947_v28 = vld [vmem:[#allocation25_spill] sm:$0xff] }
 0x226   : > { %v3271_v27 = vrot.slane %v3270_v49, 1 }
 0x227   : > { %v3277_v11 = vrot.slane %v3276_v18, 1 }
 0x228   : > { %v7052_v55 = vadd.f32 %v3271_v27, %v3270_v49 }
 0x229   : > { %v7054_v36 = vadd.f32 %v3277_v11, %v3276_v18 }
 0x22a   : > { %v3321_v46 = vmax.f32 %v3319_v48, %v7052_v55  ;;  %v8930_v48 = vld [vmem:[#allocation84_spill] sm:$0xff] }
 0x22b   : > { %8926 = vst [vmem:[#allocation159_spill] sm:$0xff] %v7054_v36  ;;  %v3365_v47 = vmax.f32 %v3363_v62, %v7054_v36  ;;  %v8967_v36 = vld [vmem:[#allocation103_spill] sm:$0xff] }
 0x22c   : > { %v7058_v39 = vmax.f32 %v3321_v46, %v3320_v58 }
 0x22d   : > { %v7060_v51 = vmax.f32 %v3365_v47, %v3364_v37  ;;  %v8931_v37 = vld [vmem:[#allocation30_spill] sm:$0xff] }
 0x22e   : > { %v3367_v19 = vsub.f32 %v6166_v6, %v7058_v39  ;;  %v3369_v5 = vsub.f32 %v6168_v57, %v7058_v39  ;;  %v3371_v29 = vsub.f32 %v6189_v41, %v7058_v39  ;;  %v3373_v35 = vsub.f32 %v6192_v34, %v7058_v39 }
 0x22f   : > { %v3375_v16 = vsub.f32 %v6223_v1, %v7058_v39  ;;  %v3377_v9 = vsub.f32 %v6230_v43, %v7058_v39  ;;  %v3379_v23 = vsub.f32 %v6265_v42, %v7058_v39  ;;  %v3381_v6 = vsub.f32 %v6268_v4, %v7058_v39  ;;  %v8952_v43 = vld [vmem:[#allocation77_spill] sm:$0xff] }
 0x230   : > { %v3383_v57 = vsub.f32 %v6297_v7, %v7058_v39  ;;  %v3385_v41 = vsub.f32 %v6300_v22, %v7058_v39  ;;  %v3387_v34 = vsub.f32 %v6343_v59, %v7058_v39  ;;  %v3389_v1 = vsub.f32 %v6350_v25, %v7058_v39  ;;  %v8927_v22 = vld [vmem:[#allocation75_spill] sm:$0xff]  ;;  %v8928_v59 = vld [vmem:[#allocation76_spill] sm:$0xff]  ;;  %v8955_v42 = vld [vmem:[#allocation85_spill] sm:$0xff] }
 0x231   : > { %v8929_v25 = vld [vmem:[#allocation83_spill] sm:$0xff]  ;;  %v3457_v47 = vmul.f32 1.442695, %v3367_v19  ;;  %v3461_v54 = vmul.f32 1.442695, %v3369_v5  ;;  %v8957_v7 = vsub.f32 %v6402_v2, %v7058_v39 }
 0x232   : > { %v3465_v24 = vmul.f32 1.442695, %v3371_v29  ;;  %v3469_v49 = vmul.f32 1.442695, %v3373_v35  ;;  %v3473_v18 = vmul.f32 1.442695, %v3375_v16 }
 0x233   : > { %4334 = vpow2.f32 %v3457_v47  ;;  %v3477_v62 = vmul.f32 1.442695, %v3377_v9  ;;  %v3481_v27 = vmul.f32 1.442695, %v3379_v23  ;;  %v3485_v11 = vmul.f32 1.442695, %v3381_v6 }
 0x234   : > { %4336 = vpow2.f32 %v3461_v54  ;;  %v3489_v19 = vmul.f32 1.442695, %v3383_v57  ;;  %v3493_v5 = vmul.f32 1.442695, %v3385_v41  ;;  %v8934_v35 = vld [vmem:[#allocation36_spill] sm:$0xff]  ;;  %v8935_v16 = vld [vmem:[#allocation38_spill] sm:$0xff] }
 0x235   : > { %4338 = vpow2.f32 %v3465_v24  ;;  %v8937_v23 = vld [vmem:[#allocation42_spill] sm:$0xff]  ;;  %v8939_v57 = vld [vmem:[#allocation16_spill] sm:$0xff]  ;;  %v8941_v9 = vld [vmem:[#allocation49_spill] sm:$0xff]  ;;  %v3501_v17 = vmul.f32 1.442695, %v3389_v1 }
 0x236   : > { %4340 = vpow2.f32 %v3469_v49  ;;  %v8940_v47 = vld [vmem:[#allocation50_spill] sm:$0xff]  ;;  %v8944_v49 = vld [vmem:[#allocation55_spill] sm:$0xff]  ;;  %v8946_v24 = vld [vmem:[#allocation56_spill] sm:$0xff]  ;;  %v3509_v13 = vmul.f32 1.442695, %v8957_v7 }
 0x237   : > { %4342 = vpow2.f32 %v3473_v18  ;;  %v3497_v18 = vmul.f32 1.442695, %v3387_v34  ;;  %v8945_v41 = vld [vmem:[#allocation22_spill] sm:$0xff]  ;;  %v8956_v1 = vld [vmem:[#allocation87_spill] sm:$0xff] }
 0x238   : > { %4344 = vpow2.f32 %v3477_v62  ;;  %v8938_v62 = vld [vmem:[#allocation11_spill] sm:$0xff]  ;;  %v8951_v34 = vld [vmem:[#allocation70_spill] sm:$0xff] }
 0x239   : > { %4346 = vpow2.f32 %v3481_v27 }
 0x23a   : > { %4348 = vpow2.f32 %v3485_v11  ;;  %v8943_v11 = vld [vmem:[#allocation18_spill] sm:$0xff] }
 0x23b   : > { %4350 = vpow2.f32 %v3489_v19  ;;  %v8949_v19 = vld [vmem:[#allocation63_spill] sm:$0xff] }
 0x23c   : > { %4352 = vpow2.f32 %v3493_v5  ;;  %v8954_v5 = vsub.f32 %v6395_v60, %v7058_v39  ;;  %v8958_v60 = vsub.f32 %v6449_v63, %v7058_v39 }
 0x23d   : > { %v7126_v58 = vpop.eup %4334  ;;  %4354 = vpow2.f32 %v3497_v18 }
 0x23e   : > { %8932 = vst [vmem:[#allocation75_spill] sm:$0xff] %v7126_v58  ;;  %v7128_v46 = vpop.eup %4336  ;;  %v3505_v6 = vmul.f32 1.442695, %v8954_v5  ;;  %4356 = vpow2.f32 %v3501_v17  ;;  %v3513_v5 = vmul.f32 1.442695, %v8958_v60  ;;  %v8959_v17 = vsub.f32 %v6452_v61, %v7058_v39 }
 0x23f   : > { %8933 = vst [vmem:[#allocation76_spill] sm:$0xff] %v7128_v46  ;;  %v3637_v29 = vadd.f32 %v7128_v46, %v7126_v58  ;;  %v7136_v54 = vpop.eup %4338 }
 0x240   : > { %8936 = vst [vmem:[#allocation83_spill] sm:$0xff] %v7136_v54  ;;  %v7149_v15 = vpop.eup %4340  ;;  %4358 = vpow2.f32 %v3505_v6  ;;  %v8960_v6 = vsub.f32 %v8927_v22, %v7058_v39  ;;  %v8965_v22 = vld [vmem:[#allocation95_spill] sm:$0xff] }
 0x241   : > { %v3638_v27 = vadd.f32 %v7136_v54, %v3637_v29  ;;  %8942 = vst [vmem:[#allocation84_spill] sm:$0xff] %v7149_v15  ;;  %v7162_v4 = vpop.eup %4342  ;;  %4360 = vpow2.f32 %v3509_v13  ;;  %v8962_v13 = vld [vmem:[#allocation92_spill] sm:$0xff]  ;;  %v3409_v14 = vsub.f32 %v8965_v22, %v7058_v39 }
 0x242   : > { %8948 = vst [vmem:[#allocation30_spill] sm:$0xff] %v7162_v4  ;;  %v7175_v54 = vpop.eup %4344  ;;  %4362 = vpow2.f32 %v3513_v5  ;;  %v3407_v61 = vsub.f32 %v8962_v13, %v7058_v39  ;;  %v3411_v13 = vsub.f32 %v8967_v36, %v7058_v39 }
 0x243   : > { %v3639_v29 = vadd.f32 %v7149_v15, %v3638_v27  ;;  %v8953_v15 = vld [vmem:[#allocation78_spill] sm:$0xff] }
 0x244   : > { %v3545_v8 = vmul.f32 1.442695, %v3411_v13  ;;  %v8974_v13 = vsub.f32 %v8934_v35, %v7060_v51 }
 0x245   : > { %v3640_v27 = vadd.f32 %v7162_v4, %v3639_v29  ;;  %v7185_v4 = vpop.eup %4346 }
 0x246   : > { %v7191_v56 = vpop.eup %4348 }
 0x247   : > { %v3641_v29 = vadd.f32 %v7175_v54, %v3640_v27  ;;  %v7197_v46 = vpop.eup %4350  ;;  %v3517_v27 = vmul.f32 1.442695, %v8959_v17 }
 0x248   : > { %v7203_v7 = vpop.eup %4352 }
 0x249   : > { %v3642_v18 = vadd.f32 %v7185_v4, %v3641_v29  ;;  %v3521_v29 = vmul.f32 1.442695, %v8960_v6  ;;  %v7215_v60 = vpop.eup %4354  ;;  %4364 = vpow2.f32 %v3517_v27  ;;  %v8963_v27 = vsub.f32 %v8929_v25, %v7058_v39  ;;  %v8968_v25 = vld [vmem:[#allocation104_spill] sm:$0xff] }
 0x24a   : > { %v7225_v6 = vpop.eup %4356 }
 0x24b   : > { %v3643_v58 = vadd.f32 %v7191_v56, %v3642_v18  ;;  %4366 = vpow2.f32 %v3521_v29  ;;  %v3529_v63 = vmul.f32 1.442695, %v8963_v27  ;;  %v3537_v27 = vmul.f32 1.442695, %v3407_v61 }
 0x24d   : > { %v3644_v2 = vadd.f32 %v7197_v46, %v3643_v58  ;;  %v8961_v58 = vsub.f32 %v8928_v59, %v7058_v39 }
 0x24f   : > { %v3645_v18 = vadd.f32 %v7203_v7, %v3644_v2  ;;  %v3525_v5 = vmul.f32 1.442695, %v8961_v58  ;;  %v7233_v58 = vpop.eup %4358 }
 0x250   : > { %8964 = vst [vmem:[#allocation36_spill] sm:$0xff] %v7233_v58  ;;  %v7243_v45 = vpop.eup %4360 }
 0x251   : > { %v3646_v2 = vadd.f32 %v7215_v60, %v3645_v18  ;;  %4368 = vpow2.f32 %v3525_v5  ;;  %v8966_v18 = vsub.f32 %v8930_v48, %v7058_v39  ;;  %v7248_v22 = vpop.eup %4362  ;;  %v3541_v5 = vmul.f32 1.442695, %v3409_v14  ;;  %v8970_v48 = vld [vmem:[#allocation111_spill] sm:$0xff] }
 0x252   : > { %4370 = vpow2.f32 %v3529_v63  ;;  %8969 = vst [vmem:[#allocation38_spill] sm:$0xff] %v7248_v22 }
 0x253   : > { %v3647_v59 = vadd.f32 %v7225_v6, %v3646_v2  ;;  %v3533_v17 = vmul.f32 1.442695, %v8966_v18  ;;  %v3413_v2 = vsub.f32 %v8968_v25, %v7058_v39  ;;  %v3415_v18 = vsub.f32 %v8970_v48, %v7058_v39  ;;  %v8972_v25 = vld [vmem:[#allocation112_spill] sm:$0xff]  ;;  %v8975_v48 = vld [vmem:[#allocation119_spill] sm:$0xff] }
 0x254   : > { %v3417_v63 = vsub.f32 %v8972_v25, %v7058_v39 }
 0x255   : > { %v3648_v29 = vadd.f32 %v7233_v58, %v3647_v59  ;;  %4372 = vpow2.f32 %v3533_v17  ;;  %v7253_v59 = vpop.eup %4364  ;;  %v3549_v58 = vmul.f32 1.442695, %v3413_v2  ;;  %v3553_v2 = vmul.f32 1.442695, %v3415_v18 }
 0x256   : > { %8971 = vst [vmem:[#allocation42_spill] sm:$0xff] %v7253_v59  ;;  %4374 = vpow2.f32 %v3537_v27  ;;  %v7261_v14 = vpop.eup %4366  ;;  %v3419_v27 = vsub.f32 %v8975_v48, %v7058_v39 }
 0x257   : > { %v3649_v32 = vadd.f32 %v7243_v45, %v3648_v29  ;;  %v8973_v29 = vsub.f32 %v8931_v37, %v7060_v51  ;;  %4376 = vpow2.f32 %v3541_v5  ;;  %v8976_v37 = vsub.f32 %v8935_v16, %v7060_v51  ;;  %v8977_v5 = vld [vmem:[#allocation120_spill] sm:$0xff] }
 0x258   : > { %4378 = vpow2.f32 %v3545_v8  ;;  %v8978_v8 = vsub.f32 %v8937_v23, %v7060_v51  ;;  %v3561_v16 = vmul.f32 1.442695, %v3419_v27  ;;  %v8982_v27 = vsub.f32 %v8939_v57, %v7060_v51 }
 0x259   : > { %v3650_v36 = vadd.f32 %v7248_v22, %v3649_v32  ;;  %v3459_v17 = vmul.f32 1.442695, %v8973_v29  ;;  %v3463_v32 = vmul.f32 1.442695, %v8974_v13  ;;  %4380 = vpow2.f32 %v3549_v58  ;;  %v8979_v58 = vld [vmem:[#allocation128_spill] sm:$0xff] }
 0x25a   : > { %v3421_v29 = vsub.f32 %v8977_v5, %v7058_v39  ;;  %v3471_v18 = vmul.f32 1.442695, %v8978_v8 }
 0x25b   : > { %v3651_v61 = vadd.f32 %v7253_v59, %v3650_v36  ;;  %v7269_v22 = vpop.eup %4368  ;;  %v3467_v36 = vmul.f32 1.442695, %v8976_v37  ;;  %v3557_v59 = vmul.f32 1.442695, %v3417_v63  ;;  %4382 = vpow2.f32 %v3459_v17 }
 0x25c   : > { %v7277_v13 = vpop.eup %4370  ;;  %4384 = vpow2.f32 %v3463_v32  ;;  %v8980_v63 = vsub.f32 %v8938_v62, %v7060_v51  ;;  %v8981_v32 = vld [vmem:[#allocation131_spill] sm:$0xff]  ;;  %v3565_v23 = vmul.f32 1.442695, %v3421_v29 }
 0x25d   : > { %v3652_v25 = vadd.f32 %v7261_v14, %v3651_v61  ;;  %v3423_v61 = vsub.f32 %v8979_v58, %v7058_v39  ;;  %4386 = vpow2.f32 %v3553_v2  ;;  %v3479_v2 = vmul.f32 1.442695, %v8982_v27 }
 0x25e   : > { %4388 = vpow2.f32 %v3467_v36  ;;  %v3475_v17 = vmul.f32 1.442695, %v8980_v63  ;;  %v8983_v36 = vld [vmem:[#allocation139_spill] sm:$0xff] }
 0x25f   : > { %v3653_v35 = vadd.f32 %v7269_v22, %v3652_v25  ;;  %v7285_v37 = vpop.eup %4372  ;;  %v3425_v25 = vsub.f32 %v8981_v32, %v7058_v39  ;;  %4390 = vpow2.f32 %v3557_v59  ;;  %v3569_v62 = vmul.f32 1.442695, %v3423_v61 }
 0x260   : > { %v7293_v8 = vpop.eup %4374  ;;  %4392 = vpow2.f32 %v3471_v18  ;;  %v8984_v59 = vsub.f32 %v8940_v47, %v7060_v51  ;;  %v8985_v18 = vld [vmem:[#allocation140_spill] sm:$0xff]  ;;  %v8986_v61 = vsub.f32 %v8941_v9, %v7060_v51  ;;  %v3431_v47 = vsub.f32 %v6893_v33, %v7058_v39 }
 0x261   : > { %v3654_v48 = vadd.f32 %v7277_v13, %v3653_v35  ;;  %v3427_v35 = vsub.f32 %v8983_v36, %v7058_v39  ;;  %4394 = vpow2.f32 %v3561_v16  ;;  %v7301_v63 = vpop.eup %4376  ;;  %v3429_v57 = vsub.f32 %v8985_v18, %v7058_v39 }
 0x262   : > { %4396 = vpow2.f32 %v3475_v17  ;;  %v3483_v29 = vmul.f32 1.442695, %v8984_v59  ;;  %v3573_v32 = vmul.f32 1.442695, %v3425_v25  ;;  %v3487_v17 = vmul.f32 1.442695, %v8986_v61 }
 0x263   : > { %v3655_v5 = vadd.f32 %v7285_v37, %v3654_v48  ;;  %v7306_v48 = vpop.eup %4378  ;;  %4398 = vpow2.f32 %v3565_v23  ;;  %v3577_v36 = vmul.f32 1.442695, %v3427_v35  ;;  %v8989_v25 = vld [vmem:[#allocation147_spill] sm:$0xff]  ;;  %v3581_v61 = vmul.f32 1.442695, %v3429_v57 }
 0x264   : > { %v7311_v16 = vpop.eup %4380  ;;  %4400 = vpow2.f32 %v3479_v2  ;;  %v8990_v2 = vsub.f32 %v8943_v11, %v7060_v51  ;;  %v3585_v11 = vmul.f32 1.442695, %v3431_v47 }
 0x265   : > { %v3656_v58 = vadd.f32 %v7293_v8, %v3655_v5  ;;  %v7316_v5 = vpop.eup %4382  ;;  %4402 = vpow2.f32 %v3569_v62 }
 0x266   : > { %8987 = vst [vmem:[#allocation11_spill] sm:$0xff] %v7316_v5  ;;  %v7321_v23 = vpop.eup %4384  ;;  %4404 = vpow2.f32 %v3483_v29  ;;  %v3491_v9 = vmul.f32 1.442695, %v8990_v2 }
 0x267   : > { %v3657_v27 = vadd.f32 %v7301_v63, %v3656_v58  ;;  %8988 = vst [vmem:[#allocation16_spill] sm:$0xff] %v7321_v23  ;;  %v3433_v58 = vsub.f32 %v8989_v25, %v7058_v39  ;;  %v7328_v18 = vpop.eup %4386  ;;  %4406 = vpow2.f32 %v3573_v32  ;;  %v3681_v35 = vadd.f32 %v7321_v23, %v7316_v5 }
 0x268   : > { %v7333_v62 = vpop.eup %4388  ;;  %4408 = vpow2.f32 %v3487_v17 }
 0x269   : > { %v3658_v59 = vadd.f32 %v7306_v48, %v3657_v27  ;;  %8991 = vst [vmem:[#allocation50_spill] sm:$0xff] %v7333_v62  ;;  %v8992_v27 = vsub.f32 %v8944_v49, %v7060_v51  ;;  %v7338_v25 = vpop.eup %4390  ;;  %4410 = vpow2.f32 %v3577_v36  ;;  %v3682_v57 = vadd.f32 %v7333_v62, %v3681_v35 }
 0x26a   : > { %v7342_v32 = vpop.eup %4392  ;;  %4412 = vpow2.f32 %v3491_v9  ;;  %v3589_v49 = vmul.f32 1.442695, %v3433_v58 }
 0x26b   : > { %v3659_v33 = vadd.f32 %v7311_v16, %v3658_v59  ;;  %v3495_v29 = vmul.f32 1.442695, %v8992_v27  ;;  %8993 = vst [vmem:[#allocation49_spill] sm:$0xff] %v7342_v32  ;;  %v8994_v59 = vsub.f32 %v8945_v41, %v7060_v51  ;;  %v7347_v17 = vpop.eup %4394  ;;  %4414 = vpow2.f32 %v3581_v61 }
 0x26c   : > { %v3683_v36 = vadd.f32 %v7342_v32, %v3682_v57  ;;  %v7351_v47 = vpop.eup %4396  ;;  %v8997_v41 = vsub.f32 %v6929_v30, %v7058_v39 }
 0x26d   : > { %v3660_v2 = vadd.f32 %v7328_v18, %v3659_v33  ;;  %v3499_v23 = vmul.f32 1.442695, %v8994_v59  ;;  %8995 = vst [vmem:[#allocation18_spill] sm:$0xff] %v7351_v47  ;;  %4416 = vpow2.f32 %v3495_v29  ;;  %v8996_v33 = vsub.f32 %v8946_v24, %v7060_v51  ;;  %v7356_v9 = vpop.eup %4398 }
 0x26e   : > { %4418 = vpow2.f32 %v3585_v11  ;;  %v3593_v59 = vmul.f32 1.442695, %v8997_v41  ;;  %v3684_v61 = vadd.f32 %v7351_v47, %v3683_v36  ;;  %v8999_v29 = vsub.f32 %v8947_v28, %v7060_v51 }
 0x26f   : > { %v3661_v27 = vadd.f32 %v7338_v25, %v3660_v2  ;;  %v3503_v35 = vmul.f32 1.442695, %v8996_v33  ;;  %v7363_v2 = vpop.eup %4400  ;;  %4420 = vpow2.f32 %v3499_v23  ;;  %v9000_v11 = vsub.f32 %v6932_v53, %v7058_v39 }
 0x270   : > { %8998 = vst [vmem:[#allocation55_spill] sm:$0xff] %v7363_v2  ;;  %v3507_v57 = vmul.f32 1.442695, %v8999_v29  ;;  %v7368_v24 = vpop.eup %4402  ;;  %4422 = vpow2.f32 %v3589_v49  ;;  %v9002_v23 = vsub.f32 %v8949_v19, %v7060_v51  ;;  %v9003_v49 = vsub.f32 %v6961_v26, %v7058_v39 }
 0x271   : > { %v3662_v58 = vadd.f32 %v7347_v17, %v3661_v27  ;;  %v3597_v33 = vmul.f32 1.442695, %v9000_v11  ;;  %v3685_v27 = vadd.f32 %v7363_v2, %v3684_v61  ;;  %v7375_v41 = vpop.eup %4404  ;;  %4424 = vpow2.f32 %v3503_v35 }
 0x272   : > { %9001 = vst [vmem:[#allocation22_spill] sm:$0xff] %v7375_v41  ;;  %v3511_v36 = vmul.f32 1.442695, %v9002_v23  ;;  %v7380_v28 = vpop.eup %4406  ;;  %4426 = vpow2.f32 %v3593_v59  ;;  %v3601_v29 = vmul.f32 1.442695, %v9003_v49  ;;  %v9005_v35 = vsub.f32 %v8950_v44, %v7060_v51 }
 0x273   : > { %v3663_v30 = vadd.f32 %v7356_v9, %v3662_v58  ;;  %v3686_v58 = vadd.f32 %v7375_v41, %v3685_v27  ;;  %v7387_v11 = vpop.eup %4408  ;;  %4428 = vpow2.f32 %v3507_v57  ;;  %v9006_v59 = vsub.f32 %v6964_v10, %v7058_v39 }
 0x274   : > { %9004 = vst [vmem:[#allocation56_spill] sm:$0xff] %v7387_v11  ;;  %v3515_v61 = vmul.f32 1.442695, %v9005_v35  ;;  %v7392_v19 = vpop.eup %4410  ;;  %4430 = vpow2.f32 %v3597_v33  ;;  %v9008_v57 = vsub.f32 %v8951_v34, %v7060_v51  ;;  %v9009_v33 = vsub.f32 %v6993_v40, %v7058_v39 }
 0x275   : > { %v3664_v53 = vadd.f32 %v7368_v24, %v3663_v30  ;;  %v3605_v23 = vmul.f32 1.442695, %v9006_v59  ;;  %v3687_v30 = vadd.f32 %v7387_v11, %v3686_v58  ;;  %v7399_v49 = vpop.eup %4412  ;;  %4432 = vpow2.f32 %v3511_v36 }
 0x276   : > { %9007 = vst [vmem:[#allocation25_spill] sm:$0xff] %v7399_v49  ;;  %v3519_v27 = vmul.f32 1.442695, %v9008_v57  ;;  %v7404_v44 = vpop.eup %4414  ;;  %4434 = vpow2.f32 %v3601_v29  ;;  %v3609_v35 = vmul.f32 1.442695, %v9009_v33  ;;  %v9011_v36 = vsub.f32 %v8952_v43, %v7060_v51 }
 0x277   : > { %v3665_v26 = vadd.f32 %v7380_v28, %v3664_v53  ;;  %v3688_v53 = vadd.f32 %v7399_v49, %v3687_v30  ;;  %v7411_v59 = vpop.eup %4416  ;;  %4436 = vpow2.f32 %v3515_v61  ;;  %v9012_v29 = vsub.f32 %v6996_v0, %v7058_v39 }
 0x278   : > { %9010 = vst [vmem:[#allocation63_spill] sm:$0xff] %v7411_v59  ;;  %v3523_v58 = vmul.f32 1.442695, %v9011_v36  ;;  %v7416_v34 = vpop.eup %4418  ;;  %4438 = vpow2.f32 %v3605_v23  ;;  %v9014_v61 = vsub.f32 %v8953_v15, %v7060_v51  ;;  %v9015_v23 = vsub.f32 %v7021_v38, %v7058_v39 }
 0x279   : > { %v3666_v10 = vadd.f32 %v7392_v19, %v3665_v26  ;;  %v3613_v57 = vmul.f32 1.442695, %v9012_v29  ;;  %v3689_v26 = vadd.f32 %v7411_v59, %v3688_v53  ;;  %v7423_v33 = vpop.eup %4420  ;;  %4440 = vpow2.f32 %v3519_v27  ;;  %v9017_v53 = vld [vmem:[#allocation96_spill] sm:$0xff] }
 0x27a   : > { %9013 = vst [vmem:[#allocation68_spill] sm:$0xff] %v7423_v33  ;;  %v3527_v30 = vmul.f32 1.442695, %v9014_v61  ;;  %v7428_v43 = vpop.eup %4422  ;;  %4442 = vpow2.f32 %v3609_v35  ;;  %v3617_v36 = vmul.f32 1.442695, %v9015_v23  ;;  %v3408_v27 = vsub.f32 %v9017_v53, %v7060_v51  ;;  %v9021_v53 = vld [vmem:[#allocation98_spill] sm:$0xff] }
 0x27b   : > { %v3667_v40 = vadd.f32 %v7404_v44, %v3666_v10  ;;  %v3690_v10 = vadd.f32 %v7423_v33, %v3689_v26  ;;  %v7435_v29 = vpop.eup %4424  ;;  %4444 = vpow2.f32 %v3523_v58  ;;  %v9018_v15 = vsub.f32 %v8955_v42, %v7060_v51 }
 0x27c   : > { %9016 = vst [vmem:[#allocation70_spill] sm:$0xff] %v7435_v29  ;;  %v7442_v59 = vpop.eup %4426  ;;  %4446 = vpow2.f32 %v3613_v57  ;;  %v9019_v38 = vsub.f32 %v7024_v3, %v7058_v39  ;;  %v3410_v58 = vsub.f32 %v9021_v53, %v7060_v51  ;;  %v9022_v42 = vsub.f32 %v8956_v1, %v7060_v51  ;;  %v9025_v53 = vld [vmem:[#allocation105_spill] sm:$0xff] }
 0x27d   : > { %v3668_v0 = vadd.f32 %v7416_v34, %v3667_v40  ;;  %v3531_v61 = vmul.f32 1.442695, %v9018_v15  ;;  %v3691_v26 = vadd.f32 %v7435_v29, %v3690_v10  ;;  %v7449_v23 = vpop.eup %4428  ;;  %4448 = vpow2.f32 %v3527_v30 }
 0x27e   : > { %v3621_v35 = vmul.f32 1.442695, %v9019_v38  ;;  %9020 = vst [vmem:[#allocation77_spill] sm:$0xff] %v7449_v23  ;;  %v3535_v15 = vmul.f32 1.442695, %v9022_v42  ;;  %v7456_v33 = vpop.eup %4430  ;;  %4450 = vpow2.f32 %v3617_v36  ;;  %v9023_v3 = vsub.f32 %v7040_v12, %v7058_v39 }
 0x27f   : > { %v3669_v40 = vadd.f32 %v7428_v43, %v3668_v0  ;;  %v3692_v10 = vadd.f32 %v7449_v23, %v3691_v26  ;;  %v7463_v38 = vpop.eup %4432  ;;  %v3412_v30 = vsub.f32 %v9025_v53, %v7060_v51  ;;  %4452 = vpow2.f32 %v3531_v61  ;;  %v9028_v26 = vld [vmem:[#allocation106_spill] sm:$0xff] }
 0x280   : > { %v3625_v57 = vmul.f32 1.442695, %v9023_v3  ;;  %9024 = vst [vmem:[#allocation78_spill] sm:$0xff] %v7463_v38  ;;  %v3539_v29 = vmul.f32 1.442695, %v3408_v27  ;;  %v7467_v1 = vpop.eup %4434  ;;  %4454 = vpow2.f32 %v3621_v35  ;;  %v9026_v36 = vsub.f32 %v7042_v31, %v7058_v39 }
 0x281   : > { %v3670_v0 = vadd.f32 %v7442_v59, %v3669_v40  ;;  %v3693_v40 = vadd.f32 %v7463_v38, %v3692_v10  ;;  %v7474_v3 = vpop.eup %4436  ;;  %v3414_v23 = vsub.f32 %v9028_v26, %v7060_v51  ;;  %4456 = vpow2.f32 %v3535_v15  ;;  %v9031_v10 = vld [vmem:[#allocation113_spill] sm:$0xff] }
 0x282   : > { %v3629_v42 = vmul.f32 1.442695, %v9026_v36  ;;  %9027 = vst [vmem:[#allocation85_spill] sm:$0xff] %v7474_v3  ;;  %v3543_v53 = vmul.f32 1.442695, %v3410_v58  ;;  %v7478_v61 = vpop.eup %4438  ;;  %4458 = vpow2.f32 %v3625_v57  ;;  %v9029_v27 = vsub.f32 %v7052_v55, %v7058_v39  ;;  %v9033_v39 = vld [vmem:[#allocation114_spill] sm:$0xff] }
 0x283   : > { %v3671_v12 = vadd.f32 %v7456_v33, %v3670_v0  ;;  %v3694_v0 = vadd.f32 %v7474_v3, %v3693_v40  ;;  %v7485_v36 = vpop.eup %4440  ;;  %v3416_v38 = vsub.f32 %v9031_v10, %v7060_v51  ;;  %4460 = vpow2.f32 %v3539_v29 }
 0x284   : > { %v3633_v35 = vmul.f32 1.442695, %v9029_v27  ;;  %9030 = vst [vmem:[#allocation87_spill] sm:$0xff] %v7485_v36  ;;  %v3547_v26 = vmul.f32 1.442695, %v3412_v30  ;;  %v7489_v15 = vpop.eup %4442  ;;  %4462 = vpow2.f32 %v3629_v42  ;;  %v9035_v42 = vld [vmem:[#allocation121_spill] sm:$0xff] }
 0x285   : > { %v3672_v31 = vadd.f32 %v7467_v1, %v3671_v12  ;;  %v3695_v57 = vadd.f32 %v7485_v36, %v3694_v0  ;;  %v7493_v55 = vpop.eup %4444  ;;  %v3418_v12 = vsub.f32 %v9033_v39, %v7060_v51  ;;  %4464 = vpow2.f32 %v3543_v53 }
 0x286   : > { %9032 = vst [vmem:[#allocation92_spill] sm:$0xff] %v7493_v55  ;;  %v3551_v40 = vmul.f32 1.442695, %v3414_v23  ;;  %v7497_v27 = vpop.eup %4446  ;;  %4466 = vpow2.f32 %v3633_v35  ;;  %v3555_v0 = vmul.f32 1.442695, %v3416_v38  ;;  %v9037_v35 = vld [vmem:[#allocation123_spill] sm:$0xff] }
 0x287   : > { %v3673_v58 = vadd.f32 %v7478_v61, %v3672_v31  ;;  %v3696_v30 = vadd.f32 %v7493_v55, %v3695_v57  ;;  %v7501_v10 = vpop.eup %4448  ;;  %v3420_v31 = vsub.f32 %v9035_v42, %v7060_v51  ;;  %4468 = vpow2.f32 %v3547_v26  ;;  %v9039_v42 = vld [vmem:[#allocation132_spill] sm:$0xff] }
 0x288   : > { %9034 = vst [vmem:[#allocation95_spill] sm:$0xff] %v7501_v10  ;;  %v7505_v36 = vpop.eup %4450  ;;  %4470 = vpow2.f32 %v3551_v40  ;;  %v3559_v57 = vmul.f32 1.442695, %v3418_v12 }
 0x289   : > { %v3674_v29 = vadd.f32 %v7489_v15, %v3673_v58  ;;  %v3697_v23 = vadd.f32 %v7501_v10, %v3696_v30  ;;  %v7509_v53 = vpop.eup %4452  ;;  %v3422_v58 = vsub.f32 %v9037_v35, %v7060_v51  ;;  %4472 = vpow2.f32 %v3555_v0 }
 0x28a   : > { %9036 = vst [vmem:[#allocation103_spill] sm:$0xff] %v7509_v53  ;;  %v7513_v55 = vpop.eup %4454  ;;  %v3563_v30 = vmul.f32 1.442695, %v3420_v31  ;;  %4474 = vpow2.f32 %v3559_v57 }
 0x28b   : > { %v3675_v39 = vadd.f32 %v7497_v27, %v3674_v29  ;;  %v3698_v26 = vadd.f32 %v7509_v53, %v3697_v23  ;;  %v7517_v38 = vpop.eup %4456  ;;  %v3424_v29 = vsub.f32 %v9039_v42, %v7060_v51  ;;  %v3567_v35 = vmul.f32 1.442695, %v3422_v58  ;;  %v9044_v58 = vld [vmem:[#allocation134_spill] sm:$0xff] }
 0x28c   : > { %9038 = vst [vmem:[#allocation104_spill] sm:$0xff] %v7517_v38  ;;  %v7521_v10 = vpop.eup %4458  ;;  %4476 = vpow2.f32 %v3563_v30  ;;  %v3426_v57 = vsub.f32 %v9044_v58, %v7060_v51 }
 0x28d   : > { %v3676_v3 = vadd.f32 %v7505_v36, %v3675_v39  ;;  %v3699_v40 = vadd.f32 %v7517_v38, %v3698_v26  ;;  %v7525_v12 = vpop.eup %4460  ;;  %v3571_v31 = vmul.f32 1.442695, %v3424_v29  ;;  %4478 = vpow2.f32 %v3567_v35  ;;  %v9047_v38 = vld [vmem:[#allocation142_spill] sm:$0xff] }
 0x28e   : > { %9040 = vst [vmem:[#allocation111_spill] sm:$0xff] %v7525_v12  ;;  %v7527_v39 = vpop.eup %4462 }
 0x28f   : > { %v3677_v49 = vadd.f32 %v7513_v55, %v3676_v3  ;;  %v3700_v53 = vadd.f32 %v7525_v12, %v3699_v40  ;;  %v7531_v11 = vpop.eup %4464  ;;  %v9045_v40 = vld [vmem:[#allocation141_spill] sm:$0xff]  ;;  %4480 = vpow2.f32 %v3571_v31 }
 0x290   : > { %9041 = vst [vmem:[#allocation112_spill] sm:$0xff] %v7531_v11  ;;  %v7533_v0 = vpop.eup %4466  ;;  %v3428_v12 = vsub.f32 %v9045_v40, %v7060_v51  ;;  %v3575_v40 = vmul.f32 1.442695, %v3426_v57  ;;  %v3440_v57 = vsub.f32 %v6966_v52, %v7060_v51 }
 0x291   : > { %v3678_v23 = vadd.f32 %v7521_v10, %v3677_v49  ;;  %9042 = vst [vmem:[#allocation119_spill] sm:$0xff] %v7533_v0  ;;  %v3701_v26 = vadd.f32 %v7531_v11, %v3700_v53  ;;  %v7537_v42 = vpop.eup %4468  ;;  %v9048_v53 = vld [vmem:[#allocation148_spill] sm:$0xff] }
 0x292   : > { %9043 = vst [vmem:[#allocation120_spill] sm:$0xff] %v7537_v42  ;;  %v7545_v29 = vpop.eup %4470  ;;  %v3432_v11 = vsub.f32 %v9048_v53, %v7060_v51 }
 0x293   : > { %v3679_v3 = vadd.f32 %v7527_v39, %v3678_v23  ;;  %v3702_v30 = vadd.f32 %v7537_v42, %v3701_v26  ;;  %9046 = vst [vmem:[#allocation128_spill] sm:$0xff] %v7545_v29  ;;  %v3430_v23 = vsub.f32 %v9047_v38, %v7060_v51  ;;  %v7552_v35 = vpop.eup %4472  ;;  %v3436_v26 = vsub.f32 %v6934_v20, %v7060_v51 }
 0x294   : > { %9049 = vst [vmem:[#allocation131_spill] sm:$0xff] %v7552_v35  ;;  %v3579_v42 = vmul.f32 1.442695, %v3428_v12  ;;  %v7559_v38 = vpop.eup %4474 }
 0x295   : > { %v3680_v49 = vadd.f32 %v7533_v0, %v3679_v3  ;;  %v3703_v58 = vadd.f32 %v7545_v29, %v3702_v30  ;;  %v9050_v3 = vld [vmem:[#allocation149_spill] sm:$0xff]  ;;  %9051 = vst [vmem:[#allocation139_spill] sm:$0xff] %v7559_v38  ;;  %v3583_v31 = vmul.f32 1.442695, %v3430_v23  ;;  %v3438_v30 = vsub.f32 %v6938_v21, %v7060_v51  ;;  %v9060_v21 = vld [vmem:[#allocation83_spill] sm:$0xff] }
 0x296   : > { %v3434_v41 = vsub.f32 %v9050_v3, %v7060_v51  ;;  %v7562_v47 = vpop.eup %4476  ;;  %v3595_v20 = vmul.f32 1.442695, %v3436_v26 }
 0x297   : > { %4482 = vrcp.f32 %v3680_v49  ;;  %v3704_v2 = vadd.f32 %v7552_v35, %v3703_v58  ;;  %v3587_v49 = vmul.f32 1.442695, %v3432_v11  ;;  %9052 = vst [vmem:[#allocation140_spill] sm:$0xff] %v7562_v47  ;;  %v7569_v58 = vpop.eup %4478 }
 0x298   : > { %4484 = vpow2.f32 %v3575_v40  ;;  %v3591_v3 = vmul.f32 1.442695, %v3434_v41  ;;  %9053 = vst [vmem:[#allocation147_spill] sm:$0xff] %v7569_v58  ;;  %v7582_v40 = vmul.f32 1.442695, %v3440_v57 }
 0x299   : > { %v3705_v53 = vadd.f32 %v7559_v38, %v3704_v2  ;;  %4486 = vpow2.f32 %v3579_v42  ;;  %v7572_v11 = vpop.eup %4480  ;;  %v7580_v42 = vmul.f32 1.442695, %v3438_v30  ;;  %v9065_v38 = vld [vmem:[#allocation42_spill] sm:$0xff] }
 0x29a   : > { %4488 = vpow2.f32 %v3583_v31  ;;  %9054 = vst [vmem:[#allocation96_spill] sm:$0xff] %v7572_v11  ;;  %9057 = vst [vmem:[#allocation105_spill] sm:$0xff] %v7582_v40  ;;  %v9058_v31 = vld [vmem:[#allocation75_spill] sm:$0xff] }
 0x29b   : > { %v3706_v12 = vadd.f32 %v7562_v47, %v3705_v53  ;;  %4490 = vpow2.f32 %v3587_v49  ;;  %v9059_v53 = vld [vmem:[#allocation76_spill] sm:$0xff]  ;;  %v9064_v47 = vld [vmem:[#allocation38_spill] sm:$0xff] }
 0x29c   : > { %4492 = vpow2.f32 %v3591_v3  ;;  %v9061_v3 = vld [vmem:[#allocation84_spill] sm:$0xff] }
 0x29d   : > { %v3707_v2 = vadd.f32 %v7569_v58, %v3706_v12  ;;  %4494 = vpow2.f32 %v3595_v20  ;;  %v9062_v20 = vld [vmem:[#allocation30_spill] sm:$0xff] }
 0x29e   : > { %4496 = vpow2.f32 %v7580_v42  ;;  %v9145_v42 = vld [vmem:[#allocation155_spill] sm:$0xff] }
 0x29f   : > { %v7585_v26 = vadd.f32 %v7572_v11, %v3707_v2  ;;  %v9063_v11 = vld [vmem:[#allocation36_spill] sm:$0xff] }
 0x2a1   : > { %v7578_v52 = vpop.eup %4482 }
 0x2a2   : > { %9056 = vst [vmem:[#allocation98_spill] sm:$0xff] %v7578_v52  ;;  %v3727_v49 = vmul.f32 %v7578_v52, %v9058_v31  ;;  %v3729_v12 = vmul.f32 %v7578_v52, %v9059_v53  ;;  %v3731_v23 = vmul.f32 %v7578_v52, %v9060_v21  ;;  %v3733_v58 = vmul.f32 %v7578_v52, %v9061_v3  ;;  %v7619_v35 = vpop.eup %4484 }
 0x2a3   : > { %v3735_v30 = vmul.f32 %v7578_v52, %v9062_v20  ;;  %v3737_v57 = vmul.f32 %v7578_v52, %v7175_v54  ;;  %v3739_v2 = vmul.f32 %v7578_v52, %v7185_v4  ;;  %v3741_v31 = vmul.f32 %v7578_v52, %v7191_v56 }
 0x2a4   : > { %v3743_v53 = vmul.f32 %v7578_v52, %v7197_v46  ;;  %v3745_v21 = vmul.f32 %v7578_v52, %v7203_v7  ;;  %v3747_v3 = vmul.f32 %v7578_v52, %v7215_v60  ;;  %v3749_v20 = vmul.f32 %v7578_v52, %v7225_v6 }
 0x2a5   : > { %v3751_v54 = vmul.f32 %v7578_v52, %v9063_v11  ;;  %v3753_v4 = vmul.f32 %v7578_v52, %v7243_v45  ;;  %v3755_v56 = vmul.f32 %v7578_v52, %v9064_v47  ;;  %v3757_v46 = vmul.f32 %v7578_v52, %v9065_v38  ;;  %v7629_v11 = vpop.eup %4486 }
 0x2a6   : > { %v3759_v7 = vmul.f32 %v7578_v52, %v7261_v14  ;;  %v3761_v60 = vmul.f32 %v7578_v52, %v7269_v22  ;;  %v3763_v6 = vmul.f32 %v7578_v52, %v7277_v13  ;;  %v3765_v45 = vmul.f32 %v7578_v52, %v7285_v37  ;;  %9066 = vst [vmem:[#allocation106_spill] sm:$0xff] %v7629_v11  ;;  %v7639_v29 = vpop.eup %4488 }
 0x2a7   : > { %v3767_v47 = vmul.f32 %v7578_v52, %v7293_v8  ;;  %v3769_v38 = vmul.f32 %v7578_v52, %v7301_v63  ;;  %v3771_v14 = vmul.f32 %v7578_v52, %v7306_v48  ;;  %v3773_v22 = vmul.f32 %v7578_v52, %v7311_v16  ;;  %9067 = vst [vmem:[#allocation113_spill] sm:$0xff] %v7639_v29  ;;  %v7649_v32 = vpop.eup %4490 }
 0x2a8   : > { %v3775_v13 = vmul.f32 %v7578_v52, %v7328_v18  ;;  %v3777_v37 = vmul.f32 %v7578_v52, %v7338_v25  ;;  %v3779_v8 = vmul.f32 %v7578_v52, %v7347_v17  ;;  %v3781_v63 = vmul.f32 %v7578_v52, %v7356_v9  ;;  %9068 = vst [vmem:[#allocation114_spill] sm:$0xff] %v7649_v32  ;;  %v7659_v62 = vpop.eup %4492 }
 0x2a9   : > { %v3783_v48 = vmul.f32 %v7578_v52, %v7368_v24  ;;  %v3785_v16 = vmul.f32 %v7578_v52, %v7380_v28  ;;  %v3787_v18 = vmul.f32 %v7578_v52, %v7392_v19  ;;  %v3789_v25 = vmul.f32 %v7578_v52, %v7404_v44  ;;  %9069 = vst [vmem:[#allocation121_spill] sm:$0xff] %v7659_v62  ;;  %v7669_v5 = vpop.eup %4494  ;;  %v9072_v62 = vld [vmem:[#allocation28_spill] sm:$0xff] }
 0x2aa   : > { %v3791_v17 = vmul.f32 %v7578_v52, %v7416_v34  ;;  %v3793_v9 = vmul.f32 %v7578_v52, %v7428_v43  ;;  %v3795_v24 = vmul.f32 %v7578_v52, %v7442_v59  ;;  %v3797_v28 = vmul.f32 %v7578_v52, %v7456_v33  ;;  %9070 = vst [vmem:[#allocation123_spill] sm:$0xff] %v7669_v5  ;;  %v9071_v5 = vld [vmem:[#allocation24_spill] sm:$0xff] }
 0x2ab   : > { %v3799_v19 = vmul.f32 %v7578_v52, %v7467_v1  ;;  %v3801_v44 = vmul.f32 %v7578_v52, %v7478_v61  ;;  %v3803_v34 = vmul.f32 %v7578_v52, %v7489_v15  ;;  %v3805_v43 = vmul.f32 %v7578_v52, %v7497_v27  ;;  %v9073_v15 = vld [vmem:[#allocation29_spill] sm:$0xff]  ;;  %v9074_v27 = vld [vmem:[#allocation32_spill] sm:$0xff] }
 0x2ac   : > { %v3807_v59 = vmul.f32 %v7578_v52, %v7505_v36  ;;  %v3809_v33 = vmul.f32 %v7578_v52, %v7513_v55  ;;  %v3811_v0 = vmul.f32 %v7578_v52, %v7521_v10  ;;  %v3813_v1 = vmul.f32 %v7578_v52, %v7527_v39  ;;  %v9075_v36 = vld [vmem:[#allocation34_spill] sm:$0xff]  ;;  %v9076_v55 = vld [vmem:[#allocation40_spill] sm:$0xff]  ;;  %v9077_v10 = vld [vmem:[#allocation37_spill] sm:$0xff] }
 0x2ad   : > { %v3817_v61 = vmul.f32 %v3727_v49, %v9071_v5  ;;  %v3819_v32 = vmul.f32 %v3729_v12, %v9072_v62  ;;  %v7690_v29 = vmul.f32 %v3731_v23, %v9073_v15  ;;  %v7693_v41 = vmul.f32 %v3733_v58, %v9074_v27  ;;  %v9078_v39 = vld [vmem:[#allocation44_spill] sm:$0xff]  ;;  %v9079_v5 = vld [vmem:[#allocation47_spill] sm:$0xff]  ;;  %v9080_v23 = vld [vmem:[#allocation45_spill] sm:$0xff] }
 0x2ae   : > { %v7696_v40 = vmul.f32 %v3735_v30, %v9075_v36  ;;  %v7699_v11 = vmul.f32 %v3737_v57, %v9076_v55  ;;  %v7702_v50 = vmul.f32 %v3739_v2, %v9077_v10  ;;  %v7705_v52 = vmul.f32 %v3741_v31, %v9078_v39  ;;  %v9081_v58 = vld [vmem:[#allocation13_spill] sm:$0xff]  ;;  %v9082_v30 = vld [vmem:[#allocation48_spill] sm:$0xff] }
 0x2af   : > { %v7708_v62 = vmul.f32 %v3743_v53, %v9079_v5  ;;  %v7711_v49 = vmul.f32 %v3745_v21, %v9080_v23  ;;  %v7714_v12 = vmul.f32 %v3747_v3, %v9081_v58  ;;  %v7717_v15 = vmul.f32 %v3749_v20, %v9082_v30  ;;  %v9083_v57 = vld [vmem:[#allocation52_spill] sm:$0xff]  ;;  %v9084_v2 = vld [vmem:[#allocation53_spill] sm:$0xff]  ;;  %v9086_v53 = vld [vmem:[#allocation19_spill] sm:$0xff] }
 0x2b0   : > { %v7720_v27 = vmul.f32 %v3751_v54, %v9083_v57  ;;  %v7723_v36 = vmul.f32 %v3753_v4, %v9084_v2  ;;  %v9085_v31 = vld [vmem:[#allocation20_spill] sm:$0xff]  ;;  %v7729_v10 = vmul.f32 %v3757_v46, %v9086_v53  ;;  %v9087_v21 = vld [vmem:[#allocation57_spill] sm:$0xff]  ;;  %v9088_v3 = vld [vmem:[#allocation58_spill] sm:$0xff] }
 0x2b1   : > { %v7726_v55 = vmul.f32 %v3755_v56, %v9085_v31  ;;  %v7732_v39 = vmul.f32 %v3759_v7, %v9087_v21  ;;  %v7735_v5 = vmul.f32 %v3761_v60, %v9088_v3  ;;  %v9089_v20 = vld [vmem:[#allocation26_spill] sm:$0xff]  ;;  %v9091_v4 = vld [vmem:[#allocation67_spill] sm:$0xff]  ;;  %v9092_v56 = vld [vmem:[#allocation65_spill] sm:$0xff] }
 0x2b2   : > { %v7738_v23 = vmul.f32 %v3763_v6, %v9089_v20  ;;  %v9090_v54 = vld [vmem:[#allocation62_spill] sm:$0xff]  ;;  %v7744_v30 = vmul.f32 %v3767_v47, %v9091_v4  ;;  %v7747_v57 = vmul.f32 %v3769_v38, %v9092_v56  ;;  %v9093_v46 = vld [vmem:[#allocation71_spill] sm:$0xff]  ;;  %v9094_v7 = vld [vmem:[#allocation73_spill] sm:$0xff] }
 0x2b3   : > { %v7741_v58 = vmul.f32 %v3765_v45, %v9090_v54  ;;  %v7750_v2 = vmul.f32 %v3771_v14, %v9093_v46  ;;  %v7753_v31 = vmul.f32 %v3773_v22, %v9094_v7  ;;  %v9096_v60 = vld [vmem:[#allocation79_spill] sm:$0xff]  ;;  %v9098_v6 = vld [vmem:[#allocation81_spill] sm:$0xff]  ;;  %v9100_v45 = vld [vmem:[#allocation86_spill] sm:$0xff] }
 0x2b4   : > { %v7756_v53 = vmul.f32 %v3775_v13, %v9096_v60  ;;  %v7759_v21 = vmul.f32 %v3777_v37, %v9098_v6  ;;  %v7762_v3 = vmul.f32 %v3779_v8, %v9100_v45  ;;  %v9102_v47 = vld [vmem:[#allocation89_spill] sm:$0xff]  ;;  %v9104_v38 = vld [vmem:[#allocation91_spill] sm:$0xff]  ;;  %v9106_v14 = vld [vmem:[#allocation94_spill] sm:$0xff] }
 0x2b5   : > { %9095 = vst [vmem:[#allocation132_spill] sm:$0xff] %v7753_v31  ;;  %v7765_v20 = vmul.f32 %v3781_v63, %v9102_v47  ;;  %v7768_v54 = vmul.f32 %v3783_v48, %v9104_v38  ;;  %v7771_v4 = vmul.f32 %v3785_v16, %v9106_v14  ;;  %v9108_v22 = vld [vmem:[#allocation99_spill] sm:$0xff]  ;;  %v9110_v13 = vld [vmem:[#allocation101_spill] sm:$0xff]  ;;  %v9120_v16 = vld [vmem:[#allocation122_spill] sm:$0xff] }
 0x2b6   : > { %9097 = vst [vmem:[#allocation134_spill] sm:$0xff] %v7756_v53  ;;  %9099 = vst [vmem:[#allocation141_spill] sm:$0xff] %v7759_v21  ;;  %v7774_v56 = vmul.f32 %v3787_v18, %v9108_v22  ;;  %v7777_v46 = vmul.f32 %v3789_v25, %v9110_v13  ;;  %v9112_v37 = vld [vmem:[#allocation107_spill] sm:$0xff]  ;;  %v9114_v8 = vld [vmem:[#allocation109_spill] sm:$0xff]  ;;  %v7792_v47 = vmul.f32 %v3799_v19, %v9120_v16 }
 0x2b7   : > { %9101 = vst [vmem:[#allocation142_spill] sm:$0xff] %v7762_v3  ;;  %9103 = vst [vmem:[#allocation148_spill] sm:$0xff] %v7765_v20  ;;  %v7780_v7 = vmul.f32 %v3791_v17, %v9112_v37  ;;  %v7783_v60 = vmul.f32 %v3793_v9, %v9114_v8  ;;  %v9116_v63 = vld [vmem:[#allocation115_spill] sm:$0xff]  ;;  %v9118_v48 = vld [vmem:[#allocation117_spill] sm:$0xff] }
 0x2b8   : > { %9105 = vst [vmem:[#allocation149_spill] sm:$0xff] %v7768_v54  ;;  %9107 = vst [vmem:[#allocation75_spill] sm:$0xff] %v7771_v4  ;;  %v7786_v6 = vmul.f32 %v3795_v24, %v9116_v63  ;;  %v7789_v45 = vmul.f32 %v3797_v28, %v9118_v48  ;;  %v9122_v18 = vld [vmem:[#allocation125_spill] sm:$0xff]  ;;  %v9124_v25 = vld [vmem:[#allocation127_spill] sm:$0xff] }
 0x2b9   : > { %9109 = vst [vmem:[#allocation76_spill] sm:$0xff] %v7774_v56  ;;  %9111 = vst [vmem:[#allocation83_spill] sm:$0xff] %v7777_v46  ;;  %v7795_v38 = vmul.f32 %v3801_v44, %v9122_v18  ;;  %v7798_v14 = vmul.f32 %v3803_v34, %v9124_v25  ;;  %v9126_v17 = vld [vmem:[#allocation130_spill] sm:$0xff]  ;;  %v9128_v9 = vld [vmem:[#allocation135_spill] sm:$0xff]  ;;  %v3709_v44 = vadd.f32 %v7619_v35, %v7585_v26 }
 0x2ba   : > { %9113 = vst [vmem:[#allocation84_spill] sm:$0xff] %v7780_v7  ;;  %9115 = vst [vmem:[#allocation30_spill] sm:$0xff] %v7783_v60  ;;  %v7801_v22 = vmul.f32 %v3805_v43, %v9126_v17  ;;  %v7804_v13 = vmul.f32 %v3807_v59, %v9128_v9  ;;  %v9130_v24 = vld [vmem:[#allocation137_spill] sm:$0xff]  ;;  %v9132_v28 = vld [vmem:[#allocation143_spill] sm:$0xff] }
 0x2bb   : > { %9117 = vst [vmem:[#allocation36_spill] sm:$0xff] %v7786_v6  ;;  %9119 = vst [vmem:[#allocation38_spill] sm:$0xff] %v7789_v45  ;;  %v7807_v37 = vmul.f32 %v3809_v33, %v9130_v24  ;;  %v7810_v8 = vmul.f32 %v3811_v0, %v9132_v28  ;;  %v9134_v19 = vld [vmem:[#allocation145_spill] sm:$0xff]  ;;  %v9136_v34 = vld [vmem:[#allocation154_spill] sm:$0xff] }
 0x2bc   : > { %9121 = vst [vmem:[#allocation42_spill] sm:$0xff] %v7792_v47  ;;  %9123 = vst [vmem:[#allocation24_spill] sm:$0xff] %v7795_v38  ;;  %v7813_v63 = vmul.f32 %v3813_v1, %v9134_v19  ;;  %v3446_v48 = vsub.f32 %v9136_v34, %v7060_v51  ;;  %v9137_v43 = vld [vmem:[#allocation152_spill] sm:$0xff]  ;;  %v9139_v33 = vld [vmem:[#allocation106_spill] sm:$0xff]  ;;  %v9146_v34 = vsub.f32 %v9145_v42, %v7060_v51 }
 0x2bd   : > { %9125 = vst [vmem:[#allocation28_spill] sm:$0xff] %v7798_v14  ;;  %9127 = vst [vmem:[#allocation29_spill] sm:$0xff] %v7801_v22  ;;  %v9138_v59 = vsub.f32 %v9137_v43, %v7060_v51  ;;  %v3710_v18 = vadd.f32 %v9139_v33, %v3709_v44  ;;  %v9140_v25 = vld [vmem:[#allocation105_spill] sm:$0xff]  ;;  %v9144_v28 = vld [vmem:[#allocation114_spill] sm:$0xff] }
 0x2be   : > { %9129 = vst [vmem:[#allocation32_spill] sm:$0xff] %v7804_v13  ;;  %9131 = vst [vmem:[#allocation34_spill] sm:$0xff] %v7807_v37  ;;  %4498 = vpow2.f32 %v9140_v25  ;;  %v9141_v0 = vld [vmem:[#allocation153_spill] sm:$0xff]  ;;  %v3615_v26 = vmul.f32 1.442695, %v3446_v48  ;;  %v9148_v25 = vld [vmem:[#allocation156_spill] sm:$0xff] }
 0x2bf   : > { %9133 = vst [vmem:[#allocation40_spill] sm:$0xff] %v7810_v8  ;;  %9135 = vst [vmem:[#allocation37_spill] sm:$0xff] %v7813_v63  ;;  %v3607_v16 = vmul.f32 1.442695, %v9138_v59  ;;  %v9142_v1 = vsub.f32 %v9141_v0, %v7060_v51  ;;  %v9143_v9 = vld [vmem:[#allocation113_spill] sm:$0xff]  ;;  %v9149_v63 = vsub.f32 %v9148_v25, %v7060_v51  ;;  %v3909_v48 = vsel %vm3907_vm1, %v3819_v32, 0.0 }
 0x2c0   : > { %v3711_v24 = vadd.f32 %v9143_v9, %v3710_v18  ;;  %v3619_v43 = vmul.f32 1.442695, %v9146_v34  ;;  %v9147_v59 = vld [vmem:[#allocation121_spill] sm:$0xff]  ;;  %v7840_v18 = vpop.eup %4496  ;;  %v9154_v34 = vld [vmem:[#allocation98_spill] sm:$0xff]  ;;  %v9184_v14 = vld [vmem:[#allocation92_spill] sm:$0xff] }
 0x2c1   : > { %v3611_v17 = vmul.f32 1.442695, %v9142_v1  ;;  %4500 = vpow2.f32 %v3607_v16  ;;  %v3623_v0 = vmul.f32 1.442695, %v9149_v63  ;;  %v9150_v1 = vld [vmem:[#allocation123_spill] sm:$0xff]  ;;  %v3908_v16 = vsel %vm3907_vm1, %v3817_v61, 0.0 }
 0x2c2   : > { %v3712_v19 = vadd.f32 %v9144_v28, %v3711_v24  ;;  %v9155_v63 = vld [vmem:[#allocation158_spill] sm:$0xff]  ;;  %v3910_v32 = vadd.f32 %v3909_v48, %v3908_v16  ;;  %v3913_v16 = vsel %vm3907_vm1, %v7693_v41, 0.0  ;;  %v9185_v38 = vld [vmem:[#allocation95_spill] sm:$0xff]  ;;  %v9187_v45 = vld [vmem:[#allocation104_spill] sm:$0xff] }
 0x2c3   : > { %4502 = vpow2.f32 %v3611_v17  ;;  %v9151_v17 = vld [vmem:[#allocation157_spill] sm:$0xff]  ;;  %v9156_v61 = vsub.f32 %v9155_v63, %v7060_v51  ;;  %v9186_v47 = vld [vmem:[#allocation103_spill] sm:$0xff]  ;;  %v9189_v60 = vld [vmem:[#allocation112_spill] sm:$0xff] }
 0x2c4   : > { %v3713_v44 = vadd.f32 %v9147_v59, %v3712_v19  ;;  %4504 = vpow2.f32 %v3615_v26  ;;  %v9152_v24 = vsub.f32 %v9151_v17, %v7060_v51  ;;  %v9153_v26 = vld [vmem:[#allocation119_spill] sm:$0xff]  ;;  %v9157_v17 = vld [vmem:[#allocation150_spill] sm:$0xff]  ;;  %v9190_v7 = vld [vmem:[#allocation120_spill] sm:$0xff] }
 0x2c5   : > { %4506 = vpow2.f32 %v3619_v43  ;;  %v3815_v37 = vmul.f32 %v9154_v34, %v9153_v26  ;;  %v3911_v43 = vsel %vm3907_vm1, %v7690_v29, 0.0  ;;  %v9159_v26 = vld [vmem:[#allocation159_spill] sm:$0xff]  ;;  %v9191_v46 = vld [vmem:[#allocation128_spill] sm:$0xff] }
 0x2c6   : > { %v3714_v8 = vadd.f32 %v9150_v1, %v3713_v44  ;;  %v3627_v42 = vmul.f32 1.442695, %v9152_v24  ;;  %4508 = vpow2.f32 %v3623_v0  ;;  %v3631_v44 = vmul.f32 1.442695, %v9156_v61  ;;  %v9188_v6 = vld [vmem:[#allocation111_spill] sm:$0xff]  ;;  %v9194_v54 = vld [vmem:[#allocation140_spill] sm:$0xff] }
 0x2c7   : > { %v7857_v24 = vmul.f32 %v3815_v37, %v9157_v17  ;;  %v9160_v34 = vsub.f32 %v9159_v26, %v7060_v51  ;;  %v3912_v22 = vadd.f32 %v3911_v43, %v3910_v32  ;;  %v3921_v26 = vsel %vm3907_vm1, %v7705_v52, 0.0  ;;  %v9192_v56 = vld [vmem:[#allocation131_spill] sm:$0xff]  ;;  %v9196_v3 = vld [vmem:[#allocation96_spill] sm:$0xff] }
 0x2c8   : > { %v3715_v19 = vadd.f32 %v7840_v18, %v3714_v8  ;;  %v7848_v25 = vpop.eup %4498  ;;  %4510 = vpow2.f32 %v3627_v42  ;;  %v9193_v4 = vld [vmem:[#allocation139_spill] sm:$0xff] }
 0x2c9   : > { %9158 = vst [vmem:[#allocation44_spill] sm:$0xff] %v7857_v24  ;;  %v3635_v0 = vmul.f32 1.442695, %v9160_v34  ;;  %4512 = vpow2.f32 %v3631_v44  ;;  %v3914_v29 = vadd.f32 %v3913_v16, %v3912_v22  ;;  %v3919_v22 = vsel %vm3907_vm1, %v7702_v50, 0.0  ;;  %v9183_v24 = vld [vmem:[#allocation87_spill] sm:$0xff] }
 0x2ca   : > { %v3716_v13 = vadd.f32 %v7848_v25, %v3715_v19  ;;  %v3915_v19 = vsel %vm3907_vm1, %v7696_v40, 0.0  ;;  %v9195_v20 = vld [vmem:[#allocation147_spill] sm:$0xff] }
 0x2cb   : > { %v7859_v8 = vpop.eup %4500  ;;  %4514 = vpow2.f32 %v3635_v0  ;;  %v3916_v51 = vadd.f32 %v3915_v19, %v3914_v29  ;;  %v9198_v31 = vld [vmem:[#allocation27_spill] sm:$0xff] }
 0x2cc   : > { %v3717_v63 = vadd.f32 %v7859_v8, %v3716_v13  ;;  %v3917_v13 = vsel %vm3907_vm1, %v7699_v11, 0.0 }
 0x2cd   : > { %v7867_v48 = vpop.eup %4502  ;;  %v3918_v41 = vadd.f32 %v3917_v13, %v3916_v51 }
 0x2ce   : > { %v3718_v37 = vadd.f32 %v7867_v48, %v3717_v63  ;;  %v7872_v42 = vpop.eup %4504  ;;  %v3923_v63 = vsel %vm3907_vm1, %v7708_v62, 0.0  ;;  %v3929_v62 = vsel %vm3907_vm1, %v7717_v15, 0.0  ;;  %v3941_v15 = vsel %vm3907_vm1, %v7735_v5, 0.0 }
 0x2cf   : > { %v7877_v32 = vpop.eup %4506  ;;  %v3920_v40 = vadd.f32 %v3919_v22, %v3918_v41  ;;  %v7936_v5 = vsel %vm3907_vm1, %v7750_v2, 0.0  ;;  %v9174_v2 = vld [vmem:[#allocation22_spill] sm:$0xff] }
 0x2d0   : > { %v3719_v61 = vadd.f32 %v7872_v42, %v3718_v37  ;;  %v7882_v43 = vpop.eup %4508  ;;  %v3925_v37 = vsel %vm3907_vm1, %v7711_v49, 0.0  ;;  %v3933_v49 = vsel %vm3907_vm1, %v7723_v36, 0.0  ;;  %9167 = vst [vmem:[#allocation20_spill] sm:$0xff] %v7936_v5 }
 0x2d1   : > { %v3922_v0 = vadd.f32 %v3921_v26, %v3920_v40 }
 0x2d2   : > { %v3720_v44 = vadd.f32 %v7877_v32, %v3719_v61  ;;  %v7887_v34 = vpop.eup %4510  ;;  %v3927_v61 = vsel %vm3907_vm1, %v7714_v12, 0.0  ;;  %v3937_v12 = vsel %vm3907_vm1, %v7729_v10, 0.0  ;;  %v7928_v10 = vsel %vm3907_vm1, %v7744_v30, 0.0 }
 0x2d3   : > { %v7892_v16 = vpop.eup %4512  ;;  %v3924_v29 = vadd.f32 %v3923_v63, %v3922_v0  ;;  %v3939_v0 = vsel %vm3907_vm1, %v7732_v39, 0.0  ;;  %9165 = vst [vmem:[#allocation52_spill] sm:$0xff] %v7928_v10  ;;  %v7932_v39 = vsel %vm3907_vm1, %v7747_v57, 0.0  ;;  %v9201_v10 = vld [vmem:[#allocation35_spill] sm:$0xff] }
 0x2d4   : > { %v3721_v17 = vadd.f32 %v7882_v43, %v3720_v44  ;;  %v3931_v44 = vsel %vm3907_vm1, %v7720_v27, 0.0  ;;  %v7918_v27 = vsel %vm3907_vm1, %v7738_v23, 0.0  ;;  %9166 = vst [vmem:[#allocation53_spill] sm:$0xff] %v7932_v39  ;;  %v9168_v23 = vld [vmem:[#allocation11_spill] sm:$0xff] }
 0x2d5   : > { %v7897_v19 = vpop.eup %4514  ;;  %v3926_v51 = vadd.f32 %v3925_v37, %v3924_v29  ;;  %9162 = vst [vmem:[#allocation45_spill] sm:$0xff] %v7918_v27  ;;  %v9169_v29 = vld [vmem:[#allocation16_spill] sm:$0xff] }
 0x2d6   : > { %v3722_v11 = vadd.f32 %v7887_v34, %v3721_v17  ;;  %9161 = vst [vmem:[#allocation47_spill] sm:$0xff] %v7897_v19  ;;  %v3935_v17 = vsel %vm3907_vm1, %v7726_v55, 0.0  ;;  %v7924_v55 = vsel %vm3907_vm1, %v7741_v58, 0.0  ;;  %v9170_v58 = vld [vmem:[#allocation50_spill] sm:$0xff] }
 0x2d7   : > { %v3928_v13 = vadd.f32 %v3927_v61, %v3926_v51  ;;  %9164 = vst [vmem:[#allocation48_spill] sm:$0xff] %v7924_v55  ;;  %v9171_v51 = vld [vmem:[#allocation49_spill] sm:$0xff]  ;;  %v9173_v61 = vld [vmem:[#allocation55_spill] sm:$0xff] }
 0x2d8   : > { %v3723_v50 = vadd.f32 %v7892_v16, %v3722_v11  ;;  %v9202_v55 = vld [vmem:[#allocation39_spill] sm:$0xff] }
 0x2d9   : > { %v3930_v41 = vadd.f32 %v3929_v62, %v3928_v13 }
 0x2da   : > { %v3724_v52 = vadd.f32 %v7897_v19, %v3723_v50  ;;  %v9199_v19 = vld [vmem:[#allocation33_spill] sm:$0xff] }
 0x2db   : > { %v3932_v22 = vadd.f32 %v3931_v44, %v3930_v41  ;;  %v9175_v41 = vld [vmem:[#allocation56_spill] sm:$0xff] }
 0x2dc   : > { %4516 = vrcp.f32 %v3724_v52  ;;  %v9172_v52 = vld [vmem:[#allocation18_spill] sm:$0xff] }
 0x2dd   : > { %v3934_v40 = vadd.f32 %v3933_v49, %v3932_v22  ;;  %v9176_v22 = vld [vmem:[#allocation25_spill] sm:$0xff] }
 0x2df   : > { %v3936_v26 = vadd.f32 %v3935_v17, %v3934_v40  ;;  %v9177_v40 = vld [vmem:[#allocation63_spill] sm:$0xff] }
 0x2e1   : > { %v3938_v11 = vadd.f32 %v3937_v12, %v3936_v26  ;;  %v9178_v26 = vld [vmem:[#allocation68_spill] sm:$0xff] }
 0x2e3   : > { %v3940_v21 = vadd.f32 %v3939_v0, %v3938_v11  ;;  %v9205_v11 = vld [vmem:[#allocation46_spill] sm:$0xff] }
 0x2e6   : > { %v7920_v36 = vpop.eup %4516 }
 0x2e7   : > { %9163 = vst [vmem:[#allocation13_spill] sm:$0xff] %v7920_v36  ;;  %v3728_v63 = vmul.f32 %v7920_v36, %v9168_v23  ;;  %v3730_v50 = vmul.f32 %v7920_v36, %v9169_v29  ;;  %v3732_v37 = vmul.f32 %v7920_v36, %v9170_v58  ;;  %v3734_v30 = vmul.f32 %v7920_v36, %v9171_v51  ;;  %v9179_v23 = vld [vmem:[#allocation70_spill] sm:$0xff]  ;;  %v9180_v58 = vld [vmem:[#allocation77_spill] sm:$0xff] }
 0x2e8   : > { %v3736_v57 = vmul.f32 %v7920_v36, %v9172_v52  ;;  %v3738_v13 = vmul.f32 %v7920_v36, %v9173_v61  ;;  %v3740_v62 = vmul.f32 %v7920_v36, %v9174_v2  ;;  %v3742_v44 = vmul.f32 %v7920_v36, %v9175_v41  ;;  %v9181_v52 = vld [vmem:[#allocation78_spill] sm:$0xff]  ;;  %v9182_v2 = vld [vmem:[#allocation85_spill] sm:$0xff] }
 0x2e9   : > { %v3744_v49 = vmul.f32 %v7920_v36, %v9176_v22  ;;  %v3746_v17 = vmul.f32 %v7920_v36, %v9177_v40  ;;  %v3748_v12 = vmul.f32 %v7920_v36, %v9178_v26  ;;  %v3750_v29 = vmul.f32 %v7920_v36, %v9179_v23 }
 0x2ea   : > { %v3752_v51 = vmul.f32 %v7920_v36, %v9180_v58  ;;  %v3754_v61 = vmul.f32 %v7920_v36, %v9181_v52  ;;  %v3756_v41 = vmul.f32 %v7920_v36, %v9182_v2  ;;  %v3758_v22 = vmul.f32 %v7920_v36, %v9183_v24 }
 0x2eb   : > { %v3760_v40 = vmul.f32 %v7920_v36, %v9184_v14  ;;  %v3762_v26 = vmul.f32 %v7920_v36, %v9185_v38  ;;  %v3764_v23 = vmul.f32 %v7920_v36, %v9186_v47  ;;  %v3766_v58 = vmul.f32 %v7920_v36, %v9187_v45 }
 0x2ec   : > { %v3768_v52 = vmul.f32 %v7920_v36, %v9188_v6  ;;  %v3770_v2 = vmul.f32 %v7920_v36, %v9189_v60  ;;  %v3772_v24 = vmul.f32 %v7920_v36, %v9190_v7  ;;  %v3774_v14 = vmul.f32 %v7920_v36, %v9191_v46 }
 0x2ed   : > { %v3776_v38 = vmul.f32 %v7920_v36, %v9192_v56  ;;  %v3778_v47 = vmul.f32 %v7920_v36, %v9193_v4  ;;  %v3780_v45 = vmul.f32 %v7920_v36, %v9194_v54  ;;  %v3782_v6 = vmul.f32 %v7920_v36, %v9195_v20 }
 0x2ee   : > { %v3784_v60 = vmul.f32 %v7920_v36, %v9196_v3  ;;  %v3786_v7 = vmul.f32 %v7920_v36, %v7619_v35  ;;  %v3788_v46 = vmul.f32 %v7920_v36, %v9139_v33  ;;  %v3790_v56 = vmul.f32 %v7920_v36, %v9143_v9 }
 0x2ef   : > { %v3792_v4 = vmul.f32 %v7920_v36, %v9144_v28  ;;  %v3794_v54 = vmul.f32 %v7920_v36, %v9147_v59  ;;  %v3796_v20 = vmul.f32 %v7920_v36, %v9150_v1  ;;  %v3798_v3 = vmul.f32 %v7920_v36, %v7840_v18 }
 0x2f0   : > { %v3800_v35 = vmul.f32 %v7920_v36, %v7848_v25  ;;  %v3802_v33 = vmul.f32 %v7920_v36, %v7859_v8  ;;  %v3804_v9 = vmul.f32 %v7920_v36, %v7867_v48  ;;  %v3806_v28 = vmul.f32 %v7920_v36, %v7872_v42  ;;  %v9197_v8 = vld [vmem:[#allocation23_spill] sm:$0xff] }
 0x2f1   : > { %v3808_v59 = vmul.f32 %v7920_v36, %v7877_v32  ;;  %v3810_v1 = vmul.f32 %v7920_v36, %v7882_v43  ;;  %v3812_v18 = vmul.f32 %v7920_v36, %v7887_v34  ;;  %v3814_v25 = vmul.f32 %v7920_v36, %v7892_v16  ;;  %v9200_v42 = vld [vmem:[#allocation31_spill] sm:$0xff]  ;;  %v9203_v43 = vld [vmem:[#allocation41_spill] sm:$0xff] }
 0x2f2   : > { %v3818_v53 = vmul.f32 %v3728_v63, %v9197_v8  ;;  %v3820_v48 = vmul.f32 %v3730_v50, %v9198_v31  ;;  %v3822_v5 = vmul.f32 %v3732_v37, %v9199_v19  ;;  %v3824_v39 = vmul.f32 %v3734_v30, %v9200_v42  ;;  %v9204_v36 = vld [vmem:[#allocation43_spill] sm:$0xff]  ;;  %v9206_v31 = vld [vmem:[#allocation12_spill] sm:$0xff]  ;;  %v9207_v19 = vld [vmem:[#allocation14_spill] sm:$0xff] }
 0x2f3   : > { %v3826_v32 = vmul.f32 %v3736_v57, %v9201_v10  ;;  %v8032_v27 = vmul.f32 %v3738_v13, %v9202_v55  ;;  %v8035_v34 = vmul.f32 %v3740_v62, %v9203_v43  ;;  %v3942_v16 = vadd.f32 %v3941_v15, %v3940_v21  ;;  %v9208_v10 = vld [vmem:[#allocation15_spill] sm:$0xff]  ;;  %v9210_v13 = vld [vmem:[#allocation54_spill] sm:$0xff]  ;;  %v9211_v15 = vld [vmem:[#allocation45_spill] sm:$0xff] }
 0x2f4   : > { %v8038_v0 = vmul.f32 %v3742_v44, %v9204_v36  ;;  %v8041_v63 = vmul.f32 %v3744_v49, %v9205_v11  ;;  %v8044_v50 = vmul.f32 %v3746_v17, %v9206_v31  ;;  %v8047_v37 = vmul.f32 %v3748_v12, %v9207_v19  ;;  %v9209_v55 = vld [vmem:[#allocation51_spill] sm:$0xff]  ;;  %v9212_v62 = vld [vmem:[#allocation17_spill] sm:$0xff]  ;;  %v9215_v42 = vld [vmem:[#allocation60_spill] sm:$0xff] }
 0x2f5   : > { %v8050_v30 = vmul.f32 %v3750_v29, %v9208_v10  ;;  %v8053_v57 = vmul.f32 %v3752_v51, %v9209_v55  ;;  %v8056_v21 = vmul.f32 %v3754_v61, %v9210_v13  ;;  %v3944_v36 = vadd.f32 %v9211_v15, %v3942_v16  ;;  %v9213_v49 = vld [vmem:[#allocation21_spill] sm:$0xff]  ;;  %v9214_v8 = vld [vmem:[#allocation59_spill] sm:$0xff]  ;;  %v9217_v11 = vld [vmem:[#allocation64_spill] sm:$0xff] }
 0x2f6   : > { %v8060_v44 = vmul.f32 %v3756_v41, %v9212_v62  ;;  %v8063_v17 = vmul.f32 %v3758_v22, %v9213_v49  ;;  %v8066_v12 = vmul.f32 %v3760_v40, %v9214_v8  ;;  %v8069_v29 = vmul.f32 %v3762_v26, %v9215_v42  ;;  %v9216_v43 = vld [vmem:[#allocation61_spill] sm:$0xff]  ;;  %v9218_v31 = vld [vmem:[#allocation66_spill] sm:$0xff]  ;;  %v9219_v41 = vld [vmem:[#allocation48_spill] sm:$0xff] }
 0x2f7   : > { %v8072_v51 = vmul.f32 %v3764_v23, %v9216_v43  ;;  %v8075_v61 = vmul.f32 %v3766_v58, %v9217_v11  ;;  %v8078_v16 = vmul.f32 %v3768_v52, %v9218_v31  ;;  %v3946_v19 = vadd.f32 %v9219_v41, %v3944_v36  ;;  %v9220_v10 = vld [vmem:[#allocation69_spill] sm:$0xff]  ;;  %v9221_v55 = vld [vmem:[#allocation72_spill] sm:$0xff]  ;;  %v9222_v13 = vld [vmem:[#allocation74_spill] sm:$0xff] }
 0x2f8   : > { %v8082_v22 = vmul.f32 %v3770_v2, %v9220_v10  ;;  %v8085_v40 = vmul.f32 %v3772_v24, %v9221_v55  ;;  %v8088_v26 = vmul.f32 %v3774_v14, %v9222_v13  ;;  %v9223_v15 = vld [vmem:[#allocation80_spill] sm:$0xff]  ;;  %v9224_v62 = vld [vmem:[#allocation82_spill] sm:$0xff]  ;;  %v9228_v43 = vld [vmem:[#allocation93_spill] sm:$0xff] }
 0x2f9   : > { %v8091_v23 = vmul.f32 %v3776_v38, %v9223_v15  ;;  %v8094_v58 = vmul.f32 %v3778_v47, %v9224_v62  ;;  %v9225_v49 = vld [vmem:[#allocation88_spill] sm:$0xff]  ;;  %v9226_v8 = vld [vmem:[#allocation90_spill] sm:$0xff]  ;;  %v8104_v24 = vmul.f32 %v3784_v60, %v9228_v43  ;;  %v9229_v11 = vld [vmem:[#allocation97_spill] sm:$0xff] }
 0x2fa   : > { %v8097_v52 = vmul.f32 %v3780_v45, %v9225_v49  ;;  %v8100_v36 = vmul.f32 %v3782_v6, %v9226_v8  ;;  %v9227_v2 = vld [vmem:[#allocation52_spill] sm:$0xff]  ;;  %v8107_v14 = vmul.f32 %v3786_v7, %v9229_v11  ;;  %v9231_v41 = vld [vmem:[#allocation102_spill] sm:$0xff]  ;;  %v9235_v60 = vld [vmem:[#allocation53_spill] sm:$0xff] }
 0x2fb   : > { %v3948_v42 = vadd.f32 %v9227_v2, %v3946_v19  ;;  %v9230_v31 = vld [vmem:[#allocation100_spill] sm:$0xff]  ;;  %v8113_v47 = vmul.f32 %v3790_v56, %v9231_v41  ;;  %v9233_v55 = vld [vmem:[#allocation110_spill] sm:$0xff]  ;;  %v9239_v2 = vld [vmem:[#allocation129_spill] sm:$0xff] }
 0x2fc   : > { %v8110_v38 = vmul.f32 %v3788_v46, %v9230_v31  ;;  %v9232_v10 = vld [vmem:[#allocation108_spill] sm:$0xff]  ;;  %v8119_v6 = vmul.f32 %v3794_v54, %v9233_v55  ;;  %v9236_v62 = vld [vmem:[#allocation118_spill] sm:$0xff]  ;;  %v9240_v43 = vld [vmem:[#allocation133_spill] sm:$0xff] }
 0x2fd   : > { %v8116_v45 = vmul.f32 %v3792_v4, %v9232_v10  ;;  %v9234_v13 = vld [vmem:[#allocation116_spill] sm:$0xff]  ;;  %v3950_v15 = vadd.f32 %v9235_v60, %v3948_v42  ;;  %v8126_v7 = vmul.f32 %v3798_v3, %v9236_v62  ;;  %v9238_v8 = vld [vmem:[#allocation126_spill] sm:$0xff]  ;;  %v8135_v4 = vmul.f32 %v3804_v9, %v9239_v2  ;;  %v9247_v9 = vld [vmem:[#allocation13_spill] sm:$0xff] }
 0x2fe   : > { %v8122_v19 = vmul.f32 %v3796_v20, %v9234_v13  ;;  %v9237_v49 = vld [vmem:[#allocation124_spill] sm:$0xff]  ;;  %v8132_v56 = vmul.f32 %v3802_v33, %v9238_v8  ;;  %v8138_v54 = vmul.f32 %v3806_v28, %v9240_v43  ;;  %v9242_v31 = vld [vmem:[#allocation138_spill] sm:$0xff]  ;;  %v9246_v13 = vld [vmem:[#allocation47_spill] sm:$0xff] }
 0x2ff   : > { %v8129_v46 = vmul.f32 %v3800_v35, %v9237_v49  ;;  %v9241_v11 = vld [vmem:[#allocation136_spill] sm:$0xff]  ;;  %v8144_v42 = vmul.f32 %v3810_v1, %v9242_v31  ;;  %v9245_v55 = vld [vmem:[#allocation146_spill] sm:$0xff]  ;;  %v3816_v60 = vmul.f32 %v9247_v9, %v9246_v13  ;;  %v3998_v49 = vsel %vm3907_vm1, %v3820_v48, 0.0  ;;  %v9249_v8 = vld [vmem:[#allocation151_spill] sm:$0xff] }
 0x300   : > { %v8141_v20 = vmul.f32 %v3808_v59, %v9241_v11  ;;  %v9243_v3 = vld [vmem:[#allocation20_spill] sm:$0xff]  ;;  %v8151_v33 = vmul.f32 %v3814_v25, %v9245_v55  ;;  %v3997_v59 = vsel %vm3907_vm1, %v3818_v53, 0.0  ;;  %v4000_v25 = vsel %vm3907_vm1, %v3822_v5, 0.0  ;;  %v9252_v48 = vld [vmem:[#allocation142_spill] sm:$0xff] }
 0x301   : > { %v3952_v41 = vadd.f32 %v9243_v3, %v3950_v15  ;;  %v9244_v10 = vld [vmem:[#allocation144_spill] sm:$0xff]  ;;  %v8160_v2 = vmul.f32 %v3816_v60, %v9249_v8  ;;  %v3999_v15 = vadd.f32 %v3998_v49, %v3997_v59  ;;  %v9251_v3 = vld [vmem:[#allocation141_spill] sm:$0xff]  ;;  %v4002_v55 = vsel %vm3907_vm1, %v3824_v39, 0.0 }
 0x302   : > { %v8148_v35 = vmul.f32 %v3812_v18, %v9244_v10  ;;  %v9248_v62 = vld [vmem:[#allocation132_spill] sm:$0xff]  ;;  %v9250_v18 = vld [vmem:[#allocation134_spill] sm:$0xff]  ;;  %v3957_v10 = vsel %vm3907_vm1, %v9251_v3, 0.0  ;;  %v4004_v9 = vsel %vm3907_vm1, %v3826_v32, 0.0  ;;  %v4006_v5 = vsel %vm3907_vm1, %v8032_v27, 0.0  ;;  %v9254_v8 = vld [vmem:[#allocation149_spill] sm:$0xff] }
 0x303   : > { %v3953_v28 = vsel %vm3907_vm1, %v9248_v62, 0.0  ;;  %v3955_v43 = vsel %vm3907_vm1, %v9250_v18, 0.0  ;;  %v4001_v31 = vadd.f32 %v4000_v25, %v3999_v15  ;;  %v3963_v39 = vsel %vm3907_vm1, %v9254_v8, 0.0  ;;  %v9255_v25 = vld [vmem:[#allocation75_spill] sm:$0xff] }
 0x304   : > { %v3954_v1 = vadd.f32 %v3953_v28, %v3952_v41  ;;  %v3959_v41 = vsel %vm3907_vm1, %v9252_v48, 0.0  ;;  %v9253_v28 = vld [vmem:[#allocation148_spill] sm:$0xff]  ;;  %v4008_v15 = vsel %vm3907_vm1, %v8035_v34, 0.0  ;;  %v3965_v32 = vsel %vm3907_vm1, %v9255_v25, 0.0  ;;  %v9257_v48 = vld [vmem:[#allocation83_spill] sm:$0xff] }
 0x305   : > { %v4003_v13 = vadd.f32 %v4002_v55, %v4001_v31  ;;  %v3961_v59 = vsel %vm3907_vm1, %v9253_v28, 0.0  ;;  %v4012_v55 = vsel %vm3907_vm1, %v8041_v63, 0.0  ;;  %v3969_v34 = vsel %vm3907_vm1, %v9257_v48, 0.0 }
 0x306   : > { %v3956_v11 = vadd.f32 %v3955_v43, %v3954_v1  ;;  %v4016_v28 = vsel %vm3907_vm1, %v8047_v37, 0.0  ;;  %v4026_v48 = vsel %vm3907_vm1, %v8063_v17, 0.0 }
 0x307   : > { %v4005_v62 = vadd.f32 %v4004_v9, %v4003_v13 }
 0x308   : > { %v3958_v53 = vadd.f32 %v3957_v10, %v3956_v11  ;;  %v4010_v11 = vsel %vm3907_vm1, %v8038_v0, 0.0  ;;  %v9256_v10 = vld [vmem:[#allocation76_spill] sm:$0xff] }
 0x309   : > { %v4007_v1 = vadd.f32 %v4006_v5, %v4005_v62  ;;  %v3967_v27 = vsel %vm3907_vm1, %v9256_v10, 0.0  ;;  %v9258_v62 = vld [vmem:[#allocation84_spill] sm:$0xff]  ;;  %v9262_v10 = vld [vmem:[#allocation42_spill] sm:$0xff] }
 0x30a   : > { %v3960_v60 = vadd.f32 %v3959_v41, %v3958_v53  ;;  %v4014_v41 = vsel %vm3907_vm1, %v8044_v50, 0.0  ;;  %v3971_v0 = vsel %vm3907_vm1, %v9258_v62, 0.0 }
 0x30b   : > { %v4009_v43 = vadd.f32 %v4008_v15, %v4007_v1  ;;  %v4018_v1 = vsel %vm3907_vm1, %v8050_v30, 0.0  ;;  %v9260_v15 = vld [vmem:[#allocation36_spill] sm:$0xff]  ;;  %v3979_v30 = vsel %vm3907_vm1, %v9262_v10, 0.0 }
 0x30c   : > { %v3962_v49 = vadd.f32 %v3961_v59, %v3960_v60  ;;  %v3975_v50 = vsel %vm3907_vm1, %v9260_v15, 0.0  ;;  %v9267_v15 = vld [vmem:[#allocation34_spill] sm:$0xff] }
 0x30d   : > { %v4011_v3 = vadd.f32 %v4010_v11, %v4009_v43  ;;  %v4022_v11 = vsel %vm3907_vm1, %v8056_v21, 0.0 }
 0x30e   : > { %v3964_v18 = vadd.f32 %v3963_v39, %v3962_v49  ;;  %v9259_v49 = vld [vmem:[#allocation30_spill] sm:$0xff] }
 0x30f   : > { %v4013_v13 = vadd.f32 %v4012_v55, %v4011_v3  ;;  %v3973_v63 = vsel %vm3907_vm1, %v9259_v49, 0.0 }
 0x310   : > { %v3966_v31 = vadd.f32 %v3965_v32, %v3964_v18  ;;  %v4020_v18 = vsel %vm3907_vm1, %v8053_v57, 0.0  ;;  %v9261_v32 = vld [vmem:[#allocation38_spill] sm:$0xff] }
 0x311   : > { %v4015_v60 = vadd.f32 %v4014_v41, %v4013_v13  ;;  %v3977_v37 = vsel %vm3907_vm1, %v9261_v32, 0.0  ;;  %v9263_v13 = vld [vmem:[#allocation24_spill] sm:$0xff]  ;;  %v4036_v32 = vsel %vm3907_vm1, %v8078_v16, 0.0  ;;  %v4042_v16 = vsel %vm3907_vm1, %v8088_v26, 0.0 }
 0x312   : > { %v3968_v53 = vadd.f32 %v3967_v27, %v3966_v31  ;;  %v4024_v27 = vsel %vm3907_vm1, %v8060_v44, 0.0  ;;  %v3981_v57 = vsel %vm3907_vm1, %v9263_v13, 0.0  ;;  %v4052_v26 = vsel %vm3907_vm1, %v8104_v24, 0.0 }
 0x313   : > { %v4017_v5 = vadd.f32 %v4016_v28, %v4015_v60  ;;  %v4028_v60 = vsel %vm3907_vm1, %v8066_v12, 0.0  ;;  %v9265_v28 = vld [vmem:[#allocation29_spill] sm:$0xff]  ;;  %v3989_v12 = vsel %vm3907_vm1, %v9267_v15, 0.0  ;;  %v4062_v24 = vsel %vm3907_vm1, %v8119_v6, 0.0 }
 0x314   : > { %v3970_v9 = vadd.f32 %v3969_v34, %v3968_v53  ;;  %v3985_v44 = vsel %vm3907_vm1, %v9265_v28, 0.0  ;;  %v4072_v6 = vsel %vm3907_vm1, %v8135_v4, 0.0  ;;  %v4080_v4 = vsel %vm3907_vm1, %v8148_v35, 0.0 }
 0x315   : > { %v4019_v39 = vadd.f32 %v4018_v1, %v4017_v5  ;;  %v4032_v1 = vsel %vm3907_vm1, %v8072_v51, 0.0 }
 0x316   : > { %v3972_v59 = vadd.f32 %v3971_v0, %v3970_v9  ;;  %v9264_v9 = vld [vmem:[#allocation28_spill] sm:$0xff] }
 0x317   : > { %v4021_v25 = vadd.f32 %v4020_v18, %v4019_v39  ;;  %v3983_v21 = vsel %vm3907_vm1, %v9264_v9, 0.0  ;;  %v4048_v9 = vsel %vm3907_vm1, %v8097_v52, 0.0  ;;  %v4058_v52 = vsel %vm3907_vm1, %v8113_v47, 0.0 }
 0x318   : > { %v3974_v8 = vadd.f32 %v3973_v63, %v3972_v59  ;;  %v4030_v59 = vsel %vm3907_vm1, %v8069_v29, 0.0  ;;  %v9266_v63 = vld [vmem:[#allocation32_spill] sm:$0xff]  ;;  %v4068_v47 = vsel %vm3907_vm1, %v8129_v46, 0.0 }
 0x319   : > { %v4023_v3 = vadd.f32 %v4022_v11, %v4021_v25  ;;  %v3987_v17 = vsel %vm3907_vm1, %v9266_v63, 0.0  ;;  %v9268_v25 = vld [vmem:[#allocation40_spill] sm:$0xff] }
 0x31a   : > { %v3976_v43 = vadd.f32 %v3975_v50, %v3974_v8  ;;  %v4034_v50 = vsel %vm3907_vm1, %v8075_v61, 0.0  ;;  %v3991_v29 = vsel %vm3907_vm1, %v9268_v25, 0.0 }
 0x31b   : > { %v4025_v53 = vadd.f32 %v4024_v27, %v4023_v3  ;;  %v4038_v3 = vsel %vm3907_vm1, %v8082_v22, 0.0  ;;  %v9270_v27 = vld [vmem:[#allocation44_spill] sm:$0xff]  ;;  %v4046_v22 = vsel %vm3907_vm1, %v8094_v58, 0.0  ;;  %v4056_v58 = vsel %vm3907_vm1, %v8110_v38, 0.0 }
 0x31c   : > { %v3978_v31 = vadd.f32 %v3977_v37, %v3976_v43  ;;  %v3995_v61 = vsel %vm3907_vm1, %v9270_v27, 0.0  ;;  %v4066_v38 = vsel %vm3907_vm1, %v8126_v7, 0.0  ;;  %v4076_v7 = vsel %vm3907_vm1, %v8141_v20, 0.0 }
 0x31d   : > { %v4027_v41 = vadd.f32 %v4026_v48, %v4025_v53  ;;  %v4044_v48 = vsel %vm3907_vm1, %v8091_v23, 0.0  ;;  %v4054_v23 = vsel %vm3907_vm1, %v8107_v14, 0.0  ;;  %v4064_v14 = vsel %vm3907_vm1, %v8122_v19, 0.0 }
 0x31e   : > { %v3980_v55 = vadd.f32 %v3979_v30, %v3978_v31  ;;  %v9269_v31 = vld [vmem:[#allocation37_spill] sm:$0xff]  ;;  %v4074_v19 = vsel %vm3907_vm1, %v8138_v54, 0.0  ;;  %v4082_v54 = vsel %vm3907_vm1, %v8151_v33, 0.0 }
 0x31f   : > { %v4029_v0 = vadd.f32 %v4028_v60, %v4027_v41  ;;  %v3993_v51 = vsel %vm3907_vm1, %v9269_v31, 0.0 }
 0x320   : > { %v3982_v34 = vadd.f32 %v3981_v57, %v3980_v55  ;;  %v4040_v55 = vsel %vm3907_vm1, %v8085_v40, 0.0  ;;  %v4050_v40 = vsel %vm3907_vm1, %v8100_v36, 0.0  ;;  %v4060_v36 = vsel %vm3907_vm1, %v8116_v45, 0.0 }
 0x321   : > { %v4031_v49 = vadd.f32 %v4030_v59, %v4029_v0  ;;  %v4070_v45 = vsel %vm3907_vm1, %v8132_v56, 0.0  ;;  %v4078_v56 = vsel %vm3907_vm1, %v8144_v42, 0.0 }
 0x322   : > { %v3984_v62 = vadd.f32 %v3983_v21, %v3982_v34 }
 0x323   : > { %v4033_v39 = vadd.f32 %v4032_v1, %v4031_v49 }
 0x324   : > { %v3986_v5 = vadd.f32 %v3985_v44, %v3984_v62 }
 0x325   : > { %v4035_v43 = vadd.f32 %v4034_v50, %v4033_v39  ;;  %v4092_v50 = vlaneseq }
 0x326   : > { %v3988_v8 = vadd.f32 %v3987_v17, %v3986_v5 }
 0x327   : > { %v4037_v11 = vadd.f32 %v4036_v32, %v4035_v43  ;;  %v4084_v32 = vsel %vm3907_vm1, %v8160_v2, 0.0  ;;  %vm4106_vm2 = vcmp.lt.s32.totalorder %v4092_v50, 256 }
 0x328   : > { %v3990_v18 = vadd.f32 %v3989_v12, %v3988_v8  ;;  %v4657_v12 = vmov 1966171168  }
 0x329   : > { %v4039_v30 = vadd.f32 %v4038_v3, %v4037_v11  ;;  %v4090_v46 = vunpack.c.l.s4 %v4657_v12 }
 0x32a   : > { %v3992_v37 = vadd.f32 %v3991_v29, %v3990_v18  ;;  %v4093_v29 = vshrl.u32 %v4092_v50, 7 }
 0x32b   : > { %v4041_v13 = vadd.f32 %v4040_v55, %v4039_v30  ;;  %v4091_v25 = vunpack.c.0.s8 %v4090_v46 }
 0x32c   : > { %v3994_v10 = vadd.f32 %v3993_v51, %v3992_v37 }
 0x32d   : > { %v4043_v57 = vadd.f32 %v4042_v16, %v4041_v13  ;;  %v4094_v11 = vsub.s32 %v4091_v25, %v4093_v29 }
 0x32e   : > { %v3996_v53 = vadd.f32 %v3995_v61, %v3994_v10 }
 0x32f   : > { %v4045_v34 = vadd.f32 %v4044_v48, %v4043_v57 }
 0x331   : > { %v4047_v41 = vadd.f32 %v4046_v22, %v4045_v34 }
 0x333   : > { %v4049_v21 = vadd.f32 %v4048_v9, %v4047_v41 }
 0x335   : > { %v4051_v60 = vadd.f32 %v4050_v40, %v4049_v21 }
 0x337   : > { %v4053_v62 = vadd.f32 %v4052_v26, %v4051_v60 }
 0x339   : > { %v4055_v0 = vadd.f32 %v4054_v23, %v4053_v62 }
 0x33b   : > { %v4057_v28 = vadd.f32 %v4056_v58, %v4055_v0 }
 0x33d   : > { %v4059_v44 = vadd.f32 %v4058_v52, %v4057_v28 }
 0x33f   : > { %v4061_v59 = vadd.f32 %v4060_v36, %v4059_v44 }
 0x341   : > { %v4063_v5 = vadd.f32 %v4062_v24, %v4061_v59 }
 0x343   : > { %v4065_v49 = vadd.f32 %v4064_v14, %v4063_v5 }
 0x345   : > { %v4067_v63 = vadd.f32 %v4066_v38, %v4065_v49 }
 0x347   : > { %v4069_v17 = vadd.f32 %v4068_v47, %v4067_v63 }
 0x349   : > { %v4071_v1 = vadd.f32 %v4070_v45, %v4069_v17 }
 0x34b   : > { %v4073_v8 = vadd.f32 %v4072_v6, %v4071_v1 }
 0x34d   : > { %v4075_v39 = vadd.f32 %v4074_v19, %v4073_v8 }
 0x34f   : > { %v4077_v15 = vadd.f32 %v4076_v7, %v4075_v39 }
 0x351   : > { %v4079_v18 = vadd.f32 %v4078_v56, %v4077_v15 }
 0x353   : > { %v4081_v43 = vadd.f32 %v4080_v4, %v4079_v18 }
 0x355   : > { %v4083_v20 = vadd.f32 %v4082_v54, %v4081_v43 }
 0x357   : > { %v4085_v37 = vadd.f32 %v4084_v32, %v4083_v20 }
 0x359   : > { %v4088_v42 = vcombine.low %v3996_v53, %v4085_v37 }
 0x35b   : > { %v4095_v35 = vrot.slane %v4088_v42, %v4094_v11 }
 0x35d   : > { %v4102_v31 = vrot.slane %v4095_v35, %v4094_v11 }
 0x35f   : > { %4108 = vst.msk [vmem:[%s203_s22] sm:$0x3] %vm4106_vm2, %v4102_v31 }
 0x360   : > { %4589 = shalt.err (!%p4586_p11)
}
 0x361   : > { %s4590_s10 = scalar_lea.hbm %s8292_s5, 32  ;;  %s4594_s19 = scalar_lea.hbm %s8339_s3, 64 }
 0x362   : > { %p4591_p13 = scmp.ne.s32.totalorder %s8292_s5, %s4590_s10  ;;  %p4595_p12 = scmp.lt.u32.totalorder %s8292_s5, %s8339_s3 }
 0x363   : > { %p4596_p0 = scmp.lt.u32.totalorder %s4594_s19, %s4590_s10  ;;  %p4598_p8 = scmp.lt.u32.totalorder %s4590_s10, %s8292_s5 }
 0x364   : > { %p4592_p2 = pnand %p4591_p13, %p9271_p9 }
 0x365   : > { %p4597_p3 = por %p4596_p0, %p4595_p12 }
 0x366   : > { %p4593_p6 = pneg %p4592_p2 }
 0x367   : > { %p4599_p10 = por %p4598_p8, %p4597_p3 }
 0x369   : > { %p4600_p1 = pnand %p4599_p10, %p4593_p6 }
 0x36b   : > { %4603 = shalt.err (!%p4600_p1)
}
 0x36c   : > { %4273 = dma.vmem_to_hbm [thread:$0]  (%p9271_p9), %s8294_s29, 32, %s8292_s5, %s4110_s6  }
 0x36d PF: > { %s4136_s26 = sand.u32 1, %s4634_s12   ;;  %p9272_p4 = scmp.ne.s32.totalorder %s8552_s25, 0 }
 0x36e   : > { %p9273_p7 = scmp.ge.s32.totalorder %s4646_s15, 2  ;;  %s4137_s4 = scalar_lea.sflag [#allocation4], %s4136_s26 }
 0x370   : > { %p4284_p5 = pnand %p9273_p7, %p9272_p4 }
 0x372   : > { %4629 = dma.done.wait (!%p4284_p5), %s4137_s4, 32  }
 0x373   : > { %4631 = vsyncadd (!%p4284_p5), %s4137_s4, 4294967264  ;;  %p17_p11 = scmp.ge.s32.totalorder %s4704_s18, 4   ;;  %s9274_s12 = smov %s4638_s13 }
 0x374   : > { %s9275_s13 = smov %s4642_s14  ;;  %s9276_s14 = smov %s4716_s21 }
 0x375   : > { %s9277_s15 = smov %s4704_s18  ;;  %19 = sbr.rel (!%p17_p11) target bundleno = 6 (0x6), region = 81 }
 0x37c   :  { %4142 = vsyncpa [#allocation3], 1 }
 0x37d   :  { %4144 = vsyncpa [#allocation3 + $0x1], 1 }
 0x37e   :  { %4145 = vsyncpa [#allocation6], 1 }
 0x37f   :  { %4146 = vsyncpa [#allocation4], 1 }
 0x380   :  { %4148 = vsyncpa [#allocation4 + $0x1], 1 }

</bundles_post_ra>
